<compile_context>
chip_gen: v6e
topology: v6e:2x2x1
jax: 0.10.0
libtpu: 0.0.40
codegen_flags: <defaults>
</compile_context>

<pallas_src>
import math

import jax
import jax.numpy as jnp
from jax.experimental import pallas as pl
from jax.experimental.pallas import tpu as pltpu

# ----------------------------- model config ---------------------------------
INPUT_DIM = 16
NUM_CLASSES = 4
NUM_HEADS = 4
NUM_LAYERS = 2
HIDDEN_DIM = 32                       # must be divisible by NUM_HEADS
FFN_DIM = HIDDEN_DIM * 4
HEAD_DIM = HIDDEN_DIM // NUM_HEADS
LN_EPS = 1e-5

BATCH = 2
SEQ = 8
OUT_PAD = 128                         # lane-dense padded logits width

# ---------------------- packed-parameter row offsets -------------------------
# WB32  [349, 32] : wemb (16 rows) ; per layer [wo (32), w2 (128)] ;
#                   bemb (1) ; per layer [bo, ln1g, ln1b, b2, ln2g, ln2b] (6 rows each)
# W128  [ 99, 128]: w1 per layer (32 rows each), wfc padded (32 rows),
#                   b1 per layer (1 row each), bfc padded (1 row)
# WQKVB [L*3*H, 40, 8]: per (layer, type, head) slab; rows 0:32 weight, row 32 bias,
#                   rows 33:40 zero padding.  type t: 0=q (pre-scaled), 1=k, 2=v.
W_LAYER_STRIDE = HIDDEN_DIM + FFN_DIM                      # 160
BIAS0 = INPUT_DIM + NUM_LAYERS * W_LAYER_STRIDE            # 336 (bemb row)
WB32_ROWS = BIAS0 + 1 + 6 * NUM_LAYERS                     # 349

W128_WFC_ROW = NUM_LAYERS * HIDDEN_DIM                     # 64
W128_B1_ROW = W128_WFC_ROW + HIDDEN_DIM                    # 96
W128_BFC_ROW = W128_B1_ROW + NUM_LAYERS                    # 98
W128_ROWS = W128_BFC_ROW + 1                               # 99

QKV_PAD_ROWS = 40                                          # 32 weight + 1 bias + 7 pad


def _w32_layer_base(l):
    return INPUT_DIM + l * W_LAYER_STRIDE


def _b32_layer_base(l):
    return BIAS0 + 1 + 6 * l


def _qkv_idx(l, t, hh):
    return (l * 3 + t) * NUM_HEADS + hh


def _layernorm(x, g, b):
    mu = jnp.mean(x, axis=-1, keepdims=True)
    xc = x - mu
    var = jnp.mean(xc * xc, axis=-1, keepdims=True)
    return xc * jax.lax.rsqrt(var + LN_EPS) * g + b


# ------------------------------ Pallas kernel --------------------------------
def transformer_kernel(
    x_ref,        # (B*S, INPUT_DIM)
    wb32_ref,     # (349, 32)
    w128_ref,     # (99, 128)
    wqkvb_ref,    # (L*3*H, 40, 8)
    o_ref,        # (B, OUT_PAD)
):
    f32 = jnp.float32

    # embedding: [B*S, Din] @ [Din, D] + bemb
    h = (jnp.dot(x_ref[...], wb32_ref[0:INPUT_DIM, :], preferred_element_type=f32)
         + wb32_ref[BIAS0:BIAS0 + 1, :])

    for l in range(NUM_LAYERS):                                   # static unroll
        wbase = _w32_layer_base(l)
        bbase = _b32_layer_base(l)

        # ---- multi-head self attention (dropout identity in eval mode) ----
        attn = None
        for hh in range(NUM_HEADS):                               # static unroll
            wq = wqkvb_ref[_qkv_idx(l, 0, hh)]                    # (40, 8) slab
            wk = wqkvb_ref[_qkv_idx(l, 1, hh)]
            wv = wqkvb_ref[_qkv_idx(l, 2, hh)]
            # 1/sqrt(HEAD_DIM) is folded into wq (pack time), so no in-kernel scale.
            qh = jnp.dot(h, wq[0:HIDDEN_DIM], preferred_element_type=f32) \
                + wq[HIDDEN_DIM:HIDDEN_DIM + 1]
            kh = jnp.dot(h, wk[0:HIDDEN_DIM], preferred_element_type=f32) \
                + wk[HIDDEN_DIM:HIDDEN_DIM + 1]
            vh = jnp.dot(h, wv[0:HIDDEN_DIM], preferred_element_type=f32) \
                + wv[HIDDEN_DIM:HIDDEN_DIM + 1]

            q3 = qh.reshape(BATCH, SEQ, HEAD_DIM)
            k3 = kh.reshape(BATCH, SEQ, HEAD_DIM)
            v3 = vh.reshape(BATCH, SEQ, HEAD_DIM)

            s = jnp.einsum("bqd,bkd->bqk", q3, k3, preferred_element_type=f32)
            s = s - jnp.max(s, axis=-1, keepdims=True)
            p = jnp.exp(s)
            p = p * pl.reciprocal(jnp.sum(p, axis=-1, keepdims=True), approx=True)
            ctx = jnp.einsum("bqk,bkd->bqd", p, v3, preferred_element_type=f32)
            ctx2 = ctx.reshape(BATCH * SEQ, HEAD_DIM)

            # accumulate output projection per head (sublane slice of wo, no concat)
            wo_h = wb32_ref[wbase + hh * HEAD_DIM: wbase + (hh + 1) * HEAD_DIM, :]
            contrib = jnp.dot(ctx2, wo_h, preferred_element_type=f32)
            attn = contrib if attn is None else attn + contrib
        attn = attn + wb32_ref[bbase + 0: bbase + 1, :]           # bo

        # post-norm residual 1
        h = _layernorm(h + attn,
                       wb32_ref[bbase + 1: bbase + 2, :],         # ln1g
                       wb32_ref[bbase + 2: bbase + 3, :])         # ln1b

        # ---- feed-forward (ReLU) ----
        w1 = w128_ref[l * HIDDEN_DIM: (l + 1) * HIDDEN_DIM, :]
        b1 = w128_ref[W128_B1_ROW + l: W128_B1_ROW + l + 1, :]
        w2 = wb32_ref[wbase + HIDDEN_DIM: wbase + HIDDEN_DIM + FFN_DIM, :]
        b2 = wb32_ref[bbase + 3: bbase + 4, :]
        ff = jnp.maximum(jnp.dot(h, w1, preferred_element_type=f32) + b1, 0.0)
        ff = jnp.dot(ff, w2, preferred_element_type=f32) + b2

        # post-norm residual 2
        h = _layernorm(h + ff,
                       wb32_ref[bbase + 4: bbase + 5, :],         # ln2g
                       wb32_ref[bbase + 5: bbase + 6, :])         # ln2b

    # classifier on last token of each sequence; one lane-dense (B, 128) store
    last = jnp.concatenate(
        [h[b * SEQ + SEQ - 1: b * SEQ + SEQ, :] for b in range(BATCH)], axis=0)  # [B, D]
    wfc = w128_ref[W128_WFC_ROW: W128_WFC_ROW + HIDDEN_DIM, :]
    bfc = w128_ref[W128_BFC_ROW: W128_BFC_ROW + 1, :]
    o_ref[...] = jnp.dot(last, wfc, preferred_element_type=f32) + bfc


# ---------------------------- parameter packing -------------------------------
def pack_params(p):
    L, D, H, Hd, F, C = NUM_LAYERS, HIDDEN_DIM, NUM_HEADS, HEAD_DIM, FFN_DIM, NUM_CLASSES
    scale = 1.0 / math.sqrt(Hd)

    # ---- WB32: all 32-lane weights, then all 32-lane bias/LN rows ----
    rows = [p["wemb"]]
    for l in range(L):
        rows += [p["wo"][l], p["w2"][l]]
    rows += [p["bemb"][None, :]]
    for l in range(L):
        rows += [p[k][l][None, :]
                 for k in ("bo", "ln1g", "ln1b", "b2", "ln2g", "ln2b")]
    WB32 = jnp.concatenate(rows, axis=0)                           # [349, 32]
    assert WB32.shape == (WB32_ROWS, D)

    # ---- W128: FFN up-proj, padded classifier, their biases ----
    wfc_pad = jnp.zeros((D, OUT_PAD), jnp.float32).at[:, :C].set(p["wfc"])
    bfc_pad = jnp.zeros((1, OUT_PAD), jnp.float32).at[:, :C].set(p["bfc"][None, :])
    W128 = jnp.concatenate(
        [p["w1"][l] for l in range(L)] + [wfc_pad]
        + [p["b1"][l][None, :] for l in range(L)] + [bfc_pad], axis=0)  # [99, 128]
    assert W128.shape == (W128_ROWS, OUT_PAD)

    # ---- WQKVB: per (layer, q/k/v, head) slab of [weight | bias | zero-pad] ----
    slabs = []
    for l in range(L):
        for t, (wname, bname) in enumerate((("wq", "bq"), ("wk", "bk"), ("wv", "bv"))):
            w = p[wname][l]                                        # [D, D]
            b = p[bname][l]                                        # [D]
            if t == 0:                                             # fold attn scale into Q
                w = w * scale
                b = b * scale
            wh = w.reshape(D, H, Hd).transpose(1, 0, 2)            # [H, D, Hd]
            bh = b.reshape(H, 1, Hd)                               # [H, 1, Hd]
            pad = jnp.zeros((H, QKV_PAD_ROWS - D - 1, Hd), jnp.float32)
            slabs.append(jnp.concatenate([wh, bh, pad], axis=1))   # [H, 40, Hd]
    WQKVB = jnp.concatenate(slabs, axis=0)                         # [L*3*H, 40, Hd]
    assert WQKVB.shape == (L * 3 * H, QKV_PAD_ROWS, Hd)
    return WB32, W128, WQKVB


# ------------------------------- wrapper --------------------------------------
def transformer_classifier(x, params):
    """x: [B, S, INPUT_DIM] (or [B, INPUT_DIM], which gets seq dim of 1 like PyTorch)."""
    if x.ndim == 2:
        x = x[:, None, :]
    B, S, Din = x.shape
    assert B == BATCH and S == SEQ and Din == INPUT_DIM
    x2d = x.reshape(B * S, Din)

    operands = (x2d,) + pack_params(params)
    in_specs = [pl.BlockSpec(op.shape, lambda i, _n=op.ndim: (0,) * _n) for op in operands]

    # NOTE: single-program grid (workload is launch/overhead bound at this size).
    # On v7x (2 TensorCores) grid=(B,) with dimension_semantics=("parallel",) would
    # map one sequence per core instead.
    out = pl.pallas_call(
        transformer_kernel,
        out_shape=jax.ShapeDtypeStruct((B, OUT_PAD), jnp.float32),
        grid=(1,),
        in_specs=in_specs,
        out_specs=pl.BlockSpec((B, OUT_PAD), lambda i: (0, 0)),
        compiler_params=pltpu.CompilerParams(dimension_semantics=("arbitrary",)),
    )(*operands)
    return out[:, :NUM_CLASSES]


# --------------------------- reference (plain JAX) ---------------------------
def reference_forward(x, p):
    if x.ndim == 2:
        x = x[:, None, :]
    B, S, _ = x.shape
    h = x @ p["wemb"] + p["bemb"]
    for l in range(NUM_LAYERS):
        q = h @ p["wq"][l] + p["bq"][l]
        k = h @ p["wk"][l] + p["bk"][l]
        v = h @ p["wv"][l] + p["bv"][l]
        qh = q.reshape(B, S, NUM_HEADS, HEAD_DIM).transpose(0, 2, 1, 3)
        kh = k.reshape(B, S, NUM_HEADS, HEAD_DIM).transpose(0, 2, 1, 3)
        vh = v.reshape(B, S, NUM_HEADS, HEAD_DIM).transpose(0, 2, 1, 3)
        scores = jnp.einsum("bhqd,bhkd->bhqk", qh, kh) / math.sqrt(HEAD_DIM)
        pmat = jax.nn.softmax(scores, axis=-1)
        attn = jnp.einsum("bhqk,bhkd->bhqd", pmat, vh)
        attn = attn.transpose(0, 2, 1, 3).reshape(B, S, HIDDEN_DIM)
        attn = attn @ p["wo"][l] + p["bo"][l]
        h = _layernorm(h + attn, p["ln1g"][l], p["ln1b"][l])
        ff = jnp.maximum(h @ p["w1"][l] + p["b1"][l], 0.0) @ p["w2"][l] + p["b2"][l]
        h = _layernorm(h + ff, p["ln2g"][l], p["ln2b"][l])
    return h[:, -1, :] @ p["wfc"] + p["bfc"]


# ------------------------------ param init -----------------------------------
def init_params(key):
    ks = jax.random.split(key, 16)
    L, D, F, Din, C = NUM_LAYERS, HIDDEN_DIM, FFN_DIM, INPUT_DIM, NUM_CLASSES
    s = 0.05
    return {
        "wemb": jax.random.normal(ks[0], (Din, D), jnp.float32) * s,
        "bemb": jax.random.normal(ks[1], (D,), jnp.float32) * s,
        "wq":   jax.random.normal(ks[2], (L, D, D), jnp.float32) * s,
        "wk":   jax.random.normal(ks[3], (L, D, D), jnp.float32) * s,
        "wv":   jax.random.normal(ks[4], (L, D, D), jnp.float32) * s,
        "bq":   jax.random.normal(ks[5], (L, D), jnp.float32) * s,
        "bk":   jax.random.normal(ks[6], (L, D), jnp.float32) * s,
        "bv":   jax.random.normal(ks[7], (L, D), jnp.float32) * s,
        "wo":   jax.random.normal(ks[8], (L, D, D), jnp.float32) * s,
        "bo":   jax.random.normal(ks[9], (L, D), jnp.float32) * s,
        "ln1g": jnp.ones((L, D), jnp.float32),
        "ln1b": jnp.zeros((L, D), jnp.float32),
        "w1":   jax.random.normal(ks[10], (L, D, F), jnp.float32) * s,
        "b1":   jax.random.normal(ks[11], (L, F), jnp.float32) * s,
        "w2":   jax.random.normal(ks[12], (L, F, D), jnp.float32) * s,
        "b2":   jax.random.normal(ks[13], (L, D), jnp.float32) * s,
        "ln2g": jnp.ones((L, D), jnp.float32),
        "ln2b": jnp.zeros((L, D), jnp.float32),
        "wfc":  jax.random.normal(ks[14], (D, C), jnp.float32) * s,
        "bfc":  jax.random.normal(ks[15], (C,), jnp.float32) * s,
    }


if __name__ == "__main__":
    key = jax.random.PRNGKey(0)
    kx, kp = jax.random.split(key)
    x = jax.random.normal(kx, (BATCH, SEQ, INPUT_DIM), jnp.float32)
    params = init_params(kp)

    out = jax.block_until_ready(transformer_classifier(x, params))
    ref = jax.block_until_ready(reference_forward(x, params))

    assert out.shape == (BATCH, NUM_CLASSES)
    assert jnp.allclose(out, ref, rtol=1e-3, atol=1e-3), (out, ref)

    # NOTE: dropout layers are identity in eval/inference mode, so they are omitted.
    print("KERNEL_OK")
</pallas_src>

<mosaic_0001>
module attributes {stable_mosaic.version = 11 : i64} {
  func.func @transformer_kernel(%arg0: i32, %arg1: memref<16x16xf32, #tpu.memory_space<vmem>>, %arg2: memref<349x32xf32, #tpu.memory_space<vmem>>, %arg3: memref<99x128xf32, #tpu.memory_space<vmem>>, %arg4: memref<24x40x8xf32, #tpu.memory_space<vmem>>, %arg5: memref<2x128xf32, #tpu.memory_space<vmem>>) attributes {dimension_semantics = [#tpu.dimension_semantics<arbitrary>], iteration_bounds = array<i64: 1>, scalar_prefetch = 0 : i64, scratch_operands = 0 : i64, tpu.core_type = #tpu.core_type<tc>, window_params = [{pipeline_mode = #tpu.pipeline_mode<synchronous>, transform_indices = @transform_0, window_bounds = array<i64: 16, 16>}, {pipeline_mode = #tpu.pipeline_mode<synchronous>, transform_indices = @transform_1, window_bounds = array<i64: 349, 32>}, {pipeline_mode = #tpu.pipeline_mode<synchronous>, transform_indices = @transform_2, window_bounds = array<i64: 99, 128>}, {pipeline_mode = #tpu.pipeline_mode<synchronous>, transform_indices = @transform_3, window_bounds = array<i64: 24, 40, 8>}, {pipeline_mode = #tpu.pipeline_mode<synchronous>, transform_indices = @transform_4, window_bounds = array<i64: 2, 128>}]} {
    %c0 = arith.constant 0 : index
    %c0_0 = arith.constant 0 : index
    %0 = vector.load %arg1[%c0, %c0_0] : memref<16x16xf32, #tpu.memory_space<vmem>>, vector<16x16xf32>
    %c0_1 = arith.constant 0 : index
    %c0_2 = arith.constant 0 : index
    %1 = vector.load %arg2[%c0_1, %c0_2] : memref<349x32xf32, #tpu.memory_space<vmem>>, vector<16x32xf32>
    %cst = arith.constant dense<0.000000e+00> : vector<16x32xf32>
    %2 = tpu.matmul %0, %1, %cst {dimension_numbers = #tpu.dot_dimension_numbers<[1], [0], [0], [1], [0, 0, 1, 1], [], []>} : vector<16x16xf32>, vector<16x32xf32>, vector<16x32xf32> -> vector<16x32xf32>
    %c336 = arith.constant 336 : index
    %c0_3 = arith.constant 0 : index
    %3 = vector.load %arg2[%c336, %c0_3] : memref<349x32xf32, #tpu.memory_space<vmem>>, vector<1x32xf32>
    %4 = vector.broadcast %3 : vector<1x32xf32> to vector<16x32xf32>
    %5 = arith.addf %2, %4 : vector<16x32xf32>
    %c0_4 = arith.constant 0 : index
    %c0_5 = arith.constant 0 : index
    %c0_6 = arith.constant 0 : index
    %6 = vector.load %arg4[%c0_4, %c0_5, %c0_6] : memref<24x40x8xf32, #tpu.memory_space<vmem>>, vector<1x40x8xf32>
    %7 = vector.shape_cast %6 : vector<1x40x8xf32> to vector<40x8xf32>
    %c4 = arith.constant 4 : index
    %c0_7 = arith.constant 0 : index
    %c0_8 = arith.constant 0 : index
    %8 = vector.load %arg4[%c4, %c0_7, %c0_8] : memref<24x40x8xf32, #tpu.memory_space<vmem>>, vector<1x40x8xf32>
    %9 = vector.shape_cast %8 : vector<1x40x8xf32> to vector<40x8xf32>
    %c8 = arith.constant 8 : index
    %c0_9 = arith.constant 0 : index
    %c0_10 = arith.constant 0 : index
    %10 = vector.load %arg4[%c8, %c0_9, %c0_10] : memref<24x40x8xf32, #tpu.memory_space<vmem>>, vector<1x40x8xf32>
    %11 = vector.shape_cast %10 : vector<1x40x8xf32> to vector<40x8xf32>
    %12 = vector.extract_strided_slice %7 {offsets = [0, 0], sizes = [32, 8], strides = [1, 1]} : vector<40x8xf32> to vector<32x8xf32>
    %cst_11 = arith.constant dense<0.000000e+00> : vector<16x8xf32>
    %13 = tpu.matmul %5, %12, %cst_11 {dimension_numbers = #tpu.dot_dimension_numbers<[1], [0], [0], [1], [0, 0, 1, 1], [], []>} : vector<16x32xf32>, vector<32x8xf32>, vector<16x8xf32> -> vector<16x8xf32>
    %14 = vector.extract_strided_slice %7 {offsets = [32, 0], sizes = [1, 8], strides = [1, 1]} : vector<40x8xf32> to vector<1x8xf32>
    %15 = vector.broadcast %14 : vector<1x8xf32> to vector<16x8xf32>
    %16 = arith.addf %13, %15 : vector<16x8xf32>
    %17 = vector.extract_strided_slice %9 {offsets = [0, 0], sizes = [32, 8], strides = [1, 1]} : vector<40x8xf32> to vector<32x8xf32>
    %cst_12 = arith.constant dense<0.000000e+00> : vector<16x8xf32>
    %18 = tpu.matmul %5, %17, %cst_12 {dimension_numbers = #tpu.dot_dimension_numbers<[1], [0], [0], [1], [0, 0, 1, 1], [], []>} : vector<16x32xf32>, vector<32x8xf32>, vector<16x8xf32> -> vector<16x8xf32>
    %19 = vector.extract_strided_slice %9 {offsets = [32, 0], sizes = [1, 8], strides = [1, 1]} : vector<40x8xf32> to vector<1x8xf32>
    %20 = vector.broadcast %19 : vector<1x8xf32> to vector<16x8xf32>
    %21 = arith.addf %18, %20 : vector<16x8xf32>
    %22 = vector.extract_strided_slice %11 {offsets = [0, 0], sizes = [32, 8], strides = [1, 1]} : vector<40x8xf32> to vector<32x8xf32>
    %cst_13 = arith.constant dense<0.000000e+00> : vector<16x8xf32>
    %23 = tpu.matmul %5, %22, %cst_13 {dimension_numbers = #tpu.dot_dimension_numbers<[1], [0], [0], [1], [0, 0, 1, 1], [], []>} : vector<16x32xf32>, vector<32x8xf32>, vector<16x8xf32> -> vector<16x8xf32>
    %24 = vector.extract_strided_slice %11 {offsets = [32, 0], sizes = [1, 8], strides = [1, 1]} : vector<40x8xf32> to vector<1x8xf32>
    %25 = vector.broadcast %24 : vector<1x8xf32> to vector<16x8xf32>
    %26 = arith.addf %23, %25 : vector<16x8xf32>
    %27 = vector.shape_cast %16 : vector<16x8xf32> to vector<2x8x8xf32>
    %28 = vector.shape_cast %21 : vector<16x8xf32> to vector<2x8x8xf32>
    %29 = vector.shape_cast %26 : vector<16x8xf32> to vector<2x8x8xf32>
    "tpu.trace_start"() <{level = 10 : i32, message = "bqd,bkd->bqk"}> : () -> ()
    %cst_14 = arith.constant dense<0.000000e+00> : vector<2x8x8xf32>
    %30 = tpu.matmul %27, %28, %cst_14 {dimension_numbers = #tpu.dot_dimension_numbers<[2], [2], [1], [1], [0, 0, 0, 1, 1, 1], [0], [0]>} : vector<2x8x8xf32>, vector<2x8x8xf32>, vector<2x8x8xf32> -> vector<2x8x8xf32>
    "tpu.trace_stop"() : () -> ()
    %cst_15 = arith.constant dense<0xFF800000> : vector<2x8xf32>
    %31 = vector.multi_reduction <maximumf>, %30, %cst_15 [2] : vector<2x8x8xf32> to vector<2x8xf32>
    %32 = vector.shape_cast %31 : vector<2x8xf32> to vector<2x8x1xf32>
    %33 = vector.broadcast %32 : vector<2x8x1xf32> to vector<2x8x8xf32>
    %34 = arith.subf %30, %33 : vector<2x8x8xf32>
    %35 = math.exp %34 : vector<2x8x8xf32>
    %cst_16 = arith.constant dense<0.000000e+00> : vector<2x8xf32>
    %36 = vector.multi_reduction <add>, %35, %cst_16 [2] : vector<2x8x8xf32> to vector<2x8xf32>
    %37 = vector.shape_cast %36 : vector<2x8xf32> to vector<2x8x1xf32>
    %38 = tpu.reciprocal %37 {approx = true} : vector<2x8x1xf32> -> vector<2x8x1xf32>
    %39 = vector.broadcast %38 : vector<2x8x1xf32> to vector<2x8x8xf32>
    %40 = arith.mulf %35, %39 : vector<2x8x8xf32>
    "tpu.trace_start"() <{level = 10 : i32, message = "bqk,bkd->bqd"}> : () -> ()
    %cst_17 = arith.constant dense<0.000000e+00> : vector<2x8x8xf32>
    %41 = tpu.matmul %40, %29, %cst_17 {dimension_numbers = #tpu.dot_dimension_numbers<[2], [1], [1], [2], [0, 0, 0, 1, 1, 2], [0], [0]>} : vector<2x8x8xf32>, vector<2x8x8xf32>, vector<2x8x8xf32> -> vector<2x8x8xf32>
    "tpu.trace_stop"() : () -> ()
    %42 = vector.shape_cast %41 : vector<2x8x8xf32> to vector<16x8xf32>
    %c16 = arith.constant 16 : index
    %c0_18 = arith.constant 0 : index
    %43 = vector.load %arg2[%c16, %c0_18] : memref<349x32xf32, #tpu.memory_space<vmem>>, vector<8x32xf32>
    %cst_19 = arith.constant dense<0.000000e+00> : vector<16x32xf32>
    %44 = tpu.matmul %42, %43, %cst_19 {dimension_numbers = #tpu.dot_dimension_numbers<[1], [0], [0], [1], [0, 0, 1, 1], [], []>} : vector<16x8xf32>, vector<8x32xf32>, vector<16x32xf32> -> vector<16x32xf32>
    %c1 = arith.constant 1 : index
    %c0_20 = arith.constant 0 : index
    %c0_21 = arith.constant 0 : index
    %45 = vector.load %arg4[%c1, %c0_20, %c0_21] : memref<24x40x8xf32, #tpu.memory_space<vmem>>, vector<1x40x8xf32>
    %46 = vector.shape_cast %45 : vector<1x40x8xf32> to vector<40x8xf32>
    %c5 = arith.constant 5 : index
    %c0_22 = arith.constant 0 : index
    %c0_23 = arith.constant 0 : index
    %47 = vector.load %arg4[%c5, %c0_22, %c0_23] : memref<24x40x8xf32, #tpu.memory_space<vmem>>, vector<1x40x8xf32>
    %48 = vector.shape_cast %47 : vector<1x40x8xf32> to vector<40x8xf32>
    %c9 = arith.constant 9 : index
    %c0_24 = arith.constant 0 : index
    %c0_25 = arith.constant 0 : index
    %49 = vector.load %arg4[%c9, %c0_24, %c0_25] : memref<24x40x8xf32, #tpu.memory_space<vmem>>, vector<1x40x8xf32>
    %50 = vector.shape_cast %49 : vector<1x40x8xf32> to vector<40x8xf32>
    %51 = vector.extract_strided_slice %46 {offsets = [0, 0], sizes = [32, 8], strides = [1, 1]} : vector<40x8xf32> to vector<32x8xf32>
    %cst_26 = arith.constant dense<0.000000e+00> : vector<16x8xf32>
    %52 = tpu.matmul %5, %51, %cst_26 {dimension_numbers = #tpu.dot_dimension_numbers<[1], [0], [0], [1], [0, 0, 1, 1], [], []>} : vector<16x32xf32>, vector<32x8xf32>, vector<16x8xf32> -> vector<16x8xf32>
    %53 = vector.extract_strided_slice %46 {offsets = [32, 0], sizes = [1, 8], strides = [1, 1]} : vector<40x8xf32> to vector<1x8xf32>
    %54 = vector.broadcast %53 : vector<1x8xf32> to vector<16x8xf32>
    %55 = arith.addf %52, %54 : vector<16x8xf32>
    %56 = vector.extract_strided_slice %48 {offsets = [0, 0], sizes = [32, 8], strides = [1, 1]} : vector<40x8xf32> to vector<32x8xf32>
    %cst_27 = arith.constant dense<0.000000e+00> : vector<16x8xf32>
    %57 = tpu.matmul %5, %56, %cst_27 {dimension_numbers = #tpu.dot_dimension_numbers<[1], [0], [0], [1], [0, 0, 1, 1], [], []>} : vector<16x32xf32>, vector<32x8xf32>, vector<16x8xf32> -> vector<16x8xf32>
    %58 = vector.extract_strided_slice %48 {offsets = [32, 0], sizes = [1, 8], strides = [1, 1]} : vector<40x8xf32> to vector<1x8xf32>
    %59 = vector.broadcast %58 : vector<1x8xf32> to vector<16x8xf32>
    %60 = arith.addf %57, %59 : vector<16x8xf32>
    %61 = vector.extract_strided_slice %50 {offsets = [0, 0], sizes = [32, 8], strides = [1, 1]} : vector<40x8xf32> to vector<32x8xf32>
    %cst_28 = arith.constant dense<0.000000e+00> : vector<16x8xf32>
    %62 = tpu.matmul %5, %61, %cst_28 {dimension_numbers = #tpu.dot_dimension_numbers<[1], [0], [0], [1], [0, 0, 1, 1], [], []>} : vector<16x32xf32>, vector<32x8xf32>, vector<16x8xf32> -> vector<16x8xf32>
    %63 = vector.extract_strided_slice %50 {offsets = [32, 0], sizes = [1, 8], strides = [1, 1]} : vector<40x8xf32> to vector<1x8xf32>
    %64 = vector.broadcast %63 : vector<1x8xf32> to vector<16x8xf32>
    %65 = arith.addf %62, %64 : vector<16x8xf32>
    %66 = vector.shape_cast %55 : vector<16x8xf32> to vector<2x8x8xf32>
    %67 = vector.shape_cast %60 : vector<16x8xf32> to vector<2x8x8xf32>
    %68 = vector.shape_cast %65 : vector<16x8xf32> to vector<2x8x8xf32>
    "tpu.trace_start"() <{level = 10 : i32, message = "bqd,bkd->bqk"}> : () -> ()
    %cst_29 = arith.constant dense<0.000000e+00> : vector<2x8x8xf32>
    %69 = tpu.matmul %66, %67, %cst_29 {dimension_numbers = #tpu.dot_dimension_numbers<[2], [2], [1], [1], [0, 0, 0, 1, 1, 1], [0], [0]>} : vector<2x8x8xf32>, vector<2x8x8xf32>, vector<2x8x8xf32> -> vector<2x8x8xf32>
    "tpu.trace_stop"() : () -> ()
    %cst_30 = arith.constant dense<0xFF800000> : vector<2x8xf32>
    %70 = vector.multi_reduction <maximumf>, %69, %cst_30 [2] : vector<2x8x8xf32> to vector<2x8xf32>
    %71 = vector.shape_cast %70 : vector<2x8xf32> to vector<2x8x1xf32>
    %72 = vector.broadcast %71 : vector<2x8x1xf32> to vector<2x8x8xf32>
    %73 = arith.subf %69, %72 : vector<2x8x8xf32>
    %74 = math.exp %73 : vector<2x8x8xf32>
    %cst_31 = arith.constant dense<0.000000e+00> : vector<2x8xf32>
    %75 = vector.multi_reduction <add>, %74, %cst_31 [2] : vector<2x8x8xf32> to vector<2x8xf32>
    %76 = vector.shape_cast %75 : vector<2x8xf32> to vector<2x8x1xf32>
    %77 = tpu.reciprocal %76 {approx = true} : vector<2x8x1xf32> -> vector<2x8x1xf32>
    %78 = vector.broadcast %77 : vector<2x8x1xf32> to vector<2x8x8xf32>
    %79 = arith.mulf %74, %78 : vector<2x8x8xf32>
    "tpu.trace_start"() <{level = 10 : i32, message = "bqk,bkd->bqd"}> : () -> ()
    %cst_32 = arith.constant dense<0.000000e+00> : vector<2x8x8xf32>
    %80 = tpu.matmul %79, %68, %cst_32 {dimension_numbers = #tpu.dot_dimension_numbers<[2], [1], [1], [2], [0, 0, 0, 1, 1, 2], [0], [0]>} : vector<2x8x8xf32>, vector<2x8x8xf32>, vector<2x8x8xf32> -> vector<2x8x8xf32>
    "tpu.trace_stop"() : () -> ()
    %81 = vector.shape_cast %80 : vector<2x8x8xf32> to vector<16x8xf32>
    %c24 = arith.constant 24 : index
    %c0_33 = arith.constant 0 : index
    %82 = vector.load %arg2[%c24, %c0_33] : memref<349x32xf32, #tpu.memory_space<vmem>>, vector<8x32xf32>
    %cst_34 = arith.constant dense<0.000000e+00> : vector<16x32xf32>
    %83 = tpu.matmul %81, %82, %cst_34 {dimension_numbers = #tpu.dot_dimension_numbers<[1], [0], [0], [1], [0, 0, 1, 1], [], []>} : vector<16x8xf32>, vector<8x32xf32>, vector<16x32xf32> -> vector<16x32xf32>
    %84 = arith.addf %44, %83 : vector<16x32xf32>
    %c2 = arith.constant 2 : index
    %c0_35 = arith.constant 0 : index
    %c0_36 = arith.constant 0 : index
    %85 = vector.load %arg4[%c2, %c0_35, %c0_36] : memref<24x40x8xf32, #tpu.memory_space<vmem>>, vector<1x40x8xf32>
    %86 = vector.shape_cast %85 : vector<1x40x8xf32> to vector<40x8xf32>
    %c6 = arith.constant 6 : index
    %c0_37 = arith.constant 0 : index
    %c0_38 = arith.constant 0 : index
    %87 = vector.load %arg4[%c6, %c0_37, %c0_38] : memref<24x40x8xf32, #tpu.memory_space<vmem>>, vector<1x40x8xf32>
    %88 = vector.shape_cast %87 : vector<1x40x8xf32> to vector<40x8xf32>
    %c10 = arith.constant 10 : index
    %c0_39 = arith.constant 0 : index
    %c0_40 = arith.constant 0 : index
    %89 = vector.load %arg4[%c10, %c0_39, %c0_40] : memref<24x40x8xf32, #tpu.memory_space<vmem>>, vector<1x40x8xf32>
    %90 = vector.shape_cast %89 : vector<1x40x8xf32> to vector<40x8xf32>
    %91 = vector.extract_strided_slice %86 {offsets = [0, 0], sizes = [32, 8], strides = [1, 1]} : vector<40x8xf32> to vector<32x8xf32>
    %cst_41 = arith.constant dense<0.000000e+00> : vector<16x8xf32>
    %92 = tpu.matmul %5, %91, %cst_41 {dimension_numbers = #tpu.dot_dimension_numbers<[1], [0], [0], [1], [0, 0, 1, 1], [], []>} : vector<16x32xf32>, vector<32x8xf32>, vector<16x8xf32> -> vector<16x8xf32>
    %93 = vector.extract_strided_slice %86 {offsets = [32, 0], sizes = [1, 8], strides = [1, 1]} : vector<40x8xf32> to vector<1x8xf32>
    %94 = vector.broadcast %93 : vector<1x8xf32> to vector<16x8xf32>
    %95 = arith.addf %92, %94 : vector<16x8xf32>
    %96 = vector.extract_strided_slice %88 {offsets = [0, 0], sizes = [32, 8], strides = [1, 1]} : vector<40x8xf32> to vector<32x8xf32>
    %cst_42 = arith.constant dense<0.000000e+00> : vector<16x8xf32>
    %97 = tpu.matmul %5, %96, %cst_42 {dimension_numbers = #tpu.dot_dimension_numbers<[1], [0], [0], [1], [0, 0, 1, 1], [], []>} : vector<16x32xf32>, vector<32x8xf32>, vector<16x8xf32> -> vector<16x8xf32>
    %98 = vector.extract_strided_slice %88 {offsets = [32, 0], sizes = [1, 8], strides = [1, 1]} : vector<40x8xf32> to vector<1x8xf32>
    %99 = vector.broadcast %98 : vector<1x8xf32> to vector<16x8xf32>
    %100 = arith.addf %97, %99 : vector<16x8xf32>
    %101 = vector.extract_strided_slice %90 {offsets = [0, 0], sizes = [32, 8], strides = [1, 1]} : vector<40x8xf32> to vector<32x8xf32>
    %cst_43 = arith.constant dense<0.000000e+00> : vector<16x8xf32>
    %102 = tpu.matmul %5, %101, %cst_43 {dimension_numbers = #tpu.dot_dimension_numbers<[1], [0], [0], [1], [0, 0, 1, 1], [], []>} : vector<16x32xf32>, vector<32x8xf32>, vector<16x8xf32> -> vector<16x8xf32>
    %103 = vector.extract_strided_slice %90 {offsets = [32, 0], sizes = [1, 8], strides = [1, 1]} : vector<40x8xf32> to vector<1x8xf32>
    %104 = vector.broadcast %103 : vector<1x8xf32> to vector<16x8xf32>
    %105 = arith.addf %102, %104 : vector<16x8xf32>
    %106 = vector.shape_cast %95 : vector<16x8xf32> to vector<2x8x8xf32>
    %107 = vector.shape_cast %100 : vector<16x8xf32> to vector<2x8x8xf32>
    %108 = vector.shape_cast %105 : vector<16x8xf32> to vector<2x8x8xf32>
    "tpu.trace_start"() <{level = 10 : i32, message = "bqd,bkd->bqk"}> : () -> ()
    %cst_44 = arith.constant dense<0.000000e+00> : vector<2x8x8xf32>
    %109 = tpu.matmul %106, %107, %cst_44 {dimension_numbers = #tpu.dot_dimension_numbers<[2], [2], [1], [1], [0, 0, 0, 1, 1, 1], [0], [0]>} : vector<2x8x8xf32>, vector<2x8x8xf32>, vector<2x8x8xf32> -> vector<2x8x8xf32>
    "tpu.trace_stop"() : () -> ()
    %cst_45 = arith.constant dense<0xFF800000> : vector<2x8xf32>
    %110 = vector.multi_reduction <maximumf>, %109, %cst_45 [2] : vector<2x8x8xf32> to vector<2x8xf32>
    %111 = vector.shape_cast %110 : vector<2x8xf32> to vector<2x8x1xf32>
    %112 = vector.broadcast %111 : vector<2x8x1xf32> to vector<2x8x8xf32>
    %113 = arith.subf %109, %112 : vector<2x8x8xf32>
    %114 = math.exp %113 : vector<2x8x8xf32>
    %cst_46 = arith.constant dense<0.000000e+00> : vector<2x8xf32>
    %115 = vector.multi_reduction <add>, %114, %cst_46 [2] : vector<2x8x8xf32> to vector<2x8xf32>
    %116 = vector.shape_cast %115 : vector<2x8xf32> to vector<2x8x1xf32>
    %117 = tpu.reciprocal %116 {approx = true} : vector<2x8x1xf32> -> vector<2x8x1xf32>
    %118 = vector.broadcast %117 : vector<2x8x1xf32> to vector<2x8x8xf32>
    %119 = arith.mulf %114, %118 : vector<2x8x8xf32>
    "tpu.trace_start"() <{level = 10 : i32, message = "bqk,bkd->bqd"}> : () -> ()
    %cst_47 = arith.constant dense<0.000000e+00> : vector<2x8x8xf32>
    %120 = tpu.matmul %119, %108, %cst_47 {dimension_numbers = #tpu.dot_dimension_numbers<[2], [1], [1], [2], [0, 0, 0, 1, 1, 2], [0], [0]>} : vector<2x8x8xf32>, vector<2x8x8xf32>, vector<2x8x8xf32> -> vector<2x8x8xf32>
    "tpu.trace_stop"() : () -> ()
    %121 = vector.shape_cast %120 : vector<2x8x8xf32> to vector<16x8xf32>
    %c32 = arith.constant 32 : index
    %c0_48 = arith.constant 0 : index
    %122 = vector.load %arg2[%c32, %c0_48] : memref<349x32xf32, #tpu.memory_space<vmem>>, vector<8x32xf32>
    %cst_49 = arith.constant dense<0.000000e+00> : vector<16x32xf32>
    %123 = tpu.matmul %121, %122, %cst_49 {dimension_numbers = #tpu.dot_dimension_numbers<[1], [0], [0], [1], [0, 0, 1, 1], [], []>} : vector<16x8xf32>, vector<8x32xf32>, vector<16x32xf32> -> vector<16x32xf32>
    %124 = arith.addf %84, %123 : vector<16x32xf32>
    %c3 = arith.constant 3 : index
    %c0_50 = arith.constant 0 : index
    %c0_51 = arith.constant 0 : index
    %125 = vector.load %arg4[%c3, %c0_50, %c0_51] : memref<24x40x8xf32, #tpu.memory_space<vmem>>, vector<1x40x8xf32>
    %126 = vector.shape_cast %125 : vector<1x40x8xf32> to vector<40x8xf32>
    %c7 = arith.constant 7 : index
    %c0_52 = arith.constant 0 : index
    %c0_53 = arith.constant 0 : index
    %127 = vector.load %arg4[%c7, %c0_52, %c0_53] : memref<24x40x8xf32, #tpu.memory_space<vmem>>, vector<1x40x8xf32>
    %128 = vector.shape_cast %127 : vector<1x40x8xf32> to vector<40x8xf32>
    %c11 = arith.constant 11 : index
    %c0_54 = arith.constant 0 : index
    %c0_55 = arith.constant 0 : index
    %129 = vector.load %arg4[%c11, %c0_54, %c0_55] : memref<24x40x8xf32, #tpu.memory_space<vmem>>, vector<1x40x8xf32>
    %130 = vector.shape_cast %129 : vector<1x40x8xf32> to vector<40x8xf32>
    %131 = vector.extract_strided_slice %126 {offsets = [0, 0], sizes = [32, 8], strides = [1, 1]} : vector<40x8xf32> to vector<32x8xf32>
    %cst_56 = arith.constant dense<0.000000e+00> : vector<16x8xf32>
    %132 = tpu.matmul %5, %131, %cst_56 {dimension_numbers = #tpu.dot_dimension_numbers<[1], [0], [0], [1], [0, 0, 1, 1], [], []>} : vector<16x32xf32>, vector<32x8xf32>, vector<16x8xf32> -> vector<16x8xf32>
    %133 = vector.extract_strided_slice %126 {offsets = [32, 0], sizes = [1, 8], strides = [1, 1]} : vector<40x8xf32> to vector<1x8xf32>
    %134 = vector.broadcast %133 : vector<1x8xf32> to vector<16x8xf32>
    %135 = arith.addf %132, %134 : vector<16x8xf32>
    %136 = vector.extract_strided_slice %128 {offsets = [0, 0], sizes = [32, 8], strides = [1, 1]} : vector<40x8xf32> to vector<32x8xf32>
    %cst_57 = arith.constant dense<0.000000e+00> : vector<16x8xf32>
    %137 = tpu.matmul %5, %136, %cst_57 {dimension_numbers = #tpu.dot_dimension_numbers<[1], [0], [0], [1], [0, 0, 1, 1], [], []>} : vector<16x32xf32>, vector<32x8xf32>, vector<16x8xf32> -> vector<16x8xf32>
    %138 = vector.extract_strided_slice %128 {offsets = [32, 0], sizes = [1, 8], strides = [1, 1]} : vector<40x8xf32> to vector<1x8xf32>
    %139 = vector.broadcast %138 : vector<1x8xf32> to vector<16x8xf32>
    %140 = arith.addf %137, %139 : vector<16x8xf32>
    %141 = vector.extract_strided_slice %130 {offsets = [0, 0], sizes = [32, 8], strides = [1, 1]} : vector<40x8xf32> to vector<32x8xf32>
    %cst_58 = arith.constant dense<0.000000e+00> : vector<16x8xf32>
    %142 = tpu.matmul %5, %141, %cst_58 {dimension_numbers = #tpu.dot_dimension_numbers<[1], [0], [0], [1], [0, 0, 1, 1], [], []>} : vector<16x32xf32>, vector<32x8xf32>, vector<16x8xf32> -> vector<16x8xf32>
    %143 = vector.extract_strided_slice %130 {offsets = [32, 0], sizes = [1, 8], strides = [1, 1]} : vector<40x8xf32> to vector<1x8xf32>
    %144 = vector.broadcast %143 : vector<1x8xf32> to vector<16x8xf32>
    %145 = arith.addf %142, %144 : vector<16x8xf32>
    %146 = vector.shape_cast %135 : vector<16x8xf32> to vector<2x8x8xf32>
    %147 = vector.shape_cast %140 : vector<16x8xf32> to vector<2x8x8xf32>
    %148 = vector.shape_cast %145 : vector<16x8xf32> to vector<2x8x8xf32>
    "tpu.trace_start"() <{level = 10 : i32, message = "bqd,bkd->bqk"}> : () -> ()
    %cst_59 = arith.constant dense<0.000000e+00> : vector<2x8x8xf32>
    %149 = tpu.matmul %146, %147, %cst_59 {dimension_numbers = #tpu.dot_dimension_numbers<[2], [2], [1], [1], [0, 0, 0, 1, 1, 1], [0], [0]>} : vector<2x8x8xf32>, vector<2x8x8xf32>, vector<2x8x8xf32> -> vector<2x8x8xf32>
    "tpu.trace_stop"() : () -> ()
    %cst_60 = arith.constant dense<0xFF800000> : vector<2x8xf32>
    %150 = vector.multi_reduction <maximumf>, %149, %cst_60 [2] : vector<2x8x8xf32> to vector<2x8xf32>
    %151 = vector.shape_cast %150 : vector<2x8xf32> to vector<2x8x1xf32>
    %152 = vector.broadcast %151 : vector<2x8x1xf32> to vector<2x8x8xf32>
    %153 = arith.subf %149, %152 : vector<2x8x8xf32>
    %154 = math.exp %153 : vector<2x8x8xf32>
    %cst_61 = arith.constant dense<0.000000e+00> : vector<2x8xf32>
    %155 = vector.multi_reduction <add>, %154, %cst_61 [2] : vector<2x8x8xf32> to vector<2x8xf32>
    %156 = vector.shape_cast %155 : vector<2x8xf32> to vector<2x8x1xf32>
    %157 = tpu.reciprocal %156 {approx = true} : vector<2x8x1xf32> -> vector<2x8x1xf32>
    %158 = vector.broadcast %157 : vector<2x8x1xf32> to vector<2x8x8xf32>
    %159 = arith.mulf %154, %158 : vector<2x8x8xf32>
    "tpu.trace_start"() <{level = 10 : i32, message = "bqk,bkd->bqd"}> : () -> ()
    %cst_62 = arith.constant dense<0.000000e+00> : vector<2x8x8xf32>
    %160 = tpu.matmul %159, %148, %cst_62 {dimension_numbers = #tpu.dot_dimension_numbers<[2], [1], [1], [2], [0, 0, 0, 1, 1, 2], [0], [0]>} : vector<2x8x8xf32>, vector<2x8x8xf32>, vector<2x8x8xf32> -> vector<2x8x8xf32>
    "tpu.trace_stop"() : () -> ()
    %161 = vector.shape_cast %160 : vector<2x8x8xf32> to vector<16x8xf32>
    %c40 = arith.constant 40 : index
    %c0_63 = arith.constant 0 : index
    %162 = vector.load %arg2[%c40, %c0_63] : memref<349x32xf32, #tpu.memory_space<vmem>>, vector<8x32xf32>
    %cst_64 = arith.constant dense<0.000000e+00> : vector<16x32xf32>
    %163 = tpu.matmul %161, %162, %cst_64 {dimension_numbers = #tpu.dot_dimension_numbers<[1], [0], [0], [1], [0, 0, 1, 1], [], []>} : vector<16x8xf32>, vector<8x32xf32>, vector<16x32xf32> -> vector<16x32xf32>
    %164 = arith.addf %124, %163 : vector<16x32xf32>
    %c337 = arith.constant 337 : index
    %c0_65 = arith.constant 0 : index
    %165 = vector.load %arg2[%c337, %c0_65] : memref<349x32xf32, #tpu.memory_space<vmem>>, vector<1x32xf32>
    %166 = vector.broadcast %165 : vector<1x32xf32> to vector<16x32xf32>
    %167 = arith.addf %164, %166 : vector<16x32xf32>
    %168 = arith.addf %5, %167 : vector<16x32xf32>
    %c338 = arith.constant 338 : index
    %c0_66 = arith.constant 0 : index
    %169 = vector.load %arg2[%c338, %c0_66] : memref<349x32xf32, #tpu.memory_space<vmem>>, vector<1x32xf32>
    %c339 = arith.constant 339 : index
    %c0_67 = arith.constant 0 : index
    %170 = vector.load %arg2[%c339, %c0_67] : memref<349x32xf32, #tpu.memory_space<vmem>>, vector<1x32xf32>
    %cst_68 = arith.constant dense<0.000000e+00> : vector<16xf32>
    %171 = vector.multi_reduction <add>, %168, %cst_68 [1] : vector<16x32xf32> to vector<16xf32>
    %172 = vector.shape_cast %171 : vector<16xf32> to vector<16x1xf32>
    %cst_69 = arith.constant 3.200000e+01 : f32
    %173 = vector.broadcast %cst_69 : f32 to vector<16x1xf32>
    %174 = arith.divf %172, %173 : vector<16x1xf32>
    %175 = vector.broadcast %174 : vector<16x1xf32> to vector<16x32xf32>
    %176 = arith.subf %168, %175 : vector<16x32xf32>
    %177 = arith.mulf %176, %176 : vector<16x32xf32>
    %cst_70 = arith.constant dense<0.000000e+00> : vector<16xf32>
    %178 = vector.multi_reduction <add>, %177, %cst_70 [1] : vector<16x32xf32> to vector<16xf32>
    %179 = vector.shape_cast %178 : vector<16xf32> to vector<16x1xf32>
    %cst_71 = arith.constant 3.200000e+01 : f32
    %180 = vector.broadcast %cst_71 : f32 to vector<16x1xf32>
    %181 = arith.divf %179, %180 : vector<16x1xf32>
    %cst_72 = arith.constant 9.99999974E-6 : f32
    %182 = vector.broadcast %cst_72 : f32 to vector<16x1xf32>
    %183 = arith.addf %181, %182 : vector<16x1xf32>
    %184 = math.rsqrt %183 : vector<16x1xf32>
    %185 = vector.broadcast %184 : vector<16x1xf32> to vector<16x32xf32>
    %186 = arith.mulf %176, %185 : vector<16x32xf32>
    %187 = vector.broadcast %169 : vector<1x32xf32> to vector<16x32xf32>
    %188 = arith.mulf %186, %187 : vector<16x32xf32>
    %189 = vector.broadcast %170 : vector<1x32xf32> to vector<16x32xf32>
    %190 = arith.addf %188, %189 : vector<16x32xf32>
    %c0_73 = arith.constant 0 : index
    %c0_74 = arith.constant 0 : index
    %191 = vector.load %arg3[%c0_73, %c0_74] : memref<99x128xf32, #tpu.memory_space<vmem>>, vector<32x128xf32>
    %c96 = arith.constant 96 : index
    %c0_75 = arith.constant 0 : index
    %192 = vector.load %arg3[%c96, %c0_75] : memref<99x128xf32, #tpu.memory_space<vmem>>, vector<1x128xf32>
    %c48 = arith.constant 48 : index
    %c0_76 = arith.constant 0 : index
    %193 = vector.load %arg2[%c48, %c0_76] : memref<349x32xf32, #tpu.memory_space<vmem>>, vector<128x32xf32>
    %c340 = arith.constant 340 : index
    %c0_77 = arith.constant 0 : index
    %194 = vector.load %arg2[%c340, %c0_77] : memref<349x32xf32, #tpu.memory_space<vmem>>, vector<1x32xf32>
    %cst_78 = arith.constant dense<0.000000e+00> : vector<16x128xf32>
    %195 = tpu.matmul %190, %191, %cst_78 {dimension_numbers = #tpu.dot_dimension_numbers<[1], [0], [0], [1], [0, 0, 1, 1], [], []>} : vector<16x32xf32>, vector<32x128xf32>, vector<16x128xf32> -> vector<16x128xf32>
    %196 = vector.broadcast %192 : vector<1x128xf32> to vector<16x128xf32>
    %197 = arith.addf %195, %196 : vector<16x128xf32>
    %cst_79 = arith.constant 0.000000e+00 : f32
    %198 = vector.broadcast %cst_79 : f32 to vector<16x128xf32>
    %199 = arith.maximumf %197, %198 : vector<16x128xf32>
    %cst_80 = arith.constant dense<0.000000e+00> : vector<16x32xf32>
    %200 = tpu.matmul %199, %193, %cst_80 {dimension_numbers = #tpu.dot_dimension_numbers<[1], [0], [0], [1], [0, 0, 1, 1], [], []>} : vector<16x128xf32>, vector<128x32xf32>, vector<16x32xf32> -> vector<16x32xf32>
    %201 = vector.broadcast %194 : vector<1x32xf32> to vector<16x32xf32>
    %202 = arith.addf %200, %201 : vector<16x32xf32>
    %203 = arith.addf %190, %202 : vector<16x32xf32>
    %c341 = arith.constant 341 : index
    %c0_81 = arith.constant 0 : index
    %204 = vector.load %arg2[%c341, %c0_81] : memref<349x32xf32, #tpu.memory_space<vmem>>, vector<1x32xf32>
    %c342 = arith.constant 342 : index
    %c0_82 = arith.constant 0 : index
    %205 = vector.load %arg2[%c342, %c0_82] : memref<349x32xf32, #tpu.memory_space<vmem>>, vector<1x32xf32>
    %cst_83 = arith.constant dense<0.000000e+00> : vector<16xf32>
    %206 = vector.multi_reduction <add>, %203, %cst_83 [1] : vector<16x32xf32> to vector<16xf32>
    %207 = vector.shape_cast %206 : vector<16xf32> to vector<16x1xf32>
    %cst_84 = arith.constant 3.200000e+01 : f32
    %208 = vector.broadcast %cst_84 : f32 to vector<16x1xf32>
    %209 = arith.divf %207, %208 : vector<16x1xf32>
    %210 = vector.broadcast %209 : vector<16x1xf32> to vector<16x32xf32>
    %211 = arith.subf %203, %210 : vector<16x32xf32>
    %212 = arith.mulf %211, %211 : vector<16x32xf32>
    %cst_85 = arith.constant dense<0.000000e+00> : vector<16xf32>
    %213 = vector.multi_reduction <add>, %212, %cst_85 [1] : vector<16x32xf32> to vector<16xf32>
    %214 = vector.shape_cast %213 : vector<16xf32> to vector<16x1xf32>
    %cst_86 = arith.constant 3.200000e+01 : f32
    %215 = vector.broadcast %cst_86 : f32 to vector<16x1xf32>
    %216 = arith.divf %214, %215 : vector<16x1xf32>
    %cst_87 = arith.constant 9.99999974E-6 : f32
    %217 = vector.broadcast %cst_87 : f32 to vector<16x1xf32>
    %218 = arith.addf %216, %217 : vector<16x1xf32>
    %219 = math.rsqrt %218 : vector<16x1xf32>
    %220 = vector.broadcast %219 : vector<16x1xf32> to vector<16x32xf32>
    %221 = arith.mulf %211, %220 : vector<16x32xf32>
    %222 = vector.broadcast %204 : vector<1x32xf32> to vector<16x32xf32>
    %223 = arith.mulf %221, %222 : vector<16x32xf32>
    %224 = vector.broadcast %205 : vector<1x32xf32> to vector<16x32xf32>
    %225 = arith.addf %223, %224 : vector<16x32xf32>
    %c12 = arith.constant 12 : index
    %c0_88 = arith.constant 0 : index
    %c0_89 = arith.constant 0 : index
    %226 = vector.load %arg4[%c12, %c0_88, %c0_89] : memref<24x40x8xf32, #tpu.memory_space<vmem>>, vector<1x40x8xf32>
    %227 = vector.shape_cast %226 : vector<1x40x8xf32> to vector<40x8xf32>
    %c16_90 = arith.constant 16 : index
    %c0_91 = arith.constant 0 : index
    %c0_92 = arith.constant 0 : index
    %228 = vector.load %arg4[%c16_90, %c0_91, %c0_92] : memref<24x40x8xf32, #tpu.memory_space<vmem>>, vector<1x40x8xf32>
    %229 = vector.shape_cast %228 : vector<1x40x8xf32> to vector<40x8xf32>
    %c20 = arith.constant 20 : index
    %c0_93 = arith.constant 0 : index
    %c0_94 = arith.constant 0 : index
    %230 = vector.load %arg4[%c20, %c0_93, %c0_94] : memref<24x40x8xf32, #tpu.memory_space<vmem>>, vector<1x40x8xf32>
    %231 = vector.shape_cast %230 : vector<1x40x8xf32> to vector<40x8xf32>
    %232 = vector.extract_strided_slice %227 {offsets = [0, 0], sizes = [32, 8], strides = [1, 1]} : vector<40x8xf32> to vector<32x8xf32>
    %cst_95 = arith.constant dense<0.000000e+00> : vector<16x8xf32>
    %233 = tpu.matmul %225, %232, %cst_95 {dimension_numbers = #tpu.dot_dimension_numbers<[1], [0], [0], [1], [0, 0, 1, 1], [], []>} : vector<16x32xf32>, vector<32x8xf32>, vector<16x8xf32> -> vector<16x8xf32>
    %234 = vector.extract_strided_slice %227 {offsets = [32, 0], sizes = [1, 8], strides = [1, 1]} : vector<40x8xf32> to vector<1x8xf32>
    %235 = vector.broadcast %234 : vector<1x8xf32> to vector<16x8xf32>
    %236 = arith.addf %233, %235 : vector<16x8xf32>
    %237 = vector.extract_strided_slice %229 {offsets = [0, 0], sizes = [32, 8], strides = [1, 1]} : vector<40x8xf32> to vector<32x8xf32>
    %cst_96 = arith.constant dense<0.000000e+00> : vector<16x8xf32>
    %238 = tpu.matmul %225, %237, %cst_96 {dimension_numbers = #tpu.dot_dimension_numbers<[1], [0], [0], [1], [0, 0, 1, 1], [], []>} : vector<16x32xf32>, vector<32x8xf32>, vector<16x8xf32> -> vector<16x8xf32>
    %239 = vector.extract_strided_slice %229 {offsets = [32, 0], sizes = [1, 8], strides = [1, 1]} : vector<40x8xf32> to vector<1x8xf32>
    %240 = vector.broadcast %239 : vector<1x8xf32> to vector<16x8xf32>
    %241 = arith.addf %238, %240 : vector<16x8xf32>
    %242 = vector.extract_strided_slice %231 {offsets = [0, 0], sizes = [32, 8], strides = [1, 1]} : vector<40x8xf32> to vector<32x8xf32>
    %cst_97 = arith.constant dense<0.000000e+00> : vector<16x8xf32>
    %243 = tpu.matmul %225, %242, %cst_97 {dimension_numbers = #tpu.dot_dimension_numbers<[1], [0], [0], [1], [0, 0, 1, 1], [], []>} : vector<16x32xf32>, vector<32x8xf32>, vector<16x8xf32> -> vector<16x8xf32>
    %244 = vector.extract_strided_slice %231 {offsets = [32, 0], sizes = [1, 8], strides = [1, 1]} : vector<40x8xf32> to vector<1x8xf32>
    %245 = vector.broadcast %244 : vector<1x8xf32> to vector<16x8xf32>
    %246 = arith.addf %243, %245 : vector<16x8xf32>
    %247 = vector.shape_cast %236 : vector<16x8xf32> to vector<2x8x8xf32>
    %248 = vector.shape_cast %241 : vector<16x8xf32> to vector<2x8x8xf32>
    %249 = vector.shape_cast %246 : vector<16x8xf32> to vector<2x8x8xf32>
    "tpu.trace_start"() <{level = 10 : i32, message = "bqd,bkd->bqk"}> : () -> ()
    %cst_98 = arith.constant dense<0.000000e+00> : vector<2x8x8xf32>
    %250 = tpu.matmul %247, %248, %cst_98 {dimension_numbers = #tpu.dot_dimension_numbers<[2], [2], [1], [1], [0, 0, 0, 1, 1, 1], [0], [0]>} : vector<2x8x8xf32>, vector<2x8x8xf32>, vector<2x8x8xf32> -> vector<2x8x8xf32>
    "tpu.trace_stop"() : () -> ()
    %cst_99 = arith.constant dense<0xFF800000> : vector<2x8xf32>
    %251 = vector.multi_reduction <maximumf>, %250, %cst_99 [2] : vector<2x8x8xf32> to vector<2x8xf32>
    %252 = vector.shape_cast %251 : vector<2x8xf32> to vector<2x8x1xf32>
    %253 = vector.broadcast %252 : vector<2x8x1xf32> to vector<2x8x8xf32>
    %254 = arith.subf %250, %253 : vector<2x8x8xf32>
    %255 = math.exp %254 : vector<2x8x8xf32>
    %cst_100 = arith.constant dense<0.000000e+00> : vector<2x8xf32>
    %256 = vector.multi_reduction <add>, %255, %cst_100 [2] : vector<2x8x8xf32> to vector<2x8xf32>
    %257 = vector.shape_cast %256 : vector<2x8xf32> to vector<2x8x1xf32>
    %258 = tpu.reciprocal %257 {approx = true} : vector<2x8x1xf32> -> vector<2x8x1xf32>
    %259 = vector.broadcast %258 : vector<2x8x1xf32> to vector<2x8x8xf32>
    %260 = arith.mulf %255, %259 : vector<2x8x8xf32>
    "tpu.trace_start"() <{level = 10 : i32, message = "bqk,bkd->bqd"}> : () -> ()
    %cst_101 = arith.constant dense<0.000000e+00> : vector<2x8x8xf32>
    %261 = tpu.matmul %260, %249, %cst_101 {dimension_numbers = #tpu.dot_dimension_numbers<[2], [1], [1], [2], [0, 0, 0, 1, 1, 2], [0], [0]>} : vector<2x8x8xf32>, vector<2x8x8xf32>, vector<2x8x8xf32> -> vector<2x8x8xf32>
    "tpu.trace_stop"() : () -> ()
    %262 = vector.shape_cast %261 : vector<2x8x8xf32> to vector<16x8xf32>
    %c176 = arith.constant 176 : index
    %c0_102 = arith.constant 0 : index
    %263 = vector.load %arg2[%c176, %c0_102] : memref<349x32xf32, #tpu.memory_space<vmem>>, vector<8x32xf32>
    %cst_103 = arith.constant dense<0.000000e+00> : vector<16x32xf32>
    %264 = tpu.matmul %262, %263, %cst_103 {dimension_numbers = #tpu.dot_dimension_numbers<[1], [0], [0], [1], [0, 0, 1, 1], [], []>} : vector<16x8xf32>, vector<8x32xf32>, vector<16x32xf32> -> vector<16x32xf32>
    %c13 = arith.constant 13 : index
    %c0_104 = arith.constant 0 : index
    %c0_105 = arith.constant 0 : index
    %265 = vector.load %arg4[%c13, %c0_104, %c0_105] : memref<24x40x8xf32, #tpu.memory_space<vmem>>, vector<1x40x8xf32>
    %266 = vector.shape_cast %265 : vector<1x40x8xf32> to vector<40x8xf32>
    %c17 = arith.constant 17 : index
    %c0_106 = arith.constant 0 : index
    %c0_107 = arith.constant 0 : index
    %267 = vector.load %arg4[%c17, %c0_106, %c0_107] : memref<24x40x8xf32, #tpu.memory_space<vmem>>, vector<1x40x8xf32>
    %268 = vector.shape_cast %267 : vector<1x40x8xf32> to vector<40x8xf32>
    %c21 = arith.constant 21 : index
    %c0_108 = arith.constant 0 : index
    %c0_109 = arith.constant 0 : index
    %269 = vector.load %arg4[%c21, %c0_108, %c0_109] : memref<24x40x8xf32, #tpu.memory_space<vmem>>, vector<1x40x8xf32>
    %270 = vector.shape_cast %269 : vector<1x40x8xf32> to vector<40x8xf32>
    %271 = vector.extract_strided_slice %266 {offsets = [0, 0], sizes = [32, 8], strides = [1, 1]} : vector<40x8xf32> to vector<32x8xf32>
    %cst_110 = arith.constant dense<0.000000e+00> : vector<16x8xf32>
    %272 = tpu.matmul %225, %271, %cst_110 {dimension_numbers = #tpu.dot_dimension_numbers<[1], [0], [0], [1], [0, 0, 1, 1], [], []>} : vector<16x32xf32>, vector<32x8xf32>, vector<16x8xf32> -> vector<16x8xf32>
    %273 = vector.extract_strided_slice %266 {offsets = [32, 0], sizes = [1, 8], strides = [1, 1]} : vector<40x8xf32> to vector<1x8xf32>
    %274 = vector.broadcast %273 : vector<1x8xf32> to vector<16x8xf32>
    %275 = arith.addf %272, %274 : vector<16x8xf32>
    %276 = vector.extract_strided_slice %268 {offsets = [0, 0], sizes = [32, 8], strides = [1, 1]} : vector<40x8xf32> to vector<32x8xf32>
    %cst_111 = arith.constant dense<0.000000e+00> : vector<16x8xf32>
    %277 = tpu.matmul %225, %276, %cst_111 {dimension_numbers = #tpu.dot_dimension_numbers<[1], [0], [0], [1], [0, 0, 1, 1], [], []>} : vector<16x32xf32>, vector<32x8xf32>, vector<16x8xf32> -> vector<16x8xf32>
    %278 = vector.extract_strided_slice %268 {offsets = [32, 0], sizes = [1, 8], strides = [1, 1]} : vector<40x8xf32> to vector<1x8xf32>
    %279 = vector.broadcast %278 : vector<1x8xf32> to vector<16x8xf32>
    %280 = arith.addf %277, %279 : vector<16x8xf32>
    %281 = vector.extract_strided_slice %270 {offsets = [0, 0], sizes = [32, 8], strides = [1, 1]} : vector<40x8xf32> to vector<32x8xf32>
    %cst_112 = arith.constant dense<0.000000e+00> : vector<16x8xf32>
    %282 = tpu.matmul %225, %281, %cst_112 {dimension_numbers = #tpu.dot_dimension_numbers<[1], [0], [0], [1], [0, 0, 1, 1], [], []>} : vector<16x32xf32>, vector<32x8xf32>, vector<16x8xf32> -> vector<16x8xf32>
    %283 = vector.extract_strided_slice %270 {offsets = [32, 0], sizes = [1, 8], strides = [1, 1]} : vector<40x8xf32> to vector<1x8xf32>
    %284 = vector.broadcast %283 : vector<1x8xf32> to vector<16x8xf32>
    %285 = arith.addf %282, %284 : vector<16x8xf32>
    %286 = vector.shape_cast %275 : vector<16x8xf32> to vector<2x8x8xf32>
    %287 = vector.shape_cast %280 : vector<16x8xf32> to vector<2x8x8xf32>
    %288 = vector.shape_cast %285 : vector<16x8xf32> to vector<2x8x8xf32>
    "tpu.trace_start"() <{level = 10 : i32, message = "bqd,bkd->bqk"}> : () -> ()
    %cst_113 = arith.constant dense<0.000000e+00> : vector<2x8x8xf32>
    %289 = tpu.matmul %286, %287, %cst_113 {dimension_numbers = #tpu.dot_dimension_numbers<[2], [2], [1], [1], [0, 0, 0, 1, 1, 1], [0], [0]>} : vector<2x8x8xf32>, vector<2x8x8xf32>, vector<2x8x8xf32> -> vector<2x8x8xf32>
    "tpu.trace_stop"() : () -> ()
    %cst_114 = arith.constant dense<0xFF800000> : vector<2x8xf32>
    %290 = vector.multi_reduction <maximumf>, %289, %cst_114 [2] : vector<2x8x8xf32> to vector<2x8xf32>
    %291 = vector.shape_cast %290 : vector<2x8xf32> to vector<2x8x1xf32>
    %292 = vector.broadcast %291 : vector<2x8x1xf32> to vector<2x8x8xf32>
    %293 = arith.subf %289, %292 : vector<2x8x8xf32>
    %294 = math.exp %293 : vector<2x8x8xf32>
    %cst_115 = arith.constant dense<0.000000e+00> : vector<2x8xf32>
    %295 = vector.multi_reduction <add>, %294, %cst_115 [2] : vector<2x8x8xf32> to vector<2x8xf32>
    %296 = vector.shape_cast %295 : vector<2x8xf32> to vector<2x8x1xf32>
    %297 = tpu.reciprocal %296 {approx = true} : vector<2x8x1xf32> -> vector<2x8x1xf32>
    %298 = vector.broadcast %297 : vector<2x8x1xf32> to vector<2x8x8xf32>
    %299 = arith.mulf %294, %298 : vector<2x8x8xf32>
    "tpu.trace_start"() <{level = 10 : i32, message = "bqk,bkd->bqd"}> : () -> ()
    %cst_116 = arith.constant dense<0.000000e+00> : vector<2x8x8xf32>
    %300 = tpu.matmul %299, %288, %cst_116 {dimension_numbers = #tpu.dot_dimension_numbers<[2], [1], [1], [2], [0, 0, 0, 1, 1, 2], [0], [0]>} : vector<2x8x8xf32>, vector<2x8x8xf32>, vector<2x8x8xf32> -> vector<2x8x8xf32>
    "tpu.trace_stop"() : () -> ()
    %301 = vector.shape_cast %300 : vector<2x8x8xf32> to vector<16x8xf32>
    %c184 = arith.constant 184 : index
    %c0_117 = arith.constant 0 : index
    %302 = vector.load %arg2[%c184, %c0_117] : memref<349x32xf32, #tpu.memory_space<vmem>>, vector<8x32xf32>
    %cst_118 = arith.constant dense<0.000000e+00> : vector<16x32xf32>
    %303 = tpu.matmul %301, %302, %cst_118 {dimension_numbers = #tpu.dot_dimension_numbers<[1], [0], [0], [1], [0, 0, 1, 1], [], []>} : vector<16x8xf32>, vector<8x32xf32>, vector<16x32xf32> -> vector<16x32xf32>
    %304 = arith.addf %264, %303 : vector<16x32xf32>
    %c14 = arith.constant 14 : index
    %c0_119 = arith.constant 0 : index
    %c0_120 = arith.constant 0 : index
    %305 = vector.load %arg4[%c14, %c0_119, %c0_120] : memref<24x40x8xf32, #tpu.memory_space<vmem>>, vector<1x40x8xf32>
    %306 = vector.shape_cast %305 : vector<1x40x8xf32> to vector<40x8xf32>
    %c18 = arith.constant 18 : index
    %c0_121 = arith.constant 0 : index
    %c0_122 = arith.constant 0 : index
    %307 = vector.load %arg4[%c18, %c0_121, %c0_122] : memref<24x40x8xf32, #tpu.memory_space<vmem>>, vector<1x40x8xf32>
    %308 = vector.shape_cast %307 : vector<1x40x8xf32> to vector<40x8xf32>
    %c22 = arith.constant 22 : index
    %c0_123 = arith.constant 0 : index
    %c0_124 = arith.constant 0 : index
    %309 = vector.load %arg4[%c22, %c0_123, %c0_124] : memref<24x40x8xf32, #tpu.memory_space<vmem>>, vector<1x40x8xf32>
    %310 = vector.shape_cast %309 : vector<1x40x8xf32> to vector<40x8xf32>
    %311 = vector.extract_strided_slice %306 {offsets = [0, 0], sizes = [32, 8], strides = [1, 1]} : vector<40x8xf32> to vector<32x8xf32>
    %cst_125 = arith.constant dense<0.000000e+00> : vector<16x8xf32>
    %312 = tpu.matmul %225, %311, %cst_125 {dimension_numbers = #tpu.dot_dimension_numbers<[1], [0], [0], [1], [0, 0, 1, 1], [], []>} : vector<16x32xf32>, vector<32x8xf32>, vector<16x8xf32> -> vector<16x8xf32>
    %313 = vector.extract_strided_slice %306 {offsets = [32, 0], sizes = [1, 8], strides = [1, 1]} : vector<40x8xf32> to vector<1x8xf32>
    %314 = vector.broadcast %313 : vector<1x8xf32> to vector<16x8xf32>
    %315 = arith.addf %312, %314 : vector<16x8xf32>
    %316 = vector.extract_strided_slice %308 {offsets = [0, 0], sizes = [32, 8], strides = [1, 1]} : vector<40x8xf32> to vector<32x8xf32>
    %cst_126 = arith.constant dense<0.000000e+00> : vector<16x8xf32>
    %317 = tpu.matmul %225, %316, %cst_126 {dimension_numbers = #tpu.dot_dimension_numbers<[1], [0], [0], [1], [0, 0, 1, 1], [], []>} : vector<16x32xf32>, vector<32x8xf32>, vector<16x8xf32> -> vector<16x8xf32>
    %318 = vector.extract_strided_slice %308 {offsets = [32, 0], sizes = [1, 8], strides = [1, 1]} : vector<40x8xf32> to vector<1x8xf32>
    %319 = vector.broadcast %318 : vector<1x8xf32> to vector<16x8xf32>
    %320 = arith.addf %317, %319 : vector<16x8xf32>
    %321 = vector.extract_strided_slice %310 {offsets = [0, 0], sizes = [32, 8], strides = [1, 1]} : vector<40x8xf32> to vector<32x8xf32>
    %cst_127 = arith.constant dense<0.000000e+00> : vector<16x8xf32>
    %322 = tpu.matmul %225, %321, %cst_127 {dimension_numbers = #tpu.dot_dimension_numbers<[1], [0], [0], [1], [0, 0, 1, 1], [], []>} : vector<16x32xf32>, vector<32x8xf32>, vector<16x8xf32> -> vector<16x8xf32>
    %323 = vector.extract_strided_slice %310 {offsets = [32, 0], sizes = [1, 8], strides = [1, 1]} : vector<40x8xf32> to vector<1x8xf32>
    %324 = vector.broadcast %323 : vector<1x8xf32> to vector<16x8xf32>
    %325 = arith.addf %322, %324 : vector<16x8xf32>
    %326 = vector.shape_cast %315 : vector<16x8xf32> to vector<2x8x8xf32>
    %327 = vector.shape_cast %320 : vector<16x8xf32> to vector<2x8x8xf32>
    %328 = vector.shape_cast %325 : vector<16x8xf32> to vector<2x8x8xf32>
    "tpu.trace_start"() <{level = 10 : i32, message = "bqd,bkd->bqk"}> : () -> ()
    %cst_128 = arith.constant dense<0.000000e+00> : vector<2x8x8xf32>
    %329 = tpu.matmul %326, %327, %cst_128 {dimension_numbers = #tpu.dot_dimension_numbers<[2], [2], [1], [1], [0, 0, 0, 1, 1, 1], [0], [0]>} : vector<2x8x8xf32>, vector<2x8x8xf32>, vector<2x8x8xf32> -> vector<2x8x8xf32>
    "tpu.trace_stop"() : () -> ()
    %cst_129 = arith.constant dense<0xFF800000> : vector<2x8xf32>
    %330 = vector.multi_reduction <maximumf>, %329, %cst_129 [2] : vector<2x8x8xf32> to vector<2x8xf32>
    %331 = vector.shape_cast %330 : vector<2x8xf32> to vector<2x8x1xf32>
    %332 = vector.broadcast %331 : vector<2x8x1xf32> to vector<2x8x8xf32>
    %333 = arith.subf %329, %332 : vector<2x8x8xf32>
    %334 = math.exp %333 : vector<2x8x8xf32>
    %cst_130 = arith.constant dense<0.000000e+00> : vector<2x8xf32>
    %335 = vector.multi_reduction <add>, %334, %cst_130 [2] : vector<2x8x8xf32> to vector<2x8xf32>
    %336 = vector.shape_cast %335 : vector<2x8xf32> to vector<2x8x1xf32>
    %337 = tpu.reciprocal %336 {approx = true} : vector<2x8x1xf32> -> vector<2x8x1xf32>
    %338 = vector.broadcast %337 : vector<2x8x1xf32> to vector<2x8x8xf32>
    %339 = arith.mulf %334, %338 : vector<2x8x8xf32>
    "tpu.trace_start"() <{level = 10 : i32, message = "bqk,bkd->bqd"}> : () -> ()
    %cst_131 = arith.constant dense<0.000000e+00> : vector<2x8x8xf32>
    %340 = tpu.matmul %339, %328, %cst_131 {dimension_numbers = #tpu.dot_dimension_numbers<[2], [1], [1], [2], [0, 0, 0, 1, 1, 2], [0], [0]>} : vector<2x8x8xf32>, vector<2x8x8xf32>, vector<2x8x8xf32> -> vector<2x8x8xf32>
    "tpu.trace_stop"() : () -> ()
    %341 = vector.shape_cast %340 : vector<2x8x8xf32> to vector<16x8xf32>
    %c192 = arith.constant 192 : index
    %c0_132 = arith.constant 0 : index
    %342 = vector.load %arg2[%c192, %c0_132] : memref<349x32xf32, #tpu.memory_space<vmem>>, vector<8x32xf32>
    %cst_133 = arith.constant dense<0.000000e+00> : vector<16x32xf32>
    %343 = tpu.matmul %341, %342, %cst_133 {dimension_numbers = #tpu.dot_dimension_numbers<[1], [0], [0], [1], [0, 0, 1, 1], [], []>} : vector<16x8xf32>, vector<8x32xf32>, vector<16x32xf32> -> vector<16x32xf32>
    %344 = arith.addf %304, %343 : vector<16x32xf32>
    %c15 = arith.constant 15 : index
    %c0_134 = arith.constant 0 : index
    %c0_135 = arith.constant 0 : index
    %345 = vector.load %arg4[%c15, %c0_134, %c0_135] : memref<24x40x8xf32, #tpu.memory_space<vmem>>, vector<1x40x8xf32>
    %346 = vector.shape_cast %345 : vector<1x40x8xf32> to vector<40x8xf32>
    %c19 = arith.constant 19 : index
    %c0_136 = arith.constant 0 : index
    %c0_137 = arith.constant 0 : index
    %347 = vector.load %arg4[%c19, %c0_136, %c0_137] : memref<24x40x8xf32, #tpu.memory_space<vmem>>, vector<1x40x8xf32>
    %348 = vector.shape_cast %347 : vector<1x40x8xf32> to vector<40x8xf32>
    %c23 = arith.constant 23 : index
    %c0_138 = arith.constant 0 : index
    %c0_139 = arith.constant 0 : index
    %349 = vector.load %arg4[%c23, %c0_138, %c0_139] : memref<24x40x8xf32, #tpu.memory_space<vmem>>, vector<1x40x8xf32>
    %350 = vector.shape_cast %349 : vector<1x40x8xf32> to vector<40x8xf32>
    %351 = vector.extract_strided_slice %346 {offsets = [0, 0], sizes = [32, 8], strides = [1, 1]} : vector<40x8xf32> to vector<32x8xf32>
    %cst_140 = arith.constant dense<0.000000e+00> : vector<16x8xf32>
    %352 = tpu.matmul %225, %351, %cst_140 {dimension_numbers = #tpu.dot_dimension_numbers<[1], [0], [0], [1], [0, 0, 1, 1], [], []>} : vector<16x32xf32>, vector<32x8xf32>, vector<16x8xf32> -> vector<16x8xf32>
    %353 = vector.extract_strided_slice %346 {offsets = [32, 0], sizes = [1, 8], strides = [1, 1]} : vector<40x8xf32> to vector<1x8xf32>
    %354 = vector.broadcast %353 : vector<1x8xf32> to vector<16x8xf32>
    %355 = arith.addf %352, %354 : vector<16x8xf32>
    %356 = vector.extract_strided_slice %348 {offsets = [0, 0], sizes = [32, 8], strides = [1, 1]} : vector<40x8xf32> to vector<32x8xf32>
    %cst_141 = arith.constant dense<0.000000e+00> : vector<16x8xf32>
    %357 = tpu.matmul %225, %356, %cst_141 {dimension_numbers = #tpu.dot_dimension_numbers<[1], [0], [0], [1], [0, 0, 1, 1], [], []>} : vector<16x32xf32>, vector<32x8xf32>, vector<16x8xf32> -> vector<16x8xf32>
    %358 = vector.extract_strided_slice %348 {offsets = [32, 0], sizes = [1, 8], strides = [1, 1]} : vector<40x8xf32> to vector<1x8xf32>
    %359 = vector.broadcast %358 : vector<1x8xf32> to vector<16x8xf32>
    %360 = arith.addf %357, %359 : vector<16x8xf32>
    %361 = vector.extract_strided_slice %350 {offsets = [0, 0], sizes = [32, 8], strides = [1, 1]} : vector<40x8xf32> to vector<32x8xf32>
    %cst_142 = arith.constant dense<0.000000e+00> : vector<16x8xf32>
    %362 = tpu.matmul %225, %361, %cst_142 {dimension_numbers = #tpu.dot_dimension_numbers<[1], [0], [0], [1], [0, 0, 1, 1], [], []>} : vector<16x32xf32>, vector<32x8xf32>, vector<16x8xf32> -> vector<16x8xf32>
    %363 = vector.extract_strided_slice %350 {offsets = [32, 0], sizes = [1, 8], strides = [1, 1]} : vector<40x8xf32> to vector<1x8xf32>
    %364 = vector.broadcast %363 : vector<1x8xf32> to vector<16x8xf32>
    %365 = arith.addf %362, %364 : vector<16x8xf32>
    %366 = vector.shape_cast %355 : vector<16x8xf32> to vector<2x8x8xf32>
    %367 = vector.shape_cast %360 : vector<16x8xf32> to vector<2x8x8xf32>
    %368 = vector.shape_cast %365 : vector<16x8xf32> to vector<2x8x8xf32>
    "tpu.trace_start"() <{level = 10 : i32, message = "bqd,bkd->bqk"}> : () -> ()
    %cst_143 = arith.constant dense<0.000000e+00> : vector<2x8x8xf32>
    %369 = tpu.matmul %366, %367, %cst_143 {dimension_numbers = #tpu.dot_dimension_numbers<[2], [2], [1], [1], [0, 0, 0, 1, 1, 1], [0], [0]>} : vector<2x8x8xf32>, vector<2x8x8xf32>, vector<2x8x8xf32> -> vector<2x8x8xf32>
    "tpu.trace_stop"() : () -> ()
    %cst_144 = arith.constant dense<0xFF800000> : vector<2x8xf32>
    %370 = vector.multi_reduction <maximumf>, %369, %cst_144 [2] : vector<2x8x8xf32> to vector<2x8xf32>
    %371 = vector.shape_cast %370 : vector<2x8xf32> to vector<2x8x1xf32>
    %372 = vector.broadcast %371 : vector<2x8x1xf32> to vector<2x8x8xf32>
    %373 = arith.subf %369, %372 : vector<2x8x8xf32>
    %374 = math.exp %373 : vector<2x8x8xf32>
    %cst_145 = arith.constant dense<0.000000e+00> : vector<2x8xf32>
    %375 = vector.multi_reduction <add>, %374, %cst_145 [2] : vector<2x8x8xf32> to vector<2x8xf32>
    %376 = vector.shape_cast %375 : vector<2x8xf32> to vector<2x8x1xf32>
    %377 = tpu.reciprocal %376 {approx = true} : vector<2x8x1xf32> -> vector<2x8x1xf32>
    %378 = vector.broadcast %377 : vector<2x8x1xf32> to vector<2x8x8xf32>
    %379 = arith.mulf %374, %378 : vector<2x8x8xf32>
    "tpu.trace_start"() <{level = 10 : i32, message = "bqk,bkd->bqd"}> : () -> ()
    %cst_146 = arith.constant dense<0.000000e+00> : vector<2x8x8xf32>
    %380 = tpu.matmul %379, %368, %cst_146 {dimension_numbers = #tpu.dot_dimension_numbers<[2], [1], [1], [2], [0, 0, 0, 1, 1, 2], [0], [0]>} : vector<2x8x8xf32>, vector<2x8x8xf32>, vector<2x8x8xf32> -> vector<2x8x8xf32>
    "tpu.trace_stop"() : () -> ()
    %381 = vector.shape_cast %380 : vector<2x8x8xf32> to vector<16x8xf32>
    %c200 = arith.constant 200 : index
    %c0_147 = arith.constant 0 : index
    %382 = vector.load %arg2[%c200, %c0_147] : memref<349x32xf32, #tpu.memory_space<vmem>>, vector<8x32xf32>
    %cst_148 = arith.constant dense<0.000000e+00> : vector<16x32xf32>
    %383 = tpu.matmul %381, %382, %cst_148 {dimension_numbers = #tpu.dot_dimension_numbers<[1], [0], [0], [1], [0, 0, 1, 1], [], []>} : vector<16x8xf32>, vector<8x32xf32>, vector<16x32xf32> -> vector<16x32xf32>
    %384 = arith.addf %344, %383 : vector<16x32xf32>
    %c343 = arith.constant 343 : index
    %c0_149 = arith.constant 0 : index
    %385 = vector.load %arg2[%c343, %c0_149] : memref<349x32xf32, #tpu.memory_space<vmem>>, vector<1x32xf32>
    %386 = vector.broadcast %385 : vector<1x32xf32> to vector<16x32xf32>
    %387 = arith.addf %384, %386 : vector<16x32xf32>
    %388 = arith.addf %225, %387 : vector<16x32xf32>
    %c344 = arith.constant 344 : index
    %c0_150 = arith.constant 0 : index
    %389 = vector.load %arg2[%c344, %c0_150] : memref<349x32xf32, #tpu.memory_space<vmem>>, vector<1x32xf32>
    %c345 = arith.constant 345 : index
    %c0_151 = arith.constant 0 : index
    %390 = vector.load %arg2[%c345, %c0_151] : memref<349x32xf32, #tpu.memory_space<vmem>>, vector<1x32xf32>
    %cst_152 = arith.constant dense<0.000000e+00> : vector<16xf32>
    %391 = vector.multi_reduction <add>, %388, %cst_152 [1] : vector<16x32xf32> to vector<16xf32>
    %392 = vector.shape_cast %391 : vector<16xf32> to vector<16x1xf32>
    %cst_153 = arith.constant 3.200000e+01 : f32
    %393 = vector.broadcast %cst_153 : f32 to vector<16x1xf32>
    %394 = arith.divf %392, %393 : vector<16x1xf32>
    %395 = vector.broadcast %394 : vector<16x1xf32> to vector<16x32xf32>
    %396 = arith.subf %388, %395 : vector<16x32xf32>
    %397 = arith.mulf %396, %396 : vector<16x32xf32>
    %cst_154 = arith.constant dense<0.000000e+00> : vector<16xf32>
    %398 = vector.multi_reduction <add>, %397, %cst_154 [1] : vector<16x32xf32> to vector<16xf32>
    %399 = vector.shape_cast %398 : vector<16xf32> to vector<16x1xf32>
    %cst_155 = arith.constant 3.200000e+01 : f32
    %400 = vector.broadcast %cst_155 : f32 to vector<16x1xf32>
    %401 = arith.divf %399, %400 : vector<16x1xf32>
    %cst_156 = arith.constant 9.99999974E-6 : f32
    %402 = vector.broadcast %cst_156 : f32 to vector<16x1xf32>
    %403 = arith.addf %401, %402 : vector<16x1xf32>
    %404 = math.rsqrt %403 : vector<16x1xf32>
    %405 = vector.broadcast %404 : vector<16x1xf32> to vector<16x32xf32>
    %406 = arith.mulf %396, %405 : vector<16x32xf32>
    %407 = vector.broadcast %389 : vector<1x32xf32> to vector<16x32xf32>
    %408 = arith.mulf %406, %407 : vector<16x32xf32>
    %409 = vector.broadcast %390 : vector<1x32xf32> to vector<16x32xf32>
    %410 = arith.addf %408, %409 : vector<16x32xf32>
    %c32_157 = arith.constant 32 : index
    %c0_158 = arith.constant 0 : index
    %411 = vector.load %arg3[%c32_157, %c0_158] : memref<99x128xf32, #tpu.memory_space<vmem>>, vector<32x128xf32>
    %c97 = arith.constant 97 : index
    %c0_159 = arith.constant 0 : index
    %412 = vector.load %arg3[%c97, %c0_159] : memref<99x128xf32, #tpu.memory_space<vmem>>, vector<1x128xf32>
    %c208 = arith.constant 208 : index
    %c0_160 = arith.constant 0 : index
    %413 = vector.load %arg2[%c208, %c0_160] : memref<349x32xf32, #tpu.memory_space<vmem>>, vector<128x32xf32>
    %c346 = arith.constant 346 : index
    %c0_161 = arith.constant 0 : index
    %414 = vector.load %arg2[%c346, %c0_161] : memref<349x32xf32, #tpu.memory_space<vmem>>, vector<1x32xf32>
    %cst_162 = arith.constant dense<0.000000e+00> : vector<16x128xf32>
    %415 = tpu.matmul %410, %411, %cst_162 {dimension_numbers = #tpu.dot_dimension_numbers<[1], [0], [0], [1], [0, 0, 1, 1], [], []>} : vector<16x32xf32>, vector<32x128xf32>, vector<16x128xf32> -> vector<16x128xf32>
    %416 = vector.broadcast %412 : vector<1x128xf32> to vector<16x128xf32>
    %417 = arith.addf %415, %416 : vector<16x128xf32>
    %cst_163 = arith.constant 0.000000e+00 : f32
    %418 = vector.broadcast %cst_163 : f32 to vector<16x128xf32>
    %419 = arith.maximumf %417, %418 : vector<16x128xf32>
    %cst_164 = arith.constant dense<0.000000e+00> : vector<16x32xf32>
    %420 = tpu.matmul %419, %413, %cst_164 {dimension_numbers = #tpu.dot_dimension_numbers<[1], [0], [0], [1], [0, 0, 1, 1], [], []>} : vector<16x128xf32>, vector<128x32xf32>, vector<16x32xf32> -> vector<16x32xf32>
    %421 = vector.broadcast %414 : vector<1x32xf32> to vector<16x32xf32>
    %422 = arith.addf %420, %421 : vector<16x32xf32>
    %423 = arith.addf %410, %422 : vector<16x32xf32>
    %c347 = arith.constant 347 : index
    %c0_165 = arith.constant 0 : index
    %424 = vector.load %arg2[%c347, %c0_165] : memref<349x32xf32, #tpu.memory_space<vmem>>, vector<1x32xf32>
    %c348 = arith.constant 348 : index
    %c0_166 = arith.constant 0 : index
    %425 = vector.load %arg2[%c348, %c0_166] : memref<349x32xf32, #tpu.memory_space<vmem>>, vector<1x32xf32>
    %cst_167 = arith.constant dense<0.000000e+00> : vector<16xf32>
    %426 = vector.multi_reduction <add>, %423, %cst_167 [1] : vector<16x32xf32> to vector<16xf32>
    %427 = vector.shape_cast %426 : vector<16xf32> to vector<16x1xf32>
    %cst_168 = arith.constant 3.200000e+01 : f32
    %428 = vector.broadcast %cst_168 : f32 to vector<16x1xf32>
    %429 = arith.divf %427, %428 : vector<16x1xf32>
    %430 = vector.broadcast %429 : vector<16x1xf32> to vector<16x32xf32>
    %431 = arith.subf %423, %430 : vector<16x32xf32>
    %432 = arith.mulf %431, %431 : vector<16x32xf32>
    %cst_169 = arith.constant dense<0.000000e+00> : vector<16xf32>
    %433 = vector.multi_reduction <add>, %432, %cst_169 [1] : vector<16x32xf32> to vector<16xf32>
    %434 = vector.shape_cast %433 : vector<16xf32> to vector<16x1xf32>
    %cst_170 = arith.constant 3.200000e+01 : f32
    %435 = vector.broadcast %cst_170 : f32 to vector<16x1xf32>
    %436 = arith.divf %434, %435 : vector<16x1xf32>
    %cst_171 = arith.constant 9.99999974E-6 : f32
    %437 = vector.broadcast %cst_171 : f32 to vector<16x1xf32>
    %438 = arith.addf %436, %437 : vector<16x1xf32>
    %439 = math.rsqrt %438 : vector<16x1xf32>
    %440 = vector.broadcast %439 : vector<16x1xf32> to vector<16x32xf32>
    %441 = arith.mulf %431, %440 : vector<16x32xf32>
    %442 = vector.broadcast %424 : vector<1x32xf32> to vector<16x32xf32>
    %443 = arith.mulf %441, %442 : vector<16x32xf32>
    %444 = vector.broadcast %425 : vector<1x32xf32> to vector<16x32xf32>
    %445 = arith.addf %443, %444 : vector<16x32xf32>
    %446 = vector.extract_strided_slice %445 {offsets = [7, 0], sizes = [1, 32], strides = [1, 1]} : vector<16x32xf32> to vector<1x32xf32>
    %447 = vector.extract_strided_slice %445 {offsets = [15, 0], sizes = [1, 32], strides = [1, 1]} : vector<16x32xf32> to vector<1x32xf32>
    %448 = tpu.concatenate %446, %447 in 0 : vector<1x32xf32>, vector<1x32xf32> -> vector<2x32xf32>
    %c64 = arith.constant 64 : index
    %c0_172 = arith.constant 0 : index
    %449 = vector.load %arg3[%c64, %c0_172] : memref<99x128xf32, #tpu.memory_space<vmem>>, vector<32x128xf32>
    %c98 = arith.constant 98 : index
    %c0_173 = arith.constant 0 : index
    %450 = vector.load %arg3[%c98, %c0_173] : memref<99x128xf32, #tpu.memory_space<vmem>>, vector<1x128xf32>
    %cst_174 = arith.constant dense<0.000000e+00> : vector<2x128xf32>
    %451 = tpu.matmul %448, %449, %cst_174 {dimension_numbers = #tpu.dot_dimension_numbers<[1], [0], [0], [1], [0, 0, 1, 1], [], []>} : vector<2x32xf32>, vector<32x128xf32>, vector<2x128xf32> -> vector<2x128xf32>
    %452 = vector.broadcast %450 : vector<1x128xf32> to vector<2x128xf32>
    %453 = arith.addf %451, %452 : vector<2x128xf32>
    %c0_175 = arith.constant 0 : index
    %c0_176 = arith.constant 0 : index
    %454 = vector.load %arg5[%c0_175, %c0_176] : memref<2x128xf32, #tpu.memory_space<vmem>>, vector<2x128xf32>
    tpu.vector_store %arg5[%c0_175, %c0_176], %453 {strides = array<i32>} : memref<2x128xf32, #tpu.memory_space<vmem>>, vector<2x128xf32>,
    return
  }
  func.func @transform_0(%arg0: i32) -> (i32, i32) {
    %c0_i32 = arith.constant 0 : i32
    %c0_i32_0 = arith.constant 0 : i32
    %c0_i32_1 = arith.constant 0 : i32
    return %c0_i32, %c0_i32_0 : i32, i32
  }
  func.func @transform_1(%arg0: i32) -> (i32, i32) {
    %c0_i32 = arith.constant 0 : i32
    %c0_i32_0 = arith.constant 0 : i32
    %c0_i32_1 = arith.constant 0 : i32
    return %c0_i32, %c0_i32_0 : i32, i32
  }
  func.func @transform_2(%arg0: i32) -> (i32, i32) {
    %c0_i32 = arith.constant 0 : i32
    %c0_i32_0 = arith.constant 0 : i32
    %c0_i32_1 = arith.constant 0 : i32
    return %c0_i32, %c0_i32_0 : i32, i32
  }
  func.func @transform_3(%arg0: i32) -> (i32, i32, i32) {
    %c0_i32 = arith.constant 0 : i32
    %c0_i32_0 = arith.constant 0 : i32
    %c0_i32_1 = arith.constant 0 : i32
    %c0_i32_2 = arith.constant 0 : i32
    return %c0_i32, %c0_i32_0, %c0_i32_1 : i32, i32, i32
  }
  func.func @transform_4(%arg0: i32) -> (i32, i32) {
    %c0_i32 = arith.constant 0 : i32
    %c0_i32_0 = arith.constant 0 : i32
    %c0_i32_1 = arith.constant 0 : i32
    return %c0_i32, %c0_i32_0 : i32, i32
  }
}

</mosaic_0001>

<bundles_post_ra>
// kernel: tpu_custom_call.1
= control target key start
LH: loop header
LB: loop body
LE: loop exit
PB: predicated region body
PF: predicated region fallthrough
CT: control target
= control target key end

     0   :  { %vm27_vm0 = vcmask 130048   ;;  %s8296_s0 = inlined_call_operand.vmem [shape: f32[16,16], index: 0, kind: input, shape index: {}]   ;;  %s8297_s1 = inlined_call_operand.vmem [shape: f32[349,32], index: 1, kind: input, shape index: {}]   ;;  %s8298_s2 = inlined_call_operand.vmem [shape: f32[99,128], index: 2, kind: input, shape index: {}]   ;;  %s8299_s3 = inlined_call_operand.vmem [shape: f32[24,40,8], index: 3, kind: input, shape index: {}]   ;;  %s8300_s4 = inlined_call_operand.hbm [shape: f32[2,128], index: 4, kind: output, shape index: {}]  }
   0x1   :  { %v21_v0 = vld [vmem:[%s8297_s1 + $0x8] sm:$0xff]  ;;  %v20_v1 = vld [vmem:[%s8297_s1] sm:$0xff]  ;;  %v112_v3 = vld [vmem:[%s8299_s3 + $0x18] sm:$0xff] }
   0x2   :  { %v18_v2 = vld [vmem:[%s8296_s0] sm:$0xff]  ;;  %6589 = vmatprep.subr.mxu0 %v21_v0  ;;  %v111_v4 = vld [vmem:[%s8299_s3 + $0x10] sm:$0xff]  ;;  %v19_v5 = vld [vmem:[%s8296_s0 + $0x8] sm:$0xff]  ;;  %6596 = vmatprep.subr.mxu1 %v112_v3 }
   0x3   :  { %6593 = vmatprep.mubr.msk.f32.mxu0 %vm27_vm0, %v18_v2  ;;  %6590 = vmatpush3.msra.mxu0 %v21_v0 }
   0x4   :  { %9 = vsyncpa [#allocation3], 0  ;;  %6591 = vmatprep.subr.mxu0 %v20_v1  ;;  %6597 = vmatpush3.msra.mxu1 %v112_v3  ;;  %v110_v6 = vld [vmem:[%s8299_s3 + $0x8] sm:$0xff]  ;;  %v109_v7 = vld [vmem:[%s8299_s3] sm:$0xff]  ;;  %vm130_vm1 = vcmask 261120   ;;  %v7268_v21 = vmov 0.0   ;;  %v126_v22 = vlaneseq }
   0x5   :  { %6592 = vmatpush3.msra.mxu0 %v20_v1  ;;  %6598 = vmatprep.subr.mxu1 %v111_v4  ;;  %v6056_v8 = vld [vmem:[%s8299_s3 + $0xb8] sm:$0xff]  ;;  %v6050_v10 = vld [vmem:[%s8297_s1 + $0x150] ss:$0 sm:$0xff]  ;;  %v6054_v15 = vld [vmem:[%s8299_s3 + $0xa8] sm:$0xff]  ;;  %vm7269_vm2 = vmmov 0   ;;  %vm370_vm3 = vcmask 64512  }
   0x6   :  { %6594 = vmatmul.mubr.msk.f32.vlgmr.msra.gmra.mxu0 %vm27_vm0, %v19_v5  ;;  %6599 = vmatpush3.msra.mxu1 %v111_v4  ;;  %v6055_v14 = vld [vmem:[%s8299_s3 + $0xb0] sm:$0xff]  ;;  %v6053_v16 = vld [vmem:[%s8299_s3 + $0xa0] sm:$0xff]  ;;  %v6061_v17 = vld [vmem:[%s8299_s3 + $0x158] sm:$0xff]  ;;  %v127_v24 = vshrl.u32 %v126_v22, 7  ;;  %vm5951_vm4 = vcmask 1040384   ;;  %s7270_s18 = smov [#allocation2]  }
   0x7   :  { %6600 = vmatprep.subr.mxu1 %v110_v6  ;;  %v6060_v18 = vld [vmem:[%s8299_s3 + $0x150] sm:$0xff]  ;;  %v6059_v19 = vld [vmem:[%s8299_s3 + $0x148] sm:$0xff]  ;;  %v6058_v20 = vld [vmem:[%s8299_s3 + $0x140] sm:$0xff]  ;;  %6629 = vmatprep.subr.mxu0 %v7268_v21  ;;  %s6042_s19 = sshll.u32 %s7270_s18, 4  ;;  %s6043_s19 = int_to_ptr.vmem [resolvable:$true] %s6042_s19 }
   0x8   :  { %6601 = vmatpush3.msra.mxu1 %v110_v6  ;;  %6631 = vmatprep.mubr.msk.f32.mxu0 %vm7269_vm2, %v7268_v21  ;;  %v6057_v26 = vld [vmem:[%s8299_s3 + $0xc0] sm:$0xff]  ;;  %v7372_v27 = vsub.s32 0, %v127_v24  ;;  %v6082_v1 = vld [vmem:[%s8299_s3 + $0xd8] sm:$0xff]  ;;  %v6081_v3 = vld [vmem:[%s8299_s3 + $0xd0] sm:$0xff]  ;;  %p7251_p1 = scmp.lt.s32.totalorder %s6043_s19, %s6043_s19 }
   0x9   :  { %6602 = vmatprep.subr.mxu1 %v109_v7  ;;  %v113_v29 = vld [vmem:[%s8299_s3 + $0x20] sm:$0xff]  ;;  %v6077_v5 = vld [vmem:[%s8299_s3 + $0x38] sm:$0xff]  ;;  %v6080_v6 = vld [vmem:[%s8299_s3 + $0xc8] sm:$0xff] }
   0xa   :  { %6603 = vmatpush3.msra.mxu1 %v109_v7  ;;  %v215_v30 = vrot.slane %v6057_v26, %v7372_v27  ;;  %v129_v33 = vrot.slane %v113_v29, %v7372_v27  ;;  %v6062_v34 = vld [vmem:[%s8299_s3 + $0x160] sm:$0xff]  ;;  %v6076_v7 = vld [vmem:[%s8299_s3 + $0x30] sm:$0xff] }
   0xb   :  { %6607 = vmatprep.subr.mxu1 %v6056_v8  ;;  %v294_v37 = vrot.slane %v6062_v34, %v7372_v27  ;;  %v6083_v59 = vld [vmem:[%s8299_s3 + $0xe0] sm:$0xff] }
   0xc   :  { %v6078_v60 = vld [vmem:[%s8299_s3 + $0x40] sm:$0xff] }
  0xc6   :  { %v6595_v9 = vpop.f32.mrf.mxu0 }
  0xc7   :  { %v7328_v13 = vadd.f32 %v6595_v9, %v6050_v10  ;;  %v6088_v9 = vld [vmem:[%s8299_s3 + $0x180] sm:$0xff] }
  0xc8   :  { %v100_v11 = vpop.f32.mrf.mxu0 }
  0xc9   :  { %v7326_v12 = vadd.f32 %v6050_v10, %v100_v11  ;;  %v6087_v10 = vld [vmem:[%s8299_s3 + $0x178] sm:$0xff]  ;;  %v6086_v11 = vld [vmem:[%s8299_s3 + $0x170] sm:$0xff] }
  0xcb   :  { %6604 = vmatprep.mubr.msk.f32.mxu1 %vm130_vm1, %v7326_v12 }
  0xcc   :  { %6605 = vmatmul.mubr.msk.f32.vlgmr.msra.gmra.mxu1 %vm130_vm1, %v7328_v13 }
  0xcd   :  { %6608 = vmatpush3.msra.mxu1 %v6056_v8  ;;  %6615 = vmatprep.mubr.msk.f32.mxu1 %vm130_vm1, %v7326_v12  ;;  %v6075_v8 = vld [vmem:[%s8299_s3 + $0x28] sm:$0xff] }
  0xce   :  { %6609 = vmatprep.subr.mxu1 %v6055_v14 }
  0xcf   :  { %6610 = vmatpush3.msra.mxu1 %v6055_v14  ;;  %v6085_v14 = vld [vmem:[%s8299_s3 + $0x168] sm:$0xff] }
  0xd0   :  { %6611 = vmatprep.subr.mxu1 %v6054_v15 }
  0xd1   :  { %6612 = vmatpush3.msra.mxu1 %v6054_v15 }
  0xd2   :  { %6613 = vmatprep.subr.mxu1 %v6053_v16 }
  0xd3   :  { %6614 = vmatpush3.msra.mxu1 %v6053_v16 }
  0xd4   :  { %6616 = vmatmul.mubr.msk.f32.vlgmr.msra.gmra.mxu1 %vm130_vm1, %v7328_v13  ;;  %6618 = vmatprep.subr.mxu1 %v6061_v17 }
  0xd5   :  { %6619 = vmatpush3.msra.mxu1 %v6061_v17  ;;  %6626 = vmatprep.mubr.msk.f32.mxu1 %vm130_vm1, %v7326_v12 }
  0xd6   :  { %6620 = vmatprep.subr.mxu1 %v6060_v18 }
  0xd7   :  { %6621 = vmatpush3.msra.mxu1 %v6060_v18 }
  0xd8   :  { %6622 = vmatprep.subr.mxu1 %v6059_v19 }
  0xd9   :  { %6623 = vmatpush3.msra.mxu1 %v6059_v19  ;;  %v6084_v19 = vld [vmem:[%s8299_s3 + $0xe8] sm:$0xff] }
  0xda   :  { %6624 = vmatprep.subr.mxu1 %v6058_v20  ;;  %v792_v22 = vrot.slane %v6084_v19, %v7372_v27  ;;  %v6117_v19 = vld [vmem:[%s8299_s3 + $0x198] sm:$0xff] }
  0xdb   :  { %6625 = vmatpush3.msra.mxu1 %v6058_v20 }
  0xdc   :  { %6627 = vmatmul.mubr.msk.f32.vlgmr.msra.gmra.mxu1 %vm130_vm1, %v7328_v13  ;;  %6639 = vmatprep.subr.mxu1 %v7268_v21 }
  0xdd   :  { %6641 = vmatprep.mubr.msk.f32.mxu1 %vm7269_vm2, %v7268_v21 }
 0x18c   :  { %v6606_v23 = vpop.f32.mrf.mxu1 }
 0x18d   :  { %v209_v39 = vadd.f32 %v6606_v23, %v129_v33  ;;  %v6079_v23 = vld [vmem:[%s8299_s3 + $0x48] sm:$0xff] }
 0x18e   :  { %v203_v25 = vpop.f32.mrf.mxu1 }
 0x18f   :  { %v204_v35 = vadd.f32 %v203_v25, %v129_v33 }
 0x194   :  { %v6617_v28 = vpop.f32.mrf.mxu1 }
 0x195   :  { %v288_v36 = vadd.f32 %v6617_v28, %v215_v30  ;;  %v713_v28 = vrot.slane %v6079_v23, %v7372_v27 }
 0x196   :  { %v282_v31 = vpop.f32.mrf.mxu1 }
 0x197   :  { %v283_v32 = vadd.f32 %v282_v31, %v215_v30  ;;  %v6089_v30 = vld [vmem:[%s8299_s3 + $0x188] sm:$0xff] }
 0x198   :  { %v871_v33 = vrot.slane %v6089_v30, %v7372_v27 }
 0x199   :  { %6630 = vmatpush3.xpose.msk.msra.mxu0 %vm370_vm3, %v283_v32 }
 0x19a   :  { %6634 = vmatprep.subr.mxu0 %v7268_v21 }
 0x19c   :  { %v6628_v38 = vpop.f32.mrf.mxu1  ;;  %6632 = vmatmul.mubr.msk.f32.vlgmr.msra.gmra.mxu0 %vm370_vm3, %v204_v35 }
 0x19d   :  { %6635 = vmatpush3.xpose.msk.msra.mxu0 %vm370_vm3, %v288_v36  ;;  %6636 = vmatprep.mubr.msk.f32.mxu0 %vm7269_vm2, %v7268_v21  ;;  %v367_v41 = vadd.f32 %v6628_v38, %v294_v37 }
 0x19e   :  { %v361_v40 = vpop.f32.mrf.mxu1  ;;  %6644 = vmatprep.subr.mxu0 %v7268_v21 }
 0x19f   :  { %v362_v42 = vadd.f32 %v361_v40, %v294_v37 }
 0x1a0   :  { %6637 = vmatmul.mubr.msk.f32.vlgmr.msra.gmra.mxu0 %vm370_vm3, %v209_v39 }
 0x1a1   :  { %6640 = vmatpush3.msra.mxu1 %v362_v42  ;;  %6645 = vmatpush3.msra.mxu0 %v367_v41 }
 0x1a2   :  { %6646 = vmatprep.mubr.msk.f32.mxu0 %vm7269_vm2, %v7268_v21  ;;  %6660 = vmatprep.subr.mxu0 %v6083_v59 }
 0x1a3   :  { %6649 = vmatprep.subr.mxu1 %v6078_v60 }
 0x25c   :  { %v443_v43 = vpop.f32.mrf.mxu0 }
 0x25d   :  { %v523_v48 = vsel %vm370_vm3, %v443_v43, -inf }
 0x25e   :  { %v6633_v44 = vpop.f32.mrf.mxu0 }
 0x260   :  { %v519_v45 = vpop.f32.mrf.mxu0 }
 0x261   :  { %v526_v46 = vsel %vm370_vm3, %v519_v45, -inf }
 0x262   :  { %527 = vmax.xlane.f32.xlu0 %v526_v46  ;;  %v6638_v47 = vpop.f32.mrf.mxu0 }
 0x266   :  { %524 = vmax.xlane.f32.xlu0 %v523_v48 }
 0x2eb   :  { %v528_v49 = vpop.xlane.xlu0 %527 }
 0x2ec   :  { %v530_v50 = vsub.f32 %v519_v45, %v528_v49 }
 0x2ee   :  { %v533_v51 = vmul.f32 1.442695, %v530_v50 }
 0x2ef   :  { %v525_v52 = vpop.xlane.xlu0 %524 }
 0x2f0   :  { %7166 = vpow2.f32 %v533_v51  ;;  %v529_v53 = vsub.f32 %v443_v43, %v525_v52 }
 0x2f2   :  { %v531_v54 = vmul.f32 1.442695, %v529_v53 }
 0x2f4   :  { %7168 = vpow2.f32 %v531_v54 }
 0x2fd   :  { %v7167_v55 = vpop.eup %7166 }
 0x2fe   :  { %v538_v56 = vsel %vm370_vm3, %v7167_v55, 0.0 }
 0x2ff   :  { %539 = vadd.xlane.f32.xlu1 %v538_v56 }
 0x301   :  { %v7169_v57 = vpop.eup %7168 }
 0x302   :  { %v535_v58 = vsel %vm370_vm3, %v7169_v57, 0.0 }
 0x303   :  { %536 = vadd.xlane.f32.xlu1 %v535_v58 }
 0x388   :  { %v540_v61 = vpop.xlane.xlu1 %539 }
 0x389   :  { %7170 = vrcp.f32 %v540_v61 }
 0x38c   :  { %v537_v62 = vpop.xlane.xlu1 %536 }
 0x38d   :  { %7172 = vrcp.f32 %v537_v62  ;;  %v6114_v62 = vld [vmem:[%s8299_s3 + $0x108] sm:$0xff] }
 0x396   :  { %v7171_v63 = vpop.eup %7170 }
 0x397   :  { %v544_v0 = vmul.f32 %v7171_v63, %v7167_v55  ;;  %v691_v55 = vld [vmem:[%s8297_s1 + $0x10] sm:$0xff]  ;;  %v6113_v63 = vld [vmem:[%s8299_s3 + $0x100] sm:$0xff] }
 0x399   :  { %6647 = vmatmul.mubr.msk.f32.vlgmr.msra.gmra.mxu0 %vm370_vm3, %v544_v0  ;;  %v6112_v0 = vld [vmem:[%s8299_s3 + $0xf8] sm:$0xff] }
 0x39a   :  { %v7173_v2 = vpop.eup %7172  ;;  %6661 = vmatpush3.msra.mxu0 %v6083_v59  ;;  %6668 = vmatprep.mubr.msk.f32.mxu0 %vm130_vm1, %v7326_v12 }
 0x39b   :  { %6662 = vmatprep.subr.mxu0 %v6082_v1  ;;  %v543_v4 = vmul.f32 %v7173_v2, %v7169_v57  ;;  %v1267_v2 = vld [vmem:[%s8297_s1 + $0x18] sm:$0xff] }
 0x39c   :  { %6663 = vmatpush3.msra.mxu0 %v6082_v1  ;;  %v6111_v1 = vld [vmem:[%s8299_s3 + $0xf0] sm:$0xff] }
 0x39d   :  { %6664 = vmatprep.subr.mxu0 %v6081_v3  ;;  %6642 = vmatmul.mubr.msk.f32.vlgmr.msra.gmra.mxu1 %vm370_vm3, %v543_v4 }
 0x39e   :  { %6650 = vmatpush3.msra.mxu1 %v6078_v60  ;;  %6665 = vmatpush3.msra.mxu0 %v6081_v3  ;;  %v6109_v3 = vld [vmem:[%s8299_s3 + $0x68] sm:$0xff] }
 0x39f   :  { %6651 = vmatprep.subr.mxu1 %v6077_v5  ;;  %6657 = vmatprep.mubr.msk.f32.mxu1 %vm130_vm1, %v7326_v12 }
 0x3a0   :  { %6666 = vmatprep.subr.mxu0 %v6080_v6  ;;  %6652 = vmatpush3.msra.mxu1 %v6077_v5 }
 0x3a1   :  { %6667 = vmatpush3.msra.mxu0 %v6080_v6  ;;  %6653 = vmatprep.subr.mxu1 %v6076_v7 }
 0x3a2   :  { %6669 = vmatmul.mubr.msk.f32.vlgmr.msra.gmra.mxu0 %vm130_vm1, %v7328_v13  ;;  %6654 = vmatpush3.msra.mxu1 %v6076_v7  ;;  %v6108_v7 = vld [vmem:[%s8299_s3 + $0x60] sm:$0xff] }
 0x3a3   :  { %6655 = vmatprep.subr.mxu1 %v6075_v8  ;;  %6682 = vmatprep.subr.mxu0 %v7268_v21 }
 0x3a4   :  { %6656 = vmatpush3.msra.mxu1 %v6075_v8  ;;  %6684 = vmatprep.mubr.msk.f32.mxu0 %vm7269_vm2, %v7268_v21 }
 0x3a5   :  { %6658 = vmatmul.mubr.msk.f32.vlgmr.msra.gmra.mxu1 %vm130_vm1, %v7328_v13  ;;  %6671 = vmatprep.subr.mxu1 %v6088_v9 }
 0x3a6   :  { %6672 = vmatpush3.msra.mxu1 %v6088_v9  ;;  %6679 = vmatprep.mubr.msk.f32.mxu1 %vm130_vm1, %v7326_v12  ;;  %v6107_v9 = vld [vmem:[%s8299_s3 + $0x58] sm:$0xff] }
 0x3a7   :  { %6673 = vmatprep.subr.mxu1 %v6087_v10 }
 0x3a8   :  { %6674 = vmatpush3.msra.mxu1 %v6087_v10  ;;  %v6106_v10 = vld [vmem:[%s8299_s3 + $0x50] sm:$0xff] }
 0x3a9   :  { %6675 = vmatprep.subr.mxu1 %v6086_v11 }
 0x3aa   :  { %6676 = vmatpush3.msra.mxu1 %v6086_v11 }
 0x3ab   :  { %6677 = vmatprep.subr.mxu1 %v6085_v14 }
 0x3ac   :  { %6678 = vmatpush3.msra.mxu1 %v6085_v14  ;;  %v6119_v14 = vld [vmem:[%s8299_s3 + $0x1a8] sm:$0xff] }
 0x3ad   :  { %6680 = vmatmul.mubr.msk.f32.vlgmr.msra.gmra.mxu1 %vm130_vm1, %v7328_v13  ;;  %6692 = vmatprep.subr.mxu1 %v7268_v21 }
 0x3ae   :  { %6694 = vmatprep.mubr.msk.f32.mxu1 %vm7269_vm2, %v7268_v21 }
 0x459   :  { %v7453_v15 = vpop.f32.mrf.mxu0 }
 0x45b   :  { %v6648_v16 = vpop.f32.mrf.mxu0 }
 0x45c   :  { %v6118_v16 = vld [vmem:[%s8299_s3 + $0x1a0] sm:$0xff] }
 0x45d   :  { %v7455_v17 = vpop.f32.mrf.mxu1 }
 0x45f   :  { %v6643_v18 = vpop.f32.mrf.mxu1 }
 0x462   :  { %v6670_v20 = vpop.f32.mrf.mxu0 }
 0x463   :  { %v865_v32 = vadd.f32 %v6670_v20, %v792_v22 }
 0x464   :  { %v859_v24 = vpop.f32.mrf.mxu0 }
 0x465   :  { %v860_v25 = vadd.f32 %v859_v24, %v792_v22  ;;  %v6659_v26 = vpop.f32.mrf.mxu1  ;;  %v6116_v22 = vld [vmem:[%s8299_s3 + $0x190] sm:$0xff] }
 0x466   :  { %v786_v34 = vadd.f32 %v6659_v26, %v713_v28 }
 0x467   :  { %6683 = vmatpush3.xpose.msk.msra.mxu0 %vm370_vm3, %v860_v25  ;;  %v780_v29 = vpop.f32.mrf.mxu1 }
 0x468   :  { %v781_v31 = vadd.f32 %v780_v29, %v713_v28  ;;  %6687 = vmatprep.subr.mxu0 %v7268_v21  ;;  %v6110_v29 = vld [vmem:[%s8299_s3 + $0x70] sm:$0xff] }
 0x46a   :  { %6685 = vmatmul.mubr.msk.f32.vlgmr.msra.gmra.mxu0 %vm370_vm3, %v781_v31  ;;  %v1451_v31 = vrot.slane %v6110_v29, %v7372_v27 }
 0x46b   :  { %6688 = vmatpush3.xpose.msk.msra.mxu0 %vm370_vm3, %v865_v32  ;;  %6689 = vmatprep.mubr.msk.f32.mxu0 %vm7269_vm2, %v7268_v21 }
 0x46c   :  { %6697 = vmatprep.subr.mxu0 %v7268_v21 }
 0x46d   :  { %v6681_v35 = vpop.f32.mrf.mxu1 }
 0x46e   :  { %v944_v36 = vadd.f32 %v6681_v35, %v871_v33  ;;  %6690 = vmatmul.mubr.msk.f32.vlgmr.msra.gmra.mxu0 %vm370_vm3, %v786_v34 }
 0x46f   :  { %v938_v37 = vpop.f32.mrf.mxu1  ;;  %6699 = vmatprep.mubr.msk.f32.mxu0 %vm7269_vm2, %v7268_v21 }
 0x470   :  { %v939_v38 = vadd.f32 %v938_v37, %v871_v33  ;;  %6698 = vmatpush3.msra.mxu0 %v944_v36  ;;  %v6120_v33 = vld [vmem:[%s8299_s3 + $0x1b0] sm:$0xff] }
 0x471   :  { %6707 = vmatprep.subr.mxu0 %v691_v55  ;;  %v1609_v35 = vrot.slane %v6120_v33, %v7372_v27 }
 0x472   :  { %6693 = vmatpush3.msra.mxu1 %v939_v38 }
 0x473   :  { %6702 = vmatprep.subr.mxu1 %v1267_v2 }
 0x52a   :  { %v1019_v39 = vpop.f32.mrf.mxu0 }
 0x52b   :  { %v1099_v40 = vsel %vm370_vm3, %v1019_v39, -inf }
 0x52c   :  { %1100 = vmax.xlane.f32.xlu0 %v1099_v40  ;;  %v6686_v41 = vpop.f32.mrf.mxu0 }
 0x52e   :  { %v1095_v42 = vpop.f32.mrf.mxu0 }
 0x52f   :  { %v1102_v43 = vsel %vm370_vm3, %v1095_v42, -inf }
 0x530   :  { %1103 = vmax.xlane.f32.xlu1 %v1102_v43  ;;  %v6691_v44 = vpop.f32.mrf.mxu0 }
 0x5b5   :  { %v1101_v45 = vpop.xlane.xlu0 %1100 }
 0x5b6   :  { %v1105_v46 = vsub.f32 %v1019_v39, %v1101_v45 }
 0x5b8   :  { %v1107_v47 = vmul.f32 1.442695, %v1105_v46 }
 0x5b9   :  { %v1104_v48 = vpop.xlane.xlu1 %1103 }
 0x5ba   :  { %7174 = vpow2.f32 %v1107_v47  ;;  %v1106_v49 = vsub.f32 %v1095_v42, %v1104_v48 }
 0x5bc   :  { %v1109_v50 = vmul.f32 1.442695, %v1106_v49 }
 0x5be   :  { %7176 = vpow2.f32 %v1109_v50 }
 0x5c7   :  { %v7175_v51 = vpop.eup %7174 }
 0x5c8   :  { %v1111_v52 = vsel %vm370_vm3, %v7175_v51, 0.0 }
 0x5c9   :  { %1112 = vadd.xlane.f32.xlu0 %v1111_v52 }
 0x5cb   :  { %v7177_v53 = vpop.eup %7176 }
 0x5cc   :  { %v1114_v54 = vsel %vm370_vm3, %v7177_v53, 0.0 }
 0x5cd   :  { %1115 = vadd.xlane.f32.xlu1 %v1114_v54 }
 0x652   :  { %v1113_v56 = vpop.xlane.xlu0 %1112 }
 0x653   :  { %7178 = vrcp.f32 %v1113_v56 }
 0x656   :  { %v1116_v57 = vpop.xlane.xlu1 %1115 }
 0x657   :  { %7180 = vrcp.f32 %v1116_v57  ;;  %v6138_v57 = vld [vmem:[%s8299_s3 + $0x90] sm:$0xff] }
 0x660   :  { %v7179_v58 = vpop.eup %7178 }
 0x661   :  { %v1119_v59 = vmul.f32 %v7179_v58, %v7175_v51 }
 0x663   :  { %6695 = vmatmul.mubr.msk.f32.vlgmr.msra.gmra.mxu1 %vm370_vm3, %v1119_v59 }
 0x664   :  { %v7181_v60 = vpop.eup %7180  ;;  %6703 = vmatpush3.msra.mxu1 %v1267_v2  ;;  %v6135_v2 = vld [vmem:[%s8299_s3 + $0x78] sm:$0xff] }
 0x665   :  { %v1120_v61 = vmul.f32 %v7181_v60, %v7177_v53  ;;  %6712 = vmatprep.subr.mxu1 %v6109_v3 }
 0x667   :  { %6700 = vmatmul.mubr.msk.f32.vlgmr.msra.gmra.mxu0 %vm370_vm3, %v1120_v61 }
 0x668   :  { %6709 = vmatprep.mubr.msk.f32.mxu0 %vm370_vm3, %v7455_v17  ;;  %6708 = vmatpush3.msra.mxu0 %v691_v55 }
 0x669   :  { %6723 = vmatprep.subr.mxu0 %v6114_v62 }
 0x66b   :  { %6710 = vmatmul.mubr.msk.f32.vlgmr.msra.gmra.mxu0 %vm370_vm3, %v7453_v15  ;;  %v6115_v15 = vld [vmem:[%s8299_s3 + $0x110] sm:$0xff] }
 0x66c   :  { %6724 = vmatpush3.msra.mxu0 %v6114_v62  ;;  %6731 = vmatprep.mubr.msk.f32.mxu0 %vm130_vm1, %v7326_v12  ;;  %v1530_v17 = vrot.slane %v6115_v15, %v7372_v27  ;;  %v6142_v15 = vld [vmem:[%s8299_s3 + $0x128] sm:$0xff] }
 0x66d   :  { %6725 = vmatprep.subr.mxu0 %v6113_v63 }
 0x66e   :  { %6726 = vmatpush3.msra.mxu0 %v6113_v63 }
 0x66f   :  { %6727 = vmatprep.subr.mxu0 %v6112_v0 }
 0x670   :  { %6728 = vmatpush3.msra.mxu0 %v6112_v0  ;;  %v6137_v0 = vld [vmem:[%s8299_s3 + $0x88] sm:$0xff] }
 0x671   :  { %6729 = vmatprep.subr.mxu0 %v6111_v1 }
 0x672   :  { %6730 = vmatpush3.msra.mxu0 %v6111_v1  ;;  %v6136_v1 = vld [vmem:[%s8299_s3 + $0x80] sm:$0xff] }
 0x673   :  { %6732 = vmatmul.mubr.msk.f32.vlgmr.msra.gmra.mxu0 %vm130_vm1, %v7328_v13  ;;  %6745 = vmatprep.subr.mxu0 %v7268_v21 }
 0x674   :  { %6747 = vmatprep.mubr.msk.f32.mxu0 %vm7269_vm2, %v7268_v21 }
 0x723   :  { %v1190_v4 = vpop.f32.mrf.mxu1 }
 0x724   :  { %6704 = vmatprep.mubr.msk.f32.mxu1 %vm370_vm3, %v1190_v4  ;;  %v6147_v4 = vld [vmem:[%s8299_s3 + $0x1c8] sm:$0xff] }
 0x725   :  { %v6696_v5 = vpop.f32.mrf.mxu1 }
 0x726   :  { %v6146_v5 = vld [vmem:[%s8299_s3 + $0x1c0] sm:$0xff] }
 0x727   :  { %v1263_v6 = vpop.f32.mrf.mxu0 }
 0x728   :  { %6705 = vmatmul.mubr.msk.f32.vlgmr.msra.gmra.mxu1 %vm370_vm3, %v1263_v6  ;;  %v6145_v6 = vld [vmem:[%s8299_s3 + $0x1b8] sm:$0xff] }
 0x729   :  { %6713 = vmatpush3.msra.mxu1 %v6109_v3  ;;  %v6701_v8 = vpop.f32.mrf.mxu0  ;;  %6720 = vmatprep.mubr.msk.f32.mxu1 %vm130_vm1, %v7326_v12  ;;  %v6148_v3 = vld [vmem:[%s8299_s3 + $0x1d0] sm:$0xff] }
 0x72a   :  { %6714 = vmatprep.subr.mxu1 %v6108_v7  ;;  %v6143_v8 = vld [vmem:[%s8299_s3 + $0x130] sm:$0xff] }
 0x72b   :  { %6715 = vmatpush3.msra.mxu1 %v6108_v7  ;;  %v7530_v11 = vpop.f32.mrf.mxu0  ;;  %v2005_v7 = vld [vmem:[%s8297_s1 + $0x20] sm:$0xff] }
 0x72c   :  { %6716 = vmatprep.subr.mxu1 %v6107_v9 }
 0x72d   :  { %6717 = vmatpush3.msra.mxu1 %v6107_v9  ;;  %v7544_v18 = vpop.f32.mrf.mxu0 }
 0x72e   :  { %6718 = vmatprep.subr.mxu1 %v6106_v10 }
 0x72f   :  { %6719 = vmatpush3.msra.mxu1 %v6106_v10 }
 0x730   :  { %6721 = vmatmul.mubr.msk.f32.vlgmr.msra.gmra.mxu1 %vm130_vm1, %v7328_v13  ;;  %6734 = vmatprep.subr.mxu1 %v6119_v14 }
 0x731   :  { %6735 = vmatpush3.msra.mxu1 %v6119_v14  ;;  %6742 = vmatprep.mubr.msk.f32.mxu1 %vm130_vm1, %v7326_v12 }
 0x732   :  { %6736 = vmatprep.subr.mxu1 %v6118_v16 }
 0x733   :  { %v6733_v20 = vpop.f32.mrf.mxu0  ;;  %6737 = vmatpush3.msra.mxu1 %v6118_v16 }
 0x734   :  { %v1603_v23 = vadd.f32 %v6733_v20, %v1530_v17  ;;  %6738 = vmatprep.subr.mxu1 %v6117_v19 }
 0x735   :  { %v1597_v24 = vpop.f32.mrf.mxu0  ;;  %6739 = vmatpush3.msra.mxu1 %v6117_v19  ;;  %v6140_v19 = vld [vmem:[%s8299_s3 + $0x118] sm:$0xff] }
 0x736   :  { %v1598_v25 = vadd.f32 %v1597_v24, %v1530_v17  ;;  %6740 = vmatprep.subr.mxu1 %v6116_v22  ;;  %v6141_v17 = vld [vmem:[%s8299_s3 + $0x120] sm:$0xff] }
 0x737   :  { %6741 = vmatpush3.msra.mxu1 %v6116_v22  ;;  %v6149_v22 = vld [vmem:[%s8299_s3 + $0x1d8] sm:$0xff] }
 0x738   :  { %6743 = vmatmul.mubr.msk.f32.vlgmr.msra.gmra.mxu1 %vm130_vm1, %v7328_v13  ;;  %6746 = vmatpush3.xpose.msk.msra.mxu0 %vm370_vm3, %v1598_v25 }
 0x739   :  { %6750 = vmatprep.subr.mxu0 %v7268_v21  ;;  %6755 = vmatprep.subr.mxu1 %v7268_v21 }
 0x73a   :  { %6757 = vmatprep.mubr.msk.f32.mxu1 %vm7269_vm2, %v7268_v21 }
 0x7e8   :  { %v7561_v26 = vpop.f32.mrf.mxu1 }
 0x7ea   :  { %v7563_v28 = vpop.f32.mrf.mxu1 }
 0x7f0   :  { %v6722_v30 = vpop.f32.mrf.mxu1 }
 0x7f1   :  { %v1524_v36 = vadd.f32 %v6722_v30, %v1451_v31 }
 0x7f2   :  { %v1518_v32 = vpop.f32.mrf.mxu1 }
 0x7f3   :  { %v1519_v34 = vadd.f32 %v1518_v32, %v1451_v31  ;;  %v1427_v32 = vadd.f32 %v7530_v11, %v7561_v26 }
 0x7f5   :  { %6748 = vmatmul.mubr.msk.f32.vlgmr.msra.gmra.mxu0 %vm370_vm3, %v1519_v34  ;;  %v1422_v34 = vadd.f32 %v7544_v18, %v7563_v28 }
 0x7f6   :  { %6751 = vmatpush3.xpose.msk.msra.mxu0 %vm370_vm3, %v1603_v23  ;;  %6752 = vmatprep.mubr.msk.f32.mxu0 %vm7269_vm2, %v7268_v21  ;;  %v2268_v23 = vrot.slane %v6149_v22, %v7372_v27 }
 0x7f7   :  { %6760 = vmatprep.subr.mxu0 %v7268_v21 }
 0x7f8   :  { %v6744_v37 = vpop.f32.mrf.mxu1 }
 0x7f9   :  { %v1682_v38 = vadd.f32 %v6744_v37, %v1609_v35  ;;  %6753 = vmatmul.mubr.msk.f32.vlgmr.msra.gmra.mxu0 %vm370_vm3, %v1524_v36 }
 0x7fa   :  { %v1676_v39 = vpop.f32.mrf.mxu1  ;;  %6762 = vmatprep.mubr.msk.f32.mxu0 %vm7269_vm2, %v7268_v21 }
 0x7fb   :  { %v1677_v40 = vadd.f32 %v1676_v39, %v1609_v35  ;;  %6761 = vmatpush3.msra.mxu0 %v1682_v38  ;;  %v6144_v38 = vld [vmem:[%s8299_s3 + $0x138] sm:$0xff] }
 0x7fc   :  { %6770 = vmatprep.subr.mxu0 %v6138_v57  ;;  %v2189_v11 = vrot.slane %v6144_v38, %v7372_v27  ;;  %v2818_v38 = vld [vmem:[%s8297_s1 + $0xa8] sm:$0xff] }
 0x7fd   :  { %6756 = vmatpush3.msra.mxu1 %v1677_v40  ;;  %v6139_v40 = vld [vmem:[%s8299_s3 + $0x98] sm:$0xff] }
 0x7fe   :  { %6765 = vmatprep.subr.mxu1 %v2005_v7  ;;  %v2110_v18 = vrot.slane %v6139_v40, %v7372_v27  ;;  %v2816_v40 = vld [vmem:[%s8297_s1 + $0x98] sm:$0xff] }
 0x8b5   :  { %v1757_v41 = vpop.f32.mrf.mxu0 }
 0x8b6   :  { %v1837_v42 = vsel %vm370_vm3, %v1757_v41, -inf }
 0x8b7   :  { %1838 = vmax.xlane.f32.xlu0 %v1837_v42  ;;  %v6749_v43 = vpop.f32.mrf.mxu0 }
 0x8b9   :  { %v1833_v44 = vpop.f32.mrf.mxu0 }
 0x8ba   :  { %v1840_v45 = vsel %vm370_vm3, %v1833_v44, -inf }
 0x8bb   :  { %1841 = vmax.xlane.f32.xlu1 %v1840_v45  ;;  %v6754_v46 = vpop.f32.mrf.mxu0 }
 0x940   :  { %v1839_v47 = vpop.xlane.xlu0 %1838 }
 0x941   :  { %v1843_v48 = vsub.f32 %v1757_v41, %v1839_v47 }
 0x943   :  { %v1845_v49 = vmul.f32 1.442695, %v1843_v48 }
 0x944   :  { %v1842_v50 = vpop.xlane.xlu1 %1841 }
 0x945   :  { %7182 = vpow2.f32 %v1845_v49  ;;  %v1844_v51 = vsub.f32 %v1833_v44, %v1842_v50 }
 0x947   :  { %v1847_v52 = vmul.f32 1.442695, %v1844_v51 }
 0x949   :  { %7184 = vpow2.f32 %v1847_v52 }
 0x952   :  { %v7183_v53 = vpop.eup %7182 }
 0x953   :  { %v1849_v54 = vsel %vm370_vm3, %v7183_v53, 0.0 }
 0x954   :  { %1850 = vadd.xlane.f32.xlu0 %v1849_v54 }
 0x956   :  { %v7185_v55 = vpop.eup %7184 }
 0x957   :  { %v1852_v56 = vsel %vm370_vm3, %v7185_v55, 0.0 }
 0x958   :  { %1853 = vadd.xlane.f32.xlu1 %v1852_v56 }
 0x9dd   :  { %v1851_v58 = vpop.xlane.xlu0 %1850 }
 0x9de   :  { %7186 = vrcp.f32 %v1851_v58 }
 0x9e1   :  { %v1854_v59 = vpop.xlane.xlu1 %1853 }
 0x9e2   :  { %7188 = vrcp.f32 %v1854_v59 }
 0x9eb   :  { %v7187_v60 = vpop.eup %7186 }
 0x9ec   :  { %v1857_v61 = vmul.f32 %v7187_v60, %v7183_v53 }
 0x9ee   :  { %6758 = vmatmul.mubr.msk.f32.vlgmr.msra.gmra.mxu1 %vm370_vm3, %v1857_v61 }
 0x9ef   :  { %v7189_v62 = vpop.eup %7188  ;;  %6766 = vmatpush3.msra.mxu1 %v2005_v7 }
 0x9f0   :  { %v1858_v63 = vmul.f32 %v7189_v62, %v7185_v55  ;;  %6781 = vmatprep.subr.mxu1 %v6143_v8 }
 0x9f2   :  { %6763 = vmatmul.mubr.msk.f32.vlgmr.msra.gmra.mxu0 %vm370_vm3, %v1858_v63 }
 0x9f3   :  { %6771 = vmatpush3.msra.mxu0 %v6138_v57  ;;  %6778 = vmatprep.mubr.msk.f32.mxu0 %vm130_vm1, %v7326_v12 }
 0x9f4   :  { %6772 = vmatprep.subr.mxu0 %v6137_v0 }
 0x9f5   :  { %6773 = vmatpush3.msra.mxu0 %v6137_v0 }
 0x9f6   :  { %6774 = vmatprep.subr.mxu0 %v6136_v1 }
 0x9f7   :  { %6775 = vmatpush3.msra.mxu0 %v6136_v1 }
 0x9f8   :  { %6776 = vmatprep.subr.mxu0 %v6135_v2 }
 0x9f9   :  { %6777 = vmatpush3.msra.mxu0 %v6135_v2  ;;  %v2664_v2 = vld [vmem:[%s8297_s1 + $0x28] sm:$0xff] }
 0x9fa   :  { %6779 = vmatmul.mubr.msk.f32.vlgmr.msra.gmra.mxu0 %vm130_vm1, %v7328_v13  ;;  %6792 = vmatprep.subr.mxu0 %v6148_v3 }
 0x9fb   :  { %6793 = vmatpush3.msra.mxu0 %v6148_v3  ;;  %6800 = vmatprep.mubr.msk.f32.mxu0 %vm130_vm1, %v7326_v12 }
 0x9fc   :  { %6794 = vmatprep.subr.mxu0 %v6147_v4 }
 0x9fd   :  { %6795 = vmatpush3.msra.mxu0 %v6147_v4 }
 0x9fe   :  { %6796 = vmatprep.subr.mxu0 %v6146_v5 }
 0x9ff   :  { %6797 = vmatpush3.msra.mxu0 %v6146_v5 }
 0xa00   :  { %6798 = vmatprep.subr.mxu0 %v6145_v6 }
 0xa01   :  { %6799 = vmatpush3.msra.mxu0 %v6145_v6 }
 0xa02   :  { %6801 = vmatmul.mubr.msk.f32.vlgmr.msra.gmra.mxu0 %vm130_vm1, %v7328_v13  ;;  %6813 = vmatprep.subr.mxu0 %v7268_v21 }
 0xa03   :  { %6815 = vmatprep.mubr.msk.f32.mxu0 %vm7269_vm2, %v7268_v21 }
 0xaae   :  { %v1928_v9 = vpop.f32.mrf.mxu1 }
 0xaaf   :  { %6767 = vmatprep.mubr.msk.f32.mxu1 %vm370_vm3, %v1928_v9 }
 0xab0   :  { %v6759_v10 = vpop.f32.mrf.mxu1 }
 0xab2   :  { %v2001_v14 = vpop.f32.mrf.mxu0 }
 0xab3   :  { %6768 = vmatmul.mubr.msk.f32.vlgmr.msra.gmra.mxu1 %vm370_vm3, %v2001_v14 }
 0xab4   :  { %6782 = vmatpush3.msra.mxu1 %v6143_v8  ;;  %v6764_v16 = vpop.f32.mrf.mxu0  ;;  %6789 = vmatprep.mubr.msk.f32.mxu1 %vm130_vm1, %v7326_v12  ;;  %v6164_v8 = vld [vmem:[%s8297_s1 + $0x151] ss:$0 sm:$0xff] }
 0xab5   :  { %6783 = vmatprep.subr.mxu1 %v6142_v15 }
 0xab6   :  { %6784 = vmatpush3.msra.mxu1 %v6142_v15 }
 0xab7   :  { %6785 = vmatprep.subr.mxu1 %v6141_v17 }
 0xab8   :  { %6786 = vmatpush3.msra.mxu1 %v6141_v17 }
 0xab9   :  { %6787 = vmatprep.subr.mxu1 %v6140_v19 }
 0xaba   :  { %6788 = vmatpush3.msra.mxu1 %v6140_v19  ;;  %v6780_v20 = vpop.f32.mrf.mxu0 }
 0xabb   :  { %6790 = vmatmul.mubr.msk.f32.vlgmr.msra.gmra.mxu1 %vm130_vm1, %v7328_v13  ;;  %6803 = vmatprep.subr.mxu1 %v7268_v21  ;;  %v2183_v43 = vadd.f32 %v6780_v20, %v2110_v18 }
 0xabc   :  { %6805 = vmatprep.mubr.msk.f32.mxu1 %vm7269_vm2, %v7268_v21  ;;  %v2177_v24 = vpop.f32.mrf.mxu0 }
 0xabd   :  { %v2178_v28 = vadd.f32 %v2177_v24, %v2110_v18  ;;  %v2812_v18 = vld [vmem:[%s8297_s1 + $0x78] sm:$0xff] }
 0xac2   :  { %v6802_v25 = vpop.f32.mrf.mxu0 }
 0xac3   :  { %v2341_v29 = vadd.f32 %v6802_v25, %v2268_v23 }
 0xac4   :  { %v2335_v30 = vpop.f32.mrf.mxu0 }
 0xac5   :  { %v2336_v31 = vadd.f32 %v2335_v30, %v2268_v23 }
 0xac7   :  { %6814 = vmatpush3.msra.mxu0 %v2336_v31 }
 0xac8   :  { %6823 = vmatprep.subr.mxu0 %v2664_v2 }
 0xb73   :  { %v6769_v33 = vpop.f32.mrf.mxu1 }
 0xb74   :  { %v7654_v35 = vadd.f32 %v6769_v33, %v1427_v32 }
 0xb75   :  { %v2078_v36 = vpop.f32.mrf.mxu1 }
 0xb76   :  { %v7656_v37 = vadd.f32 %v2078_v36, %v1422_v34  ;;  %v2801_v34 = vld [vmem:[%s8298_s2 + $0x18] sm:$0xff]  ;;  %v2799_v36 = vld [vmem:[%s8298_s2 + $0x8] sm:$0xff] }
 0xb7b   :  { %v6791_v39 = vpop.f32.mrf.mxu1 }
 0xb7c   :  { %v2262_v42 = vadd.f32 %v6791_v39, %v2189_v11  ;;  %v2817_v39 = vld [vmem:[%s8297_s1 + $0xa0] sm:$0xff] }
 0xb7d   :  { %v2256_v26 = vpop.f32.mrf.mxu1 }
 0xb7e   :  { %v2257_v41 = vadd.f32 %v2256_v26, %v2189_v11  ;;  %v2815_v11 = vld [vmem:[%s8297_s1 + $0x90] sm:$0xff]  ;;  %v2814_v26 = vld [vmem:[%s8297_s1 + $0x88] sm:$0xff] }
 0xb80   :  { %6804 = vmatpush3.xpose.msk.msra.mxu1 %vm370_vm3, %v2257_v41  ;;  %v2813_v41 = vld [vmem:[%s8297_s1 + $0x80] sm:$0xff] }
 0xb81   :  { %6808 = vmatprep.subr.mxu1 %v7268_v21 }
 0xb83   :  { %6806 = vmatmul.mubr.msk.f32.vlgmr.msra.gmra.mxu1 %vm370_vm3, %v2178_v28  ;;  %v2811_v28 = vld [vmem:[%s8297_s1 + $0x70] sm:$0xff] }
 0xb84   :  { %6809 = vmatpush3.xpose.msk.msra.mxu1 %vm370_vm3, %v2262_v42  ;;  %6810 = vmatprep.mubr.msk.f32.mxu1 %vm7269_vm2, %v7268_v21  ;;  %v2810_v42 = vld [vmem:[%s8297_s1 + $0x68] sm:$0xff] }
 0xb85   :  { %6818 = vmatprep.subr.mxu1 %v7268_v21 }
 0xb87   :  { %6811 = vmatmul.mubr.msk.f32.vlgmr.msra.gmra.mxu1 %vm370_vm3, %v2183_v43  ;;  %v2809_v43 = vld [vmem:[%s8297_s1 + $0x60] sm:$0xff] }
 0xb88   :  { %6819 = vmatpush3.msra.mxu1 %v2341_v29  ;;  %6820 = vmatprep.mubr.msk.f32.mxu1 %vm7269_vm2, %v7268_v21 }
 0xb89   :  { %6828 = vmatprep.subr.mxu1 %v2801_v34 }
 0xc43   :  { %v2416_v44 = vpop.f32.mrf.mxu1 }
 0xc44   :  { %v2496_v45 = vsel %vm370_vm3, %v2416_v44, -inf }
 0xc45   :  { %2497 = vmax.xlane.f32.xlu0 %v2496_v45  ;;  %v6807_v46 = vpop.f32.mrf.mxu1  ;;  %v2807_v45 = vld [vmem:[%s8297_s1 + $0x50] sm:$0xff] }
 0xc47   :  { %v2492_v47 = vpop.f32.mrf.mxu1 }
 0xc48   :  { %v2499_v48 = vsel %vm370_vm3, %v2492_v47, -inf }
 0xc49   :  { %2500 = vmax.xlane.f32.xlu1 %v2499_v48  ;;  %v6812_v49 = vpop.f32.mrf.mxu1 }
 0xcce   :  { %v2498_v50 = vpop.xlane.xlu0 %2497 }
 0xccf   :  { %v2502_v51 = vsub.f32 %v2416_v44, %v2498_v50  ;;  %v2808_v44 = vld [vmem:[%s8297_s1 + $0x58] sm:$0xff] }
 0xcd1   :  { %v2504_v52 = vmul.f32 1.442695, %v2502_v51 }
 0xcd2   :  { %v2501_v53 = vpop.xlane.xlu1 %2500 }
 0xcd3   :  { %7190 = vpow2.f32 %v2504_v52  ;;  %v2503_v54 = vsub.f32 %v2492_v47, %v2501_v53  ;;  %v6165_v53 = vld [vmem:[%s8297_s1 + $0x152] ss:$0 sm:$0xff] }
 0xcd5   :  { %v2506_v55 = vmul.f32 1.442695, %v2503_v54 }
 0xcd7   :  { %7192 = vpow2.f32 %v2506_v55 }
 0xce0   :  { %v7191_v56 = vpop.eup %7190 }
 0xce1   :  { %v2508_v57 = vsel %vm370_vm3, %v7191_v56, 0.0 }
 0xce2   :  { %2509 = vadd.xlane.f32.xlu0 %v2508_v57 }
 0xce4   :  { %v7193_v58 = vpop.eup %7192 }
 0xce5   :  { %v2511_v59 = vsel %vm370_vm3, %v7193_v58, 0.0 }
 0xce6   :  { %2512 = vadd.xlane.f32.xlu1 %v2511_v59 }
 0xd6b   :  { %v2510_v60 = vpop.xlane.xlu0 %2509 }
 0xd6c   :  { %7194 = vrcp.f32 %v2510_v60 }
 0xd6f   :  { %v2513_v61 = vpop.xlane.xlu1 %2512 }
 0xd70   :  { %7196 = vrcp.f32 %v2513_v61 }
 0xd79   :  { %v7195_v62 = vpop.eup %7194 }
 0xd7a   :  { %v2516_v63 = vmul.f32 %v7195_v62, %v7191_v56  ;;  %v2806_v62 = vld [vmem:[%s8297_s1 + $0x48] sm:$0xff] }
 0xd7c   :  { %6816 = vmatmul.mubr.msk.f32.vlgmr.msra.gmra.mxu0 %vm370_vm3, %v2516_v63  ;;  %v2805_v63 = vld [vmem:[%s8297_s1 + $0x40] sm:$0xff] }
 0xd7d   :  { %v7197_v0 = vpop.eup %7196  ;;  %6824 = vmatpush3.msra.mxu0 %v2664_v2  ;;  %v6167_v2 = vld [vmem:[%s8298_s2 + $0x60] ss:$0 sm:$0xff] }
 0xd7e   :  { %v2517_v1 = vmul.f32 %v7197_v0, %v7193_v58  ;;  %6839 = vmatprep.subr.mxu0 %v2818_v38  ;;  %v6166_v58 = vld [vmem:[%s8297_s1 + $0x153] ss:$0 sm:$0xff]  ;;  %v2804_v0 = vld [vmem:[%s8297_s1 + $0x38] sm:$0xff] }
 0xd80   :  { %6821 = vmatmul.mubr.msk.f32.vlgmr.msra.gmra.mxu1 %vm370_vm3, %v2517_v1  ;;  %v2803_v1 = vld [vmem:[%s8297_s1 + $0x30] sm:$0xff] }
 0xd81   :  { %6829 = vmatpush3.msra.mxu1 %v2801_v34  ;;  %v6176_v34 = vld [vmem:[%s8299_s3 + $0x1f8] sm:$0xff] }
 0xe3c   :  { %v2587_v3 = vpop.f32.mrf.mxu0 }
 0xe3d   :  { %6825 = vmatprep.mubr.msk.f32.mxu0 %vm370_vm3, %v2587_v3 }
 0xe3e   :  { %v6817_v4 = vpop.f32.mrf.mxu0 }
 0xe40   :  { %v2660_v5 = vpop.f32.mrf.mxu1 }
 0xe41   :  { %6826 = vmatmul.mubr.msk.f32.vlgmr.msra.gmra.mxu0 %vm370_vm3, %v2660_v5 }
 0xe42   :  { %v6822_v6 = vpop.f32.mrf.mxu1  ;;  %6840 = vmatpush3.msra.mxu0 %v2818_v38  ;;  %v6181_v38 = vld [vmem:[%s8299_s3 + $0x298] sm:$0xff] }
 0xe43   :  { %6841 = vmatprep.subr.mxu0 %v2817_v39 }
 0xe44   :  { %6842 = vmatpush3.msra.mxu0 %v2817_v39 }
 0xe45   :  { %6843 = vmatprep.subr.mxu0 %v2816_v40 }
 0xe46   :  { %6844 = vmatpush3.msra.mxu0 %v2816_v40 }
 0xe47   :  { %6845 = vmatprep.subr.mxu0 %v2815_v11 }
 0xe48   :  { %6846 = vmatpush3.msra.mxu0 %v2815_v11 }
 0xe49   :  { %6847 = vmatprep.subr.mxu0 %v2814_v26 }
 0xe4a   :  { %6848 = vmatpush3.msra.mxu0 %v2814_v26 }
 0xe4b   :  { %6849 = vmatprep.subr.mxu0 %v2813_v41 }
 0xe4c   :  { %6850 = vmatpush3.msra.mxu0 %v2813_v41 }
 0xe4d   :  { %6851 = vmatprep.subr.mxu0 %v2812_v18 }
 0xe4e   :  { %6852 = vmatpush3.msra.mxu0 %v2812_v18 }
 0xe4f   :  { %6853 = vmatprep.subr.mxu0 %v2811_v28 }
 0xe50   :  { %6854 = vmatpush3.msra.mxu0 %v2811_v28 }
 0xe51   :  { %6855 = vmatprep.subr.mxu0 %v2810_v42 }
 0xe52   :  { %6856 = vmatpush3.msra.mxu0 %v2810_v42  ;;  %v6171_v42 = vld [vmem:[%s8297_s1 + $0x155] ss:$0 sm:$0xff] }
 0xe53   :  { %6857 = vmatprep.subr.mxu0 %v2809_v43 }
 0xe54   :  { %6858 = vmatpush3.msra.mxu0 %v2809_v43 }
 0xe55   :  { %6859 = vmatprep.subr.mxu0 %v2808_v44 }
 0xe56   :  { %6860 = vmatpush3.msra.mxu0 %v2808_v44 }
 0xe57   :  { %6861 = vmatprep.subr.mxu0 %v2807_v45 }
 0xe58   :  { %6862 = vmatpush3.msra.mxu0 %v2807_v45 }
 0xe59   :  { %6863 = vmatprep.subr.mxu0 %v2806_v62 }
 0xe5a   :  { %6864 = vmatpush3.msra.mxu0 %v2806_v62 }
 0xe5b   :  { %6865 = vmatprep.subr.mxu0 %v2805_v63 }
 0xe5c   :  { %6866 = vmatpush3.msra.mxu0 %v2805_v63 }
 0xe5d   :  { %6867 = vmatprep.subr.mxu0 %v2804_v0 }
 0xe5e   :  { %6868 = vmatpush3.msra.mxu0 %v2804_v0 }
 0xe5f   :  { %6869 = vmatprep.subr.mxu0 %v2803_v1 }
 0xe60   :  { %6870 = vmatpush3.msra.mxu0 %v2803_v1 }
 0xe61   :  { %6912 = vmatprep.subr.mxu0 %v7268_v21 }
 0xf01   :  { %v6827_v7 = vpop.f32.mrf.mxu0 }
 0xf02   :  { %v2747_v9 = vadd.f32 %v6827_v7, %v7654_v35  ;;  %v2800_v35 = vld [vmem:[%s8298_s2 + $0x10] sm:$0xff] }
 0xf03   :  { %v2737_v10 = vpop.f32.mrf.mxu0  ;;  %6830 = vmatprep.subr.mxu1 %v2800_v35 }
 0xf04   :  { %v2754_v14 = vadd.f32 %v6164_v8, %v2747_v9  ;;  %v2746_v15 = vadd.f32 %v2737_v10, %v7656_v37  ;;  %6831 = vmatpush3.msra.mxu1 %v2800_v35  ;;  %v2798_v37 = vld [vmem:[%s8298_s2] sm:$0xff]  ;;  %v6170_v9 = vld [vmem:[%s8297_s1 + $0x154] ss:$0 sm:$0xff] }
 0xf05   :  { %6832 = vmatprep.subr.mxu1 %v2799_v36  ;;  %v6175_v35 = vld [vmem:[%s8299_s3 + $0x1f0] sm:$0xff] }
 0xf06   :  { %v2753_v16 = vadd.f32 %v6164_v8, %v2746_v15  ;;  %v2756_v17 = vadd.f32 %v2754_v14, %v7328_v13  ;;  %6833 = vmatpush3.msra.mxu1 %v2799_v36  ;;  %v6174_v36 = vld [vmem:[%s8299_s3 + $0x1e8] sm:$0xff] }
 0xf07   :  { %6834 = vmatprep.subr.mxu1 %v2798_v37 }
 0xf08   :  { %v2762_v19 = vsel %vm130_vm1, %v2756_v17, 0.0  ;;  %v2755_v20 = vadd.f32 %v2753_v16, %v7326_v12  ;;  %6835 = vmatpush3.msra.mxu1 %v2798_v37  ;;  %v6173_v37 = vld [vmem:[%s8299_s3 + $0x1e0] sm:$0xff] }
 0xf09   :  { %2763 = vadd.xlane.f32.xlu1 %v2762_v19  ;;  %6874 = vmatprep.subr.mxu1 %v6176_v34 }
 0xf0a   :  { %v2759_v22 = vsel %vm130_vm1, %v2755_v20, 0.0 }
 0xf0b   :  { %2760 = vadd.xlane.f32.xlu0 %v2759_v22 }
 0xf92   :  { %v2764_v23 = vpop.xlane.xlu1 %2763 }
 0xf93   :  { %v2767_v24 = vmul.f32 0.03125, %v2764_v23 }
 0xf94   :  { %v2761_v25 = vpop.xlane.xlu0 %2760 }
 0xf95   :  { %v7696_v29 = vsub.f32 %v2756_v17, %v2767_v24  ;;  %v2766_v30 = vmul.f32 0.03125, %v2761_v25 }
 0xf97   :  { %v7698_v31 = vsub.f32 %v2755_v20, %v2766_v30  ;;  %v2771_v32 = vmul.f32 %v7696_v29, %v7696_v29 }
 0xf99   :  { %v2775_v13 = vsel %vm130_vm1, %v2771_v32, 0.0  ;;  %v2770_v12 = vmul.f32 %v7698_v31, %v7698_v31 }
 0xf9a   :  { %2776 = vadd.xlane.f32.xlu1 %v2775_v13 }
 0xf9b   :  { %v2772_v33 = vsel %vm130_vm1, %v2770_v12, 0.0 }
 0xf9c   :  { %2773 = vadd.xlane.f32.xlu0 %v2772_v33 }
0x1023   :  { %v2777_v46 = vpop.xlane.xlu1 %2776 }
0x1024   :  { %v2779_v47 = vmul.f32 0.03125, %v2777_v46 }
0x1025   :  { %v2774_v48 = vpop.xlane.xlu0 %2773 }
0x1026   :  { %v2781_v49 = vadd.f32 1e-05, %v2779_v47  ;;  %v2778_v50 = vmul.f32 0.03125, %v2774_v48  ;;  %v6172_v47 = vld [vmem:[%s8297_s1 + $0x156] ss:$0 sm:$0xff] }
0x1028   :  { %7198 = vrsqrt.f32 %v2781_v49  ;;  %v2780_v51 = vadd.f32 1e-05, %v2778_v50 }
0x102a   :  { %7200 = vrsqrt.f32 %v2780_v51  ;;  %v6180_v51 = vld [vmem:[%s8299_s3 + $0x290] sm:$0xff] }
0x1035   :  { %v7199_v52 = vpop.eup %7198 }
0x1036   :  { %v2785_v54 = vmul.f32 %v7199_v52, %v7696_v29  ;;  %v6179_v52 = vld [vmem:[%s8299_s3 + $0x288] sm:$0xff] }
0x1037   :  { %v7201_v55 = vpop.eup %7200 }
0x1038   :  { %v2784_v56 = vmul.f32 %v7201_v55, %v7698_v31  ;;  %v2791_v57 = vmul.f32 %v6165_v53, %v2785_v54  ;;  %v6186_v54 = vld [vmem:[%s8299_s3 + $0x338] sm:$0xff]  ;;  %v6185_v55 = vld [vmem:[%s8299_s3 + $0x330] sm:$0xff] }
0x103a   :  { %v2790_v59 = vmul.f32 %v6165_v53, %v2784_v56  ;;  %v2797_v61 = vadd.f32 %v6166_v58, %v2791_v57  ;;  %v6178_v53 = vld [vmem:[%s8299_s3 + $0x280] sm:$0xff]  ;;  %v6184_v56 = vld [vmem:[%s8299_s3 + $0x328] sm:$0xff] }
0x103b   :  { %v6183_v57 = vld [vmem:[%s8299_s3 + $0x320] sm:$0xff] }
0x103c   :  { %v2796_v60 = vadd.f32 %v6166_v58, %v2790_v59  ;;  %v6182_v59 = vld [vmem:[%s8299_s3 + $0x2a0] sm:$0xff] }
0x103e   :  { %6836 = vmatprep.mubr.msk.f32.mxu1 %vm130_vm1, %v2796_v60 }
0x103f   :  { %6837 = vmatmul.mubr.msk.f32.vlgmr.msra.gmra.mxu1 %vm130_vm1, %v2797_v61 }
0x1040   :  { %6875 = vmatpush3.msra.mxu1 %v6176_v34  ;;  %v6208_v34 = vld [vmem:[%s8299_s3 + $0x2c0] sm:$0xff] }
0x1041   :  { %6876 = vmatprep.subr.mxu1 %v6175_v35 }
0x1042   :  { %6877 = vmatpush3.msra.mxu1 %v6175_v35  ;;  %v6203_v35 = vld [vmem:[%s8299_s3 + $0x220] sm:$0xff] }
0x1043   :  { %6878 = vmatprep.subr.mxu1 %v6174_v36 }
0x1044   :  { %6879 = vmatpush3.msra.mxu1 %v6174_v36 }
0x1045   :  { %6880 = vmatprep.subr.mxu1 %v6173_v37 }
0x1046   :  { %6881 = vmatpush3.msra.mxu1 %v6173_v37 }
0x1047   :  { %6885 = vmatprep.subr.mxu1 %v6181_v38 }
0x10ff   :  { %v6838_v3 = vpop.f32.mrf.mxu1 }
0x1100   :  { %v2902_v4 = vadd.f32 %v6838_v3, %v6167_v2  ;;  %v6187_v3 = vld [vmem:[%s8299_s3 + $0x340] sm:$0xff] }
0x1101   :  { %v2896_v5 = vpop.f32.mrf.mxu1 }
0x1102   :  { %v2897_v6 = vadd.f32 %v6167_v2, %v2896_v5  ;;  %v2906_v8 = vmax.f32 %v2902_v4, 0.0 }
0x1104   :  { %v2905_v7 = vmax.f32 %v2897_v6, 0.0  ;;  %v3213_v6 = vrot.slane %v6187_v3, %v7372_v27 }
0x1106   :  { %6871 = vmatprep.mubr.f32.mxu0 %v2905_v7 }
0x1107   :  { %6872 = vmatmul.mubr.f32.vlgmr.msra.gmra.mxu0 %v2906_v8 }
0x1108   :  { %6914 = vmatprep.mubr.msk.f32.mxu0 %vm7269_vm2, %v7268_v21 }
0x11c7   :  { %v6873_v10 = vpop.f32.mrf.mxu0 }
0x11c8   :  { %v2983_v14 = vadd.f32 %v6873_v10, %v6170_v9 }
0x11c9   :  { %v2977_v15 = vpop.f32.mrf.mxu0 }
0x11ca   :  { %v2978_v16 = vadd.f32 %v6170_v9, %v2977_v15  ;;  %v2987_v17 = vadd.f32 %v2983_v14, %v2797_v61  ;;  %v3134_v61 = vrot.slane %v6182_v59, %v7372_v27 }
0x11cc   :  { %v2993_v19 = vsel %vm130_vm1, %v2987_v17, 0.0  ;;  %v2986_v20 = vadd.f32 %v2978_v16, %v2796_v60  ;;  %v6177_v60 = vld [vmem:[%s8299_s3 + $0x200] sm:$0xff] }
0x11cd   :  { %2994 = vadd.xlane.f32.xlu1 %v2993_v19  ;;  %v3049_v63 = vrot.slane %v6177_v60, %v7372_v27 }
0x11ce   :  { %v2990_v22 = vsel %vm130_vm1, %v2986_v20, 0.0 }
0x11cf   :  { %2991 = vadd.xlane.f32.xlu0 %v2990_v22 }
0x1256   :  { %v2995_v23 = vpop.xlane.xlu1 %2994 }
0x1257   :  { %v2997_v24 = vmul.f32 0.03125, %v2995_v23 }
0x1258   :  { %v2992_v25 = vpop.xlane.xlu0 %2991 }
0x1259   :  { %v2999_v29 = vsub.f32 %v2987_v17, %v2997_v24  ;;  %v2996_v30 = vmul.f32 0.03125, %v2992_v25 }
0x125b   :  { %v2998_v31 = vsub.f32 %v2986_v20, %v2996_v30  ;;  %v3001_v32 = vmul.f32 %v2999_v29, %v2999_v29 }
0x125d   :  { %v3005_v13 = vsel %vm130_vm1, %v3001_v32, 0.0  ;;  %v3000_v12 = vmul.f32 %v2998_v31, %v2998_v31 }
0x125e   :  { %3006 = vadd.xlane.f32.xlu1 %v3005_v13 }
0x125f   :  { %v3002_v33 = vsel %vm130_vm1, %v3000_v12, 0.0 }
0x1260   :  { %3003 = vadd.xlane.f32.xlu0 %v3002_v33 }
0x12e7   :  { %v3007_v39 = vpop.xlane.xlu1 %3006 }
0x12e8   :  { %v3009_v40 = vmul.f32 0.03125, %v3007_v39 }
0x12e9   :  { %v3004_v11 = vpop.xlane.xlu0 %3003 }
0x12ea   :  { %v3011_v26 = vadd.f32 1e-05, %v3009_v40  ;;  %v3008_v41 = vmul.f32 0.03125, %v3004_v11  ;;  %v6207_v11 = vld [vmem:[%s8299_s3 + $0x2b8] sm:$0xff] }
0x12ec   :  { %7202 = vrsqrt.f32 %v3011_v26  ;;  %v3010_v18 = vadd.f32 1e-05, %v3008_v41  ;;  %v6202_v41 = vld [vmem:[%s8299_s3 + $0x218] sm:$0xff] }
0x12ee   :  { %7204 = vrsqrt.f32 %v3010_v18  ;;  %v6206_v18 = vld [vmem:[%s8299_s3 + $0x2b0] sm:$0xff] }
0x12f9   :  { %v7203_v28 = vpop.eup %7202 }
0x12fa   :  { %v3015_v43 = vmul.f32 %v7203_v28, %v2999_v29  ;;  %v6201_v28 = vld [vmem:[%s8299_s3 + $0x210] sm:$0xff] }
0x12fb   :  { %v7205_v44 = vpop.eup %7204 }
0x12fc   :  { %v3014_v45 = vmul.f32 %v7205_v44, %v2998_v31  ;;  %v3021_v46 = vmul.f32 %v6171_v42, %v3015_v43  ;;  %v6200_v43 = vld [vmem:[%s8299_s3 + $0x208] sm:$0xff]  ;;  %v6213_v44 = vld [vmem:[%s8299_s3 + $0x360] sm:$0xff] }
0x12fe   :  { %v3020_v48 = vmul.f32 %v6171_v42, %v3014_v45  ;;  %v7812_v50 = vadd.f32 %v6172_v47, %v3021_v46  ;;  %v6205_v42 = vld [vmem:[%s8299_s3 + $0x2a8] sm:$0xff]  ;;  %v6212_v45 = vld [vmem:[%s8299_s3 + $0x358] sm:$0xff]  ;;  %v6211_v46 = vld [vmem:[%s8299_s3 + $0x350] sm:$0xff] }
0x1300   :  { %v7810_v49 = vadd.f32 %v6172_v47, %v3020_v48  ;;  %v6210_v47 = vld [vmem:[%s8299_s3 + $0x348] sm:$0xff] }
0x1302   :  { %6882 = vmatprep.mubr.msk.f32.mxu1 %vm130_vm1, %v7810_v49 }
0x1303   :  { %6883 = vmatmul.mubr.msk.f32.vlgmr.msra.gmra.mxu1 %vm130_vm1, %v7812_v50 }
0x1304   :  { %6886 = vmatpush3.msra.mxu1 %v6181_v38  ;;  %6893 = vmatprep.mubr.msk.f32.mxu1 %vm130_vm1, %v7810_v49 }
0x1305   :  { %6887 = vmatprep.subr.mxu1 %v6180_v51 }
0x1306   :  { %6888 = vmatpush3.msra.mxu1 %v6180_v51 }
0x1307   :  { %6889 = vmatprep.subr.mxu1 %v6179_v52 }
0x1308   :  { %6890 = vmatpush3.msra.mxu1 %v6179_v52 }
0x1309   :  { %6891 = vmatprep.subr.mxu1 %v6178_v53 }
0x130a   :  { %6892 = vmatpush3.msra.mxu1 %v6178_v53 }
0x130b   :  { %6894 = vmatmul.mubr.msk.f32.vlgmr.msra.gmra.mxu1 %vm130_vm1, %v7812_v50  ;;  %6896 = vmatprep.subr.mxu1 %v6186_v54 }
0x130c   :  { %6897 = vmatpush3.msra.mxu1 %v6186_v54  ;;  %6904 = vmatprep.mubr.msk.f32.mxu1 %vm130_vm1, %v7810_v49  ;;  %v6209_v54 = vld [vmem:[%s8299_s3 + $0x2c8] sm:$0xff] }
0x130d   :  { %6898 = vmatprep.subr.mxu1 %v6185_v55 }
0x130e   :  { %6899 = vmatpush3.msra.mxu1 %v6185_v55  ;;  %v6204_v55 = vld [vmem:[%s8299_s3 + $0x228] sm:$0xff] }
0x130f   :  { %6900 = vmatprep.subr.mxu1 %v6184_v56  ;;  %v3631_v59 = vrot.slane %v6204_v55, %v7372_v27 }
0x1310   :  { %6901 = vmatpush3.msra.mxu1 %v6184_v56 }
0x1311   :  { %6902 = vmatprep.subr.mxu1 %v6183_v57 }
0x1312   :  { %6903 = vmatpush3.msra.mxu1 %v6183_v57  ;;  %v3710_v57 = vrot.slane %v6209_v54, %v7372_v27  ;;  %v6242_v54 = vld [vmem:[%s8299_s3 + $0x378] sm:$0xff] }
0x1313   :  { %6905 = vmatmul.mubr.msk.f32.vlgmr.msra.gmra.mxu1 %vm130_vm1, %v7812_v50  ;;  %6907 = vmatprep.subr.mxu1 %v7268_v21 }
0x1314   :  { %6909 = vmatprep.mubr.msk.f32.mxu1 %vm7269_vm2, %v7268_v21 }
0x13c3   :  { %v6884_v58 = vpop.f32.mrf.mxu1 }
0x13c4   :  { %v3128_v5 = vadd.f32 %v6884_v58, %v3049_v63 }
0x13c5   :  { %v3122_v62 = vpop.f32.mrf.mxu1 }
0x13c6   :  { %v3123_v7 = vadd.f32 %v3122_v62, %v3049_v63  ;;  %v6214_v63 = vld [vmem:[%s8299_s3 + $0x368] sm:$0xff] }
0x13cb   :  { %v6895_v0 = vpop.f32.mrf.mxu1 }
0x13cc   :  { %v3207_v1 = vadd.f32 %v6895_v0, %v3134_v61 }
0x13cd   :  { %v3201_v2 = vpop.f32.mrf.mxu1 }
0x13ce   :  { %v3202_v4 = vadd.f32 %v3201_v2, %v3134_v61  ;;  %6913 = vmatpush3.xpose.msk.msra.mxu0 %vm370_vm3, %v3207_v1  ;;  %v3789_v1 = vrot.slane %v6214_v63, %v7372_v27 }
0x13cf   :  { %6922 = vmatprep.subr.mxu0 %v7268_v21 }
0x13d0   :  { %6908 = vmatpush3.xpose.msk.msra.mxu1 %vm370_vm3, %v3202_v4 }
0x13d1   :  { %6915 = vmatmul.mubr.msk.f32.vlgmr.msra.gmra.mxu0 %vm370_vm3, %v3128_v5  ;;  %6917 = vmatprep.subr.mxu1 %v7268_v21 }
0x13d2   :  { %6924 = vmatprep.mubr.msk.f32.mxu0 %vm7269_vm2, %v7268_v21 }
0x13d3   :  { %v6906_v8 = vpop.f32.mrf.mxu1  ;;  %6910 = vmatmul.mubr.msk.f32.vlgmr.msra.gmra.mxu1 %vm370_vm3, %v3123_v7 }
0x13d4   :  { %v3286_v9 = vadd.f32 %v6906_v8, %v3213_v6  ;;  %6919 = vmatprep.mubr.msk.f32.mxu1 %vm7269_vm2, %v7268_v21 }
0x13d5   :  { %v3280_v10 = vpop.f32.mrf.mxu1 }
0x13d6   :  { %v3281_v14 = vadd.f32 %v3280_v10, %v3213_v6  ;;  %6923 = vmatpush3.msra.mxu0 %v3286_v9 }
0x13d7   :  { %6938 = vmatprep.subr.mxu0 %v6208_v34 }
0x13d8   :  { %6918 = vmatpush3.msra.mxu1 %v3281_v14 }
0x13d9   :  { %6927 = vmatprep.subr.mxu1 %v6203_v35 }
0x1491   :  { %v3437_v15 = vpop.f32.mrf.mxu0 }
0x1492   :  { %v3444_v16 = vsel %vm370_vm3, %v3437_v15, -inf }
0x1493   :  { %3445 = vmax.xlane.f32.xlu0 %v3444_v16  ;;  %v3361_v17 = vpop.f32.mrf.mxu1  ;;  %v6916_v19 = vpop.f32.mrf.mxu0 }
0x1494   :  { %v3441_v20 = vsel %vm370_vm3, %v3361_v17, -inf }
0x1495   :  { %3442 = vmax.xlane.f32.xlu1 %v3441_v20  ;;  %v6911_v22 = vpop.f32.mrf.mxu1 }
0x151c   :  { %v3446_v23 = vpop.xlane.xlu0 %3445 }
0x151d   :  { %v3448_v24 = vsub.f32 %v3437_v15, %v3446_v23 }
0x151e   :  { %v3443_v25 = vpop.xlane.xlu1 %3442 }
0x151f   :  { %v3451_v29 = vmul.f32 1.442695, %v3448_v24  ;;  %v3447_v30 = vsub.f32 %v3361_v17, %v3443_v25 }
0x1521   :  { %7206 = vpow2.f32 %v3451_v29  ;;  %v3449_v31 = vmul.f32 1.442695, %v3447_v30 }
0x1523   :  { %7208 = vpow2.f32 %v3449_v31 }
0x152e   :  { %v7207_v32 = vpop.eup %7206 }
0x152f   :  { %v3456_v13 = vsel %vm370_vm3, %v7207_v32, 0.0 }
0x1530   :  { %v7209_v12 = vpop.eup %7208  ;;  %3457 = vadd.xlane.f32.xlu0 %v3456_v13 }
0x1531   :  { %v3453_v33 = vsel %vm370_vm3, %v7209_v12, 0.0 }
0x1532   :  { %3454 = vadd.xlane.f32.xlu1 %v3453_v33 }
0x15b9   :  { %v3458_v36 = vpop.xlane.xlu0 %3457 }
0x15ba   :  { %7210 = vrcp.f32 %v3458_v36 }
0x15bb   :  { %v3455_v37 = vpop.xlane.xlu1 %3454 }
0x15bc   :  { %7212 = vrcp.f32 %v3455_v37  ;;  %v6239_v37 = vld [vmem:[%s8299_s3 + $0x2e8] sm:$0xff] }
0x15c7   :  { %v7211_v38 = vpop.eup %7210 }
0x15c8   :  { %v3462_v39 = vmul.f32 %v7211_v38, %v7207_v32  ;;  %v3609_v32 = vld [vmem:[%s8297_s1 + $0xb0] sm:$0xff]  ;;  %v6238_v38 = vld [vmem:[%s8299_s3 + $0x2e0] sm:$0xff] }
0x15c9   :  { %v7213_v40 = vpop.eup %7212 }
0x15ca   :  { %6925 = vmatmul.mubr.msk.f32.vlgmr.msra.gmra.mxu0 %vm370_vm3, %v3462_v39  ;;  %v3461_v26 = vmul.f32 %v7213_v40, %v7209_v12  ;;  %v6237_v39 = vld [vmem:[%s8299_s3 + $0x2d8] sm:$0xff]  ;;  %v6236_v40 = vld [vmem:[%s8299_s3 + $0x2d0] sm:$0xff] }
0x15cb   :  { %6939 = vmatpush3.msra.mxu0 %v6208_v34  ;;  %6946 = vmatprep.mubr.msk.f32.mxu0 %vm130_vm1, %v7810_v49 }
0x15cc   :  { %6940 = vmatprep.subr.mxu0 %v6207_v11  ;;  %6920 = vmatmul.mubr.msk.f32.vlgmr.msra.gmra.mxu1 %vm370_vm3, %v3461_v26  ;;  %v6234_v26 = vld [vmem:[%s8299_s3 + $0x248] sm:$0xff] }
0x15cd   :  { %6928 = vmatpush3.msra.mxu1 %v6203_v35  ;;  %6941 = vmatpush3.msra.mxu0 %v6207_v11  ;;  %v4185_v11 = vld [vmem:[%s8297_s1 + $0xb8] sm:$0xff] }
0x15ce   :  { %6929 = vmatprep.subr.mxu1 %v6202_v41  ;;  %6935 = vmatprep.mubr.msk.f32.mxu1 %vm130_vm1, %v7810_v49 }
0x15cf   :  { %6942 = vmatprep.subr.mxu0 %v6206_v18  ;;  %6930 = vmatpush3.msra.mxu1 %v6202_v41 }
0x15d0   :  { %6943 = vmatpush3.msra.mxu0 %v6206_v18  ;;  %6931 = vmatprep.subr.mxu1 %v6201_v28 }
0x15d1   :  { %6944 = vmatprep.subr.mxu0 %v6205_v42  ;;  %6932 = vmatpush3.msra.mxu1 %v6201_v28 }
0x15d2   :  { %6945 = vmatpush3.msra.mxu0 %v6205_v42  ;;  %6933 = vmatprep.subr.mxu1 %v6200_v43  ;;  %v6233_v42 = vld [vmem:[%s8299_s3 + $0x240] sm:$0xff] }
0x15d3   :  { %6947 = vmatmul.mubr.msk.f32.vlgmr.msra.gmra.mxu0 %vm130_vm1, %v7812_v50  ;;  %6934 = vmatpush3.msra.mxu1 %v6200_v43 }
0x15d4   :  { %6936 = vmatmul.mubr.msk.f32.vlgmr.msra.gmra.mxu1 %vm130_vm1, %v7812_v50  ;;  %6949 = vmatprep.subr.mxu1 %v6213_v44 }
0x15d5   :  { %6950 = vmatpush3.msra.mxu1 %v6213_v44  ;;  %6957 = vmatprep.mubr.msk.f32.mxu1 %vm130_vm1, %v7810_v49  ;;  %v6232_v44 = vld [vmem:[%s8299_s3 + $0x238] sm:$0xff] }
0x15d6   :  { %6951 = vmatprep.subr.mxu1 %v6212_v45  ;;  %6960 = vmatprep.subr.mxu0 %v7268_v21 }
0x15d7   :  { %6952 = vmatpush3.msra.mxu1 %v6212_v45  ;;  %6962 = vmatprep.mubr.msk.f32.mxu0 %vm7269_vm2, %v7268_v21  ;;  %v6231_v45 = vld [vmem:[%s8299_s3 + $0x230] sm:$0xff] }
0x15d8   :  { %6953 = vmatprep.subr.mxu1 %v6211_v46 }
0x15d9   :  { %6954 = vmatpush3.msra.mxu1 %v6211_v46 }
0x15da   :  { %6955 = vmatprep.subr.mxu1 %v6210_v47 }
0x15db   :  { %6956 = vmatpush3.msra.mxu1 %v6210_v47  ;;  %v6244_v47 = vld [vmem:[%s8299_s3 + $0x388] sm:$0xff] }
0x15dc   :  { %6958 = vmatmul.mubr.msk.f32.vlgmr.msra.gmra.mxu1 %vm130_vm1, %v7812_v50  ;;  %6970 = vmatprep.subr.mxu1 %v7268_v21 }
0x15dd   :  { %6972 = vmatprep.mubr.msk.f32.mxu1 %vm7269_vm2, %v7268_v21 }
0x168a   :  { %v7932_v48 = vpop.f32.mrf.mxu0 }
0x168c   :  { %v7934_v51 = vpop.f32.mrf.mxu1  ;;  %v6926_v52 = vpop.f32.mrf.mxu0 }
0x168e   :  { %v6921_v53 = vpop.f32.mrf.mxu1 }
0x1693   :  { %v6948_v56 = vpop.f32.mrf.mxu0 }
0x1694   :  { %v6937_v58 = vpop.f32.mrf.mxu1  ;;  %v3783_v2 = vadd.f32 %v6948_v56, %v3710_v57  ;;  %v6241_v56 = vld [vmem:[%s8299_s3 + $0x370] sm:$0xff] }
0x1695   :  { %v3777_v60 = vpop.f32.mrf.mxu0  ;;  %v3704_v4 = vadd.f32 %v6937_v58, %v3631_v59 }
0x1696   :  { %v3778_v61 = vadd.f32 %v3777_v60, %v3710_v57  ;;  %v3698_v62 = vpop.f32.mrf.mxu1 }
0x1697   :  { %v3699_v0 = vadd.f32 %v3698_v62, %v3631_v59  ;;  %v6235_v62 = vld [vmem:[%s8299_s3 + $0x250] sm:$0xff] }
0x1698   :  { %6961 = vmatpush3.xpose.msk.msra.mxu0 %vm370_vm3, %v3778_v61 }
0x1699   :  { %6965 = vmatprep.subr.mxu0 %v7268_v21 }
0x169b   :  { %6963 = vmatmul.mubr.msk.f32.vlgmr.msra.gmra.mxu0 %vm370_vm3, %v3699_v0  ;;  %v4369_v0 = vrot.slane %v6235_v62, %v7372_v27 }
0x169c   :  { %6966 = vmatpush3.xpose.msk.msra.mxu0 %vm370_vm3, %v3783_v2  ;;  %v6959_v3 = vpop.f32.mrf.mxu1  ;;  %6967 = vmatprep.mubr.msk.f32.mxu0 %vm7269_vm2, %v7268_v21  ;;  %v6245_v2 = vld [vmem:[%s8299_s3 + $0x390] sm:$0xff] }
0x169d   :  { %v3862_v5 = vadd.f32 %v6959_v3, %v3789_v1  ;;  %6975 = vmatprep.subr.mxu0 %v7268_v21 }
0x169e   :  { %v3856_v6 = vpop.f32.mrf.mxu1 }
0x169f   :  { %v3857_v7 = vadd.f32 %v3856_v6, %v3789_v1  ;;  %6968 = vmatmul.mubr.msk.f32.vlgmr.msra.gmra.mxu0 %vm370_vm3, %v3704_v4  ;;  %v4527_v4 = vrot.slane %v6245_v2, %v7372_v27 }
0x16a0   :  { %6976 = vmatpush3.msra.mxu0 %v3862_v5  ;;  %6977 = vmatprep.mubr.msk.f32.mxu0 %vm7269_vm2, %v7268_v21 }
0x16a1   :  { %6971 = vmatpush3.msra.mxu1 %v3857_v7  ;;  %6985 = vmatprep.subr.mxu0 %v3609_v32 }
0x16a2   :  { %6980 = vmatprep.subr.mxu1 %v4185_v11 }
0x175b   :  { %v3937_v8 = vpop.f32.mrf.mxu0 }
0x175c   :  { %v4017_v9 = vsel %vm370_vm3, %v3937_v8, -inf }
0x175d   :  { %4018 = vmax.xlane.f32.xlu0 %v4017_v9  ;;  %v6964_v10 = vpop.f32.mrf.mxu0 }
0x175f   :  { %v4013_v14 = vpop.f32.mrf.mxu0 }
0x1760   :  { %v4020_v15 = vsel %vm370_vm3, %v4013_v14, -inf }
0x1761   :  { %4021 = vmax.xlane.f32.xlu1 %v4020_v15  ;;  %v6969_v16 = vpop.f32.mrf.mxu0 }
0x17e6   :  { %v4019_v17 = vpop.xlane.xlu0 %4018 }
0x17e7   :  { %v4023_v19 = vsub.f32 %v3937_v8, %v4019_v17 }
0x17e9   :  { %v4025_v20 = vmul.f32 1.442695, %v4023_v19 }
0x17ea   :  { %v4022_v22 = vpop.xlane.xlu1 %4021 }
0x17eb   :  { %7214 = vpow2.f32 %v4025_v20  ;;  %v4024_v23 = vsub.f32 %v4013_v14, %v4022_v22 }
0x17ed   :  { %v4027_v24 = vmul.f32 1.442695, %v4024_v23 }
0x17ef   :  { %7216 = vpow2.f32 %v4027_v24 }
0x17f8   :  { %v7215_v25 = vpop.eup %7214 }
0x17f9   :  { %v4029_v29 = vsel %vm370_vm3, %v7215_v25, 0.0 }
0x17fa   :  { %4030 = vadd.xlane.f32.xlu0 %v4029_v29 }
0x17fc   :  { %v7217_v30 = vpop.eup %7216 }
0x17fd   :  { %v4032_v31 = vsel %vm370_vm3, %v7217_v30, 0.0 }
0x17fe   :  { %4033 = vadd.xlane.f32.xlu1 %v4032_v31 }
0x1883   :  { %v4031_v13 = vpop.xlane.xlu0 %4030 }
0x1884   :  { %7218 = vrcp.f32 %v4031_v13 }
0x1887   :  { %v4034_v12 = vpop.xlane.xlu1 %4033 }
0x1888   :  { %7220 = vrcp.f32 %v4034_v12  ;;  %v6263_v12 = vld [vmem:[%s8299_s3 + $0x270] sm:$0xff] }
0x1891   :  { %v7219_v33 = vpop.eup %7218 }
0x1892   :  { %v4037_v34 = vmul.f32 %v7219_v33, %v7215_v25 }
0x1894   :  { %6973 = vmatmul.mubr.msk.f32.vlgmr.msra.gmra.mxu1 %vm370_vm3, %v4037_v34 }
0x1895   :  { %v7221_v35 = vpop.eup %7220  ;;  %6981 = vmatpush3.msra.mxu1 %v4185_v11  ;;  %v6260_v11 = vld [vmem:[%s8299_s3 + $0x258] sm:$0xff] }
0x1896   :  { %v4038_v36 = vmul.f32 %v7221_v35, %v7217_v30  ;;  %6990 = vmatprep.subr.mxu1 %v6234_v26 }
0x1898   :  { %6978 = vmatmul.mubr.msk.f32.vlgmr.msra.gmra.mxu0 %vm370_vm3, %v4038_v36 }
0x1899   :  { %6987 = vmatprep.mubr.msk.f32.mxu0 %vm370_vm3, %v7934_v51  ;;  %6986 = vmatpush3.msra.mxu0 %v3609_v32  ;;  %v6243_v51 = vld [vmem:[%s8299_s3 + $0x380] sm:$0xff] }
0x189a   :  { %7001 = vmatprep.subr.mxu0 %v6239_v37 }
0x189c   :  { %6988 = vmatmul.mubr.msk.f32.vlgmr.msra.gmra.mxu0 %vm370_vm3, %v7932_v48  ;;  %v6240_v48 = vld [vmem:[%s8299_s3 + $0x2f0] sm:$0xff] }
0x189d   :  { %7002 = vmatpush3.msra.mxu0 %v6239_v37  ;;  %7009 = vmatprep.mubr.msk.f32.mxu0 %vm130_vm1, %v7810_v49  ;;  %v4448_v52 = vrot.slane %v6240_v48, %v7372_v27  ;;  %v6267_v48 = vld [vmem:[%s8299_s3 + $0x308] sm:$0xff] }
0x189e   :  { %7003 = vmatprep.subr.mxu0 %v6238_v38 }
0x189f   :  { %7004 = vmatpush3.msra.mxu0 %v6238_v38 }
0x18a0   :  { %7005 = vmatprep.subr.mxu0 %v6237_v39 }
0x18a1   :  { %7006 = vmatpush3.msra.mxu0 %v6237_v39  ;;  %v6262_v39 = vld [vmem:[%s8299_s3 + $0x268] sm:$0xff] }
0x18a2   :  { %7007 = vmatprep.subr.mxu0 %v6236_v40 }
0x18a3   :  { %7008 = vmatpush3.msra.mxu0 %v6236_v40  ;;  %v6261_v40 = vld [vmem:[%s8299_s3 + $0x260] sm:$0xff] }
0x18a4   :  { %7010 = vmatmul.mubr.msk.f32.vlgmr.msra.gmra.mxu0 %vm130_vm1, %v7812_v50  ;;  %7023 = vmatprep.subr.mxu0 %v7268_v21 }
0x18a5   :  { %7025 = vmatprep.mubr.msk.f32.mxu0 %vm7269_vm2, %v7268_v21 }
0x1954   :  { %v4108_v41 = vpop.f32.mrf.mxu1 }
0x1955   :  { %6982 = vmatprep.mubr.msk.f32.mxu1 %vm370_vm3, %v4108_v41  ;;  %v6272_v41 = vld [vmem:[%s8299_s3 + $0x3a8] sm:$0xff] }
0x1956   :  { %v6974_v18 = vpop.f32.mrf.mxu1 }
0x1957   :  { %v6271_v18 = vld [vmem:[%s8299_s3 + $0x3a0] sm:$0xff] }
0x1958   :  { %v4181_v28 = vpop.f32.mrf.mxu0 }
0x1959   :  { %6983 = vmatmul.mubr.msk.f32.vlgmr.msra.gmra.mxu1 %vm370_vm3, %v4181_v28  ;;  %v6270_v28 = vld [vmem:[%s8299_s3 + $0x398] sm:$0xff] }
0x195a   :  { %6991 = vmatpush3.msra.mxu1 %v6234_v26  ;;  %v6979_v43 = vpop.f32.mrf.mxu0  ;;  %6998 = vmatprep.mubr.msk.f32.mxu1 %vm130_vm1, %v7810_v49  ;;  %v6273_v26 = vld [vmem:[%s8299_s3 + $0x3b0] sm:$0xff] }
0x195b   :  { %6992 = vmatprep.subr.mxu1 %v6233_v42  ;;  %v6268_v43 = vld [vmem:[%s8299_s3 + $0x310] sm:$0xff] }
0x195c   :  { %6993 = vmatpush3.msra.mxu1 %v6233_v42  ;;  %v8009_v46 = vpop.f32.mrf.mxu0  ;;  %v4923_v42 = vld [vmem:[%s8297_s1 + $0xc0] sm:$0xff] }
0x195d   :  { %6994 = vmatprep.subr.mxu1 %v6232_v44 }
0x195e   :  { %6995 = vmatpush3.msra.mxu1 %v6232_v44  ;;  %v8023_v53 = vpop.f32.mrf.mxu0 }
0x195f   :  { %6996 = vmatprep.subr.mxu1 %v6231_v45 }
0x1960   :  { %6997 = vmatpush3.msra.mxu1 %v6231_v45 }
0x1961   :  { %6999 = vmatmul.mubr.msk.f32.vlgmr.msra.gmra.mxu1 %vm130_vm1, %v7812_v50  ;;  %7012 = vmatprep.subr.mxu1 %v6244_v47 }
0x1962   :  { %7013 = vmatpush3.msra.mxu1 %v6244_v47  ;;  %7020 = vmatprep.mubr.msk.f32.mxu1 %vm130_vm1, %v7810_v49 }
0x1963   :  { %7014 = vmatprep.subr.mxu1 %v6243_v51 }
0x1964   :  { %v7011_v55 = vpop.f32.mrf.mxu0  ;;  %7015 = vmatpush3.msra.mxu1 %v6243_v51 }
0x1965   :  { %v4521_v57 = vadd.f32 %v7011_v55, %v4448_v52  ;;  %7016 = vmatprep.subr.mxu1 %v6242_v54 }
0x1966   :  { %v4515_v58 = vpop.f32.mrf.mxu0  ;;  %7017 = vmatpush3.msra.mxu1 %v6242_v54  ;;  %v6265_v54 = vld [vmem:[%s8299_s3 + $0x2f8] sm:$0xff] }
0x1967   :  { %v4516_v59 = vadd.f32 %v4515_v58, %v4448_v52  ;;  %7018 = vmatprep.subr.mxu1 %v6241_v56  ;;  %v6266_v52 = vld [vmem:[%s8299_s3 + $0x300] sm:$0xff] }
0x1968   :  { %7019 = vmatpush3.msra.mxu1 %v6241_v56  ;;  %v6274_v56 = vld [vmem:[%s8299_s3 + $0x3b8] sm:$0xff] }
0x1969   :  { %7021 = vmatmul.mubr.msk.f32.vlgmr.msra.gmra.mxu1 %vm130_vm1, %v7812_v50  ;;  %7024 = vmatpush3.xpose.msk.msra.mxu0 %vm370_vm3, %v4516_v59 }
0x196a   :  { %7028 = vmatprep.subr.mxu0 %v7268_v21  ;;  %7033 = vmatprep.subr.mxu1 %v7268_v21 }
0x196b   :  { %7035 = vmatprep.mubr.msk.f32.mxu1 %vm7269_vm2, %v7268_v21 }
0x1a19   :  { %v8040_v60 = vpop.f32.mrf.mxu1 }
0x1a1b   :  { %v8042_v61 = vpop.f32.mrf.mxu1 }
0x1a21   :  { %v7000_v63 = vpop.f32.mrf.mxu1 }
0x1a22   :  { %v4442_v5 = vadd.f32 %v7000_v63, %v4369_v0 }
0x1a23   :  { %v4436_v1 = vpop.f32.mrf.mxu1 }
0x1a24   :  { %v4437_v3 = vadd.f32 %v4436_v1, %v4369_v0  ;;  %v4345_v1 = vadd.f32 %v8009_v46, %v8040_v60 }
0x1a26   :  { %7026 = vmatmul.mubr.msk.f32.vlgmr.msra.gmra.mxu0 %vm370_vm3, %v4437_v3  ;;  %v4340_v3 = vadd.f32 %v8023_v53, %v8042_v61 }
0x1a27   :  { %7029 = vmatpush3.xpose.msk.msra.mxu0 %vm370_vm3, %v4521_v57  ;;  %7030 = vmatprep.mubr.msk.f32.mxu0 %vm7269_vm2, %v7268_v21  ;;  %v5186_v57 = vrot.slane %v6274_v56, %v7372_v27 }
0x1a28   :  { %7038 = vmatprep.subr.mxu0 %v7268_v21 }
0x1a29   :  { %v7022_v6 = vpop.f32.mrf.mxu1 }
0x1a2a   :  { %v4600_v7 = vadd.f32 %v7022_v6, %v4527_v4  ;;  %7031 = vmatmul.mubr.msk.f32.vlgmr.msra.gmra.mxu0 %vm370_vm3, %v4442_v5 }
0x1a2b   :  { %v4594_v8 = vpop.f32.mrf.mxu1  ;;  %7040 = vmatprep.mubr.msk.f32.mxu0 %vm7269_vm2, %v7268_v21 }
0x1a2c   :  { %v4595_v9 = vadd.f32 %v4594_v8, %v4527_v4  ;;  %7039 = vmatpush3.msra.mxu0 %v4600_v7  ;;  %v6269_v7 = vld [vmem:[%s8299_s3 + $0x318] sm:$0xff] }
0x1a2d   :  { %7048 = vmatprep.subr.mxu0 %v6263_v12  ;;  %v5107_v46 = vrot.slane %v6269_v7, %v7372_v27  ;;  %v5734_v7 = vld [vmem:[%s8297_s1 + $0x140] sm:$0xff] }
0x1a2e   :  { %7034 = vmatpush3.msra.mxu1 %v4595_v9  ;;  %v6264_v9 = vld [vmem:[%s8299_s3 + $0x278] sm:$0xff] }
0x1a2f   :  { %7043 = vmatprep.subr.mxu1 %v4923_v42  ;;  %v5028_v53 = vrot.slane %v6264_v9, %v7372_v27  ;;  %v5732_v9 = vld [vmem:[%s8297_s1 + $0x130] sm:$0xff] }
0x1ae6   :  { %v4675_v10 = vpop.f32.mrf.mxu0 }
0x1ae7   :  { %v4755_v14 = vsel %vm370_vm3, %v4675_v10, -inf }
0x1ae8   :  { %4756 = vmax.xlane.f32.xlu0 %v4755_v14  ;;  %v7027_v15 = vpop.f32.mrf.mxu0 }
0x1aea   :  { %v4751_v16 = vpop.f32.mrf.mxu0 }
0x1aeb   :  { %v4758_v17 = vsel %vm370_vm3, %v4751_v16, -inf }
0x1aec   :  { %4759 = vmax.xlane.f32.xlu1 %v4758_v17  ;;  %v7032_v19 = vpop.f32.mrf.mxu0 }
0x1b71   :  { %v4757_v20 = vpop.xlane.xlu0 %4756 }
0x1b72   :  { %v4761_v22 = vsub.f32 %v4675_v10, %v4757_v20 }
0x1b74   :  { %v4763_v23 = vmul.f32 1.442695, %v4761_v22 }
0x1b75   :  { %v4760_v24 = vpop.xlane.xlu1 %4759 }
0x1b76   :  { %7222 = vpow2.f32 %v4763_v23  ;;  %v4762_v25 = vsub.f32 %v4751_v16, %v4760_v24 }
0x1b78   :  { %v4765_v29 = vmul.f32 1.442695, %v4762_v25 }
0x1b7a   :  { %7224 = vpow2.f32 %v4765_v29 }
0x1b83   :  { %v7223_v30 = vpop.eup %7222 }
0x1b84   :  { %v4767_v31 = vsel %vm370_vm3, %v7223_v30, 0.0 }
0x1b85   :  { %4768 = vadd.xlane.f32.xlu0 %v4767_v31 }
0x1b87   :  { %v7225_v32 = vpop.eup %7224 }
0x1b88   :  { %v4770_v13 = vsel %vm370_vm3, %v7225_v32, 0.0 }
0x1b89   :  { %4771 = vadd.xlane.f32.xlu1 %v4770_v13 }
0x1c0e   :  { %v4769_v33 = vpop.xlane.xlu0 %4768 }
0x1c0f   :  { %7226 = vrcp.f32 %v4769_v33 }
0x1c12   :  { %v4772_v34 = vpop.xlane.xlu1 %4771 }
0x1c13   :  { %7228 = vrcp.f32 %v4772_v34 }
0x1c1c   :  { %v7227_v35 = vpop.eup %7226 }
0x1c1d   :  { %v4775_v36 = vmul.f32 %v7227_v35, %v7223_v30 }
0x1c1f   :  { %7036 = vmatmul.mubr.msk.f32.vlgmr.msra.gmra.mxu1 %vm370_vm3, %v4775_v36 }
0x1c20   :  { %v7229_v37 = vpop.eup %7228  ;;  %7044 = vmatpush3.msra.mxu1 %v4923_v42  ;;  %v6289_v42 = vld [vmem:[%s8297_s1 + $0x157] ss:$0 sm:$0xff] }
0x1c21   :  { %v4776_v38 = vmul.f32 %v7229_v37, %v7225_v32  ;;  %7059 = vmatprep.subr.mxu1 %v6268_v43 }
0x1c23   :  { %7041 = vmatmul.mubr.msk.f32.vlgmr.msra.gmra.mxu0 %vm370_vm3, %v4776_v38 }
0x1c24   :  { %7049 = vmatpush3.msra.mxu0 %v6263_v12  ;;  %7056 = vmatprep.mubr.msk.f32.mxu0 %vm130_vm1, %v7810_v49 }
0x1c25   :  { %7050 = vmatprep.subr.mxu0 %v6262_v39 }
0x1c26   :  { %7051 = vmatpush3.msra.mxu0 %v6262_v39 }
0x1c27   :  { %7052 = vmatprep.subr.mxu0 %v6261_v40 }
0x1c28   :  { %7053 = vmatpush3.msra.mxu0 %v6261_v40  ;;  %v5582_v40 = vld [vmem:[%s8297_s1 + $0xc8] sm:$0xff] }
0x1c29   :  { %7054 = vmatprep.subr.mxu0 %v6260_v11 }
0x1c2a   :  { %7055 = vmatpush3.msra.mxu0 %v6260_v11 }
0x1c2b   :  { %7057 = vmatmul.mubr.msk.f32.vlgmr.msra.gmra.mxu0 %vm130_vm1, %v7812_v50  ;;  %7070 = vmatprep.subr.mxu0 %v6273_v26 }
0x1c2c   :  { %7071 = vmatpush3.msra.mxu0 %v6273_v26  ;;  %7078 = vmatprep.mubr.msk.f32.mxu0 %vm130_vm1, %v7810_v49 }
0x1c2d   :  { %7072 = vmatprep.subr.mxu0 %v6272_v41 }
0x1c2e   :  { %7073 = vmatpush3.msra.mxu0 %v6272_v41 }
0x1c2f   :  { %7074 = vmatprep.subr.mxu0 %v6271_v18 }
0x1c30   :  { %7075 = vmatpush3.msra.mxu0 %v6271_v18 }
0x1c31   :  { %7076 = vmatprep.subr.mxu0 %v6270_v28 }
0x1c32   :  { %7077 = vmatpush3.msra.mxu0 %v6270_v28 }
0x1c33   :  { %7079 = vmatmul.mubr.msk.f32.vlgmr.msra.gmra.mxu0 %vm130_vm1, %v7812_v50  ;;  %7091 = vmatprep.subr.mxu0 %v7268_v21 }
0x1c34   :  { %7093 = vmatprep.mubr.msk.f32.mxu0 %vm7269_vm2, %v7268_v21 }
0x1cdf   :  { %v4846_v44 = vpop.f32.mrf.mxu1 }
0x1ce0   :  { %7045 = vmatprep.mubr.msk.f32.mxu1 %vm370_vm3, %v4846_v44 }
0x1ce1   :  { %v7037_v45 = vpop.f32.mrf.mxu1 }
0x1ce3   :  { %v4919_v47 = vpop.f32.mrf.mxu0 }
0x1ce4   :  { %7046 = vmatmul.mubr.msk.f32.vlgmr.msra.gmra.mxu1 %vm370_vm3, %v4919_v47 }
0x1ce5   :  { %7060 = vmatpush3.msra.mxu1 %v6268_v43  ;;  %v7042_v51 = vpop.f32.mrf.mxu0  ;;  %7067 = vmatprep.mubr.msk.f32.mxu1 %vm130_vm1, %v7810_v49 }
0x1ce6   :  { %7061 = vmatprep.subr.mxu1 %v6267_v48 }
0x1ce7   :  { %7062 = vmatpush3.msra.mxu1 %v6267_v48 }
0x1ce8   :  { %7063 = vmatprep.subr.mxu1 %v6266_v52 }
0x1ce9   :  { %7064 = vmatpush3.msra.mxu1 %v6266_v52 }
0x1cea   :  { %7065 = vmatprep.subr.mxu1 %v6265_v54 }
0x1ceb   :  { %7066 = vmatpush3.msra.mxu1 %v6265_v54  ;;  %v7058_v55 = vpop.f32.mrf.mxu0 }
0x1cec   :  { %7068 = vmatmul.mubr.msk.f32.vlgmr.msra.gmra.mxu1 %vm130_vm1, %v7812_v50  ;;  %7081 = vmatprep.subr.mxu1 %v7268_v21  ;;  %v5101_v15 = vadd.f32 %v7058_v55, %v5028_v53 }
0x1ced   :  { %7083 = vmatprep.mubr.msk.f32.mxu1 %vm7269_vm2, %v7268_v21  ;;  %v5095_v58 = vpop.f32.mrf.mxu0 }
0x1cee   :  { %v5096_v61 = vadd.f32 %v5095_v58, %v5028_v53  ;;  %v5728_v53 = vld [vmem:[%s8297_s1 + $0x110] sm:$0xff] }
0x1cf3   :  { %v7080_v59 = vpop.f32.mrf.mxu0 }
0x1cf4   :  { %v5259_v62 = vadd.f32 %v7080_v59, %v5186_v57 }
0x1cf5   :  { %v5253_v63 = vpop.f32.mrf.mxu0 }
0x1cf6   :  { %v5254_v0 = vadd.f32 %v5253_v63, %v5186_v57 }
0x1cf8   :  { %7092 = vmatpush3.msra.mxu0 %v5254_v0 }
0x1cf9   :  { %7101 = vmatprep.subr.mxu0 %v5582_v40 }
0x1da4   :  { %v7047_v2 = vpop.f32.mrf.mxu1 }
0x1da5   :  { %v8133_v4 = vadd.f32 %v7047_v2, %v4345_v1  ;;  %v5718_v2 = vld [vmem:[%s8298_s2 + $0x38] sm:$0xff] }
0x1da6   :  { %v4996_v5 = vpop.f32.mrf.mxu1 }
0x1da7   :  { %v8135_v6 = vadd.f32 %v4996_v5, %v4340_v3  ;;  %v5717_v3 = vld [vmem:[%s8298_s2 + $0x30] sm:$0xff]  ;;  %v5715_v5 = vld [vmem:[%s8298_s2 + $0x20] sm:$0xff] }
0x1dac   :  { %v7069_v8 = vpop.f32.mrf.mxu1 }
0x1dad   :  { %v5180_v14 = vadd.f32 %v7069_v8, %v5107_v46  ;;  %v5733_v8 = vld [vmem:[%s8297_s1 + $0x138] sm:$0xff] }
0x1dae   :  { %v5174_v60 = vpop.f32.mrf.mxu1 }
0x1daf   :  { %v5175_v10 = vadd.f32 %v5174_v60, %v5107_v46  ;;  %v5731_v46 = vld [vmem:[%s8297_s1 + $0x128] sm:$0xff]  ;;  %v5730_v60 = vld [vmem:[%s8297_s1 + $0x120] sm:$0xff] }
0x1db1   :  { %7082 = vmatpush3.xpose.msk.msra.mxu1 %vm370_vm3, %v5175_v10  ;;  %v5729_v10 = vld [vmem:[%s8297_s1 + $0x118] sm:$0xff] }
0x1db2   :  { %7086 = vmatprep.subr.mxu1 %v7268_v21 }
0x1db4   :  { %7084 = vmatmul.mubr.msk.f32.vlgmr.msra.gmra.mxu1 %vm370_vm3, %v5096_v61  ;;  %v5727_v61 = vld [vmem:[%s8297_s1 + $0x108] sm:$0xff] }
0x1db5   :  { %7087 = vmatpush3.xpose.msk.msra.mxu1 %vm370_vm3, %v5180_v14  ;;  %7088 = vmatprep.mubr.msk.f32.mxu1 %vm7269_vm2, %v7268_v21  ;;  %v5726_v14 = vld [vmem:[%s8297_s1 + $0x100] sm:$0xff] }
0x1db6   :  { %7096 = vmatprep.subr.mxu1 %v7268_v21 }
0x1db8   :  { %7089 = vmatmul.mubr.msk.f32.vlgmr.msra.gmra.mxu1 %vm370_vm3, %v5101_v15  ;;  %v5725_v15 = vld [vmem:[%s8297_s1 + $0xf8] sm:$0xff] }
0x1db9   :  { %7097 = vmatpush3.msra.mxu1 %v5259_v62  ;;  %7098 = vmatprep.mubr.msk.f32.mxu1 %vm7269_vm2, %v7268_v21 }
0x1dba   :  { %7106 = vmatprep.subr.mxu1 %v5718_v2 }
0x1e74   :  { %v5334_v27 = vpop.f32.mrf.mxu1 }
0x1e75   :  { %v5414_v16 = vsel %vm370_vm3, %v5334_v27, -inf }
0x1e76   :  { %5415 = vmax.xlane.f32.xlu0 %v5414_v16  ;;  %v7085_v17 = vpop.f32.mrf.mxu1 }
0x1e78   :  { %v5410_v19 = vpop.f32.mrf.mxu1 }
0x1e79   :  { %v5417_v20 = vsel %vm370_vm3, %v5410_v19, -inf }
0x1e7a   :  { %5418 = vmax.xlane.f32.xlu1 %v5417_v20  ;;  %v7090_v22 = vpop.f32.mrf.mxu1 }
0x1eff   :  { %v5416_v23 = vpop.xlane.xlu0 %5415 }
0x1f00   :  { %v5420_v24 = vsub.f32 %v5334_v27, %v5416_v23  ;;  %v5724_v27 = vld [vmem:[%s8297_s1 + $0xf0] sm:$0xff] }
0x1f02   :  { %v5422_v25 = vmul.f32 1.442695, %v5420_v24 }
0x1f03   :  { %v5419_v29 = vpop.xlane.xlu1 %5418 }
0x1f04   :  { %7230 = vpow2.f32 %v5422_v25  ;;  %v5421_v30 = vsub.f32 %v5410_v19, %v5419_v29  ;;  %v6290_v25 = vld [vmem:[%s8297_s1 + $0x158] ss:$0 sm:$0xff] }
0x1f06   :  { %v5424_v31 = vmul.f32 1.442695, %v5421_v30 }
0x1f08   :  { %7232 = vpow2.f32 %v5424_v31 }
0x1f11   :  { %v7231_v32 = vpop.eup %7230 }
0x1f12   :  { %v5426_v13 = vsel %vm370_vm3, %v7231_v32, 0.0 }
0x1f13   :  { %5427 = vadd.xlane.f32.xlu0 %v5426_v13  ;;  %v6291_v13 = vld [vmem:[%s8297_s1 + $0x159] ss:$0 sm:$0xff] }
0x1f15   :  { %v7233_v12 = vpop.eup %7232 }
0x1f16   :  { %v5429_v33 = vsel %vm370_vm3, %v7233_v12, 0.0 }
0x1f17   :  { %5430 = vadd.xlane.f32.xlu1 %v5429_v33 }
0x1f9c   :  { %v5428_v34 = vpop.xlane.xlu0 %5427 }
0x1f9d   :  { %7234 = vrcp.f32 %v5428_v34 }
0x1fa0   :  { %v5431_v35 = vpop.xlane.xlu1 %5430 }
0x1fa1   :  { %7236 = vrcp.f32 %v5431_v35  ;;  %v5723_v35 = vld [vmem:[%s8297_s1 + $0xe8] sm:$0xff] }
0x1faa   :  { %v7235_v36 = vpop.eup %7234 }
0x1fab   :  { %v5434_v37 = vmul.f32 %v7235_v36, %v7231_v32  ;;  %v5722_v36 = vld [vmem:[%s8297_s1 + $0xe0] sm:$0xff] }
0x1fad   :  { %7094 = vmatmul.mubr.msk.f32.vlgmr.msra.gmra.mxu0 %vm370_vm3, %v5434_v37  ;;  %v5721_v37 = vld [vmem:[%s8297_s1 + $0xd8] sm:$0xff] }
0x1fae   :  { %v7237_v38 = vpop.eup %7236  ;;  %7102 = vmatpush3.msra.mxu0 %v5582_v40 }
0x1faf   :  { %v5435_v39 = vmul.f32 %v7237_v38, %v7233_v12  ;;  %v5720_v38 = vld [vmem:[%s8297_s1 + $0xd0] sm:$0xff] }
0x1fb1   :  { %7099 = vmatmul.mubr.msk.f32.vlgmr.msra.gmra.mxu1 %vm370_vm3, %v5435_v39  ;;  %v6292_v39 = vld [vmem:[%s8298_s2 + $0x61] ss:$0 sm:$0xff] }
0x1fb2   :  { %7107 = vmatpush3.msra.mxu1 %v5718_v2  ;;  %v5955_v2 = vld [vmem:[%s8298_s2 + $0x50] sm:$0xff] }
0x1fb3   :  { %7108 = vmatprep.subr.mxu1 %v5717_v3 }
0x1fb4   :  { %7109 = vmatpush3.msra.mxu1 %v5717_v3  ;;  %v5954_v3 = vld [vmem:[%s8298_s2 + $0x48] sm:$0xff] }
0x206d   :  { %v5505_v11 = vpop.f32.mrf.mxu0 }
0x206e   :  { %7103 = vmatprep.mubr.msk.f32.mxu0 %vm370_vm3, %v5505_v11 }
0x206f   :  { %v7095_v26 = vpop.f32.mrf.mxu0 }
0x2071   :  { %v5578_v41 = vpop.f32.mrf.mxu1 }
0x2072   :  { %7104 = vmatmul.mubr.msk.f32.vlgmr.msra.gmra.mxu0 %vm370_vm3, %v5578_v41 }
0x2073   :  { %v7100_v18 = vpop.f32.mrf.mxu1 }
0x2132   :  { %v7105_v28 = vpop.f32.mrf.mxu0 }
0x2133   :  { %v5665_v43 = vadd.f32 %v7105_v28, %v8133_v4  ;;  %v5716_v4 = vld [vmem:[%s8298_s2 + $0x28] sm:$0xff] }
0x2134   :  { %v5655_v44 = vpop.f32.mrf.mxu0  ;;  %7110 = vmatprep.subr.mxu1 %v5716_v4 }
0x2135   :  { %v5672_v45 = vadd.f32 %v6289_v42, %v5665_v43  ;;  %v5664_v47 = vadd.f32 %v5655_v44, %v8135_v6  ;;  %7111 = vmatpush3.msra.mxu1 %v5716_v4  ;;  %v5735_v6 = vld [vmem:[%s8297_s1 + $0x148] sm:$0xff]  ;;  %v5953_v4 = vld [vmem:[%s8298_s2 + $0x40] sm:$0xff] }
0x2136   :  { %7112 = vmatprep.subr.mxu1 %v5715_v5  ;;  %7117 = vmatprep.subr.mxu0 %v5735_v6 }
0x2137   :  { %v5671_v48 = vadd.f32 %v6289_v42, %v5664_v47  ;;  %v5674_v51 = vadd.f32 %v5672_v45, %v7812_v50  ;;  %7113 = vmatpush3.msra.mxu1 %v5715_v5  ;;  %7118 = vmatpush3.msra.mxu0 %v5735_v6  ;;  %v6295_v42 = vld [vmem:[%s8297_s1 + $0x15a] ss:$0 sm:$0xff] }
0x2138   :  { %7152 = vmatprep.subr.mxu1 %v7268_v21  ;;  %7119 = vmatprep.subr.mxu0 %v5734_v7 }
0x2139   :  { %v5680_v52 = vsel %vm130_vm1, %v5674_v51, 0.0  ;;  %v5673_v54 = vadd.f32 %v5671_v48, %v7810_v49  ;;  %7120 = vmatpush3.msra.mxu0 %v5734_v7 }
0x213a   :  { %5681 = vadd.xlane.f32.xlu1 %v5680_v52  ;;  %7121 = vmatprep.subr.mxu0 %v5733_v8 }
0x213b   :  { %v5677_v55 = vsel %vm130_vm1, %v5673_v54, 0.0  ;;  %7122 = vmatpush3.msra.mxu0 %v5733_v8 }
0x213c   :  { %5678 = vadd.xlane.f32.xlu0 %v5677_v55  ;;  %7123 = vmatprep.subr.mxu0 %v5732_v9 }
0x213d   :  { %7124 = vmatpush3.msra.mxu0 %v5732_v9 }
0x213e   :  { %7125 = vmatprep.subr.mxu0 %v5731_v46 }
0x213f   :  { %7126 = vmatpush3.msra.mxu0 %v5731_v46 }
0x2140   :  { %7127 = vmatprep.subr.mxu0 %v5730_v60 }
0x2141   :  { %7128 = vmatpush3.msra.mxu0 %v5730_v60 }
0x2142   :  { %7129 = vmatprep.subr.mxu0 %v5729_v10 }
0x2143   :  { %7130 = vmatpush3.msra.mxu0 %v5729_v10  ;;  %v6296_v10 = vld [vmem:[%s8297_s1 + $0x15b] ss:$0 sm:$0xff] }
0x2144   :  { %7131 = vmatprep.subr.mxu0 %v5728_v53 }
0x2145   :  { %7132 = vmatpush3.msra.mxu0 %v5728_v53 }
0x2146   :  { %7133 = vmatprep.subr.mxu0 %v5727_v61 }
0x2147   :  { %7134 = vmatpush3.msra.mxu0 %v5727_v61 }
0x2148   :  { %7135 = vmatprep.subr.mxu0 %v5726_v14 }
0x2149   :  { %7136 = vmatpush3.msra.mxu0 %v5726_v14 }
0x214a   :  { %7137 = vmatprep.subr.mxu0 %v5725_v15 }
0x214b   :  { %7138 = vmatpush3.msra.mxu0 %v5725_v15 }
0x214c   :  { %7139 = vmatprep.subr.mxu0 %v5724_v27 }
0x214d   :  { %7140 = vmatpush3.msra.mxu0 %v5724_v27 }
0x214e   :  { %7141 = vmatprep.subr.mxu0 %v5723_v35 }
0x214f   :  { %7142 = vmatpush3.msra.mxu0 %v5723_v35 }
0x2150   :  { %7143 = vmatprep.subr.mxu0 %v5722_v36 }
0x2151   :  { %7144 = vmatpush3.msra.mxu0 %v5722_v36 }
0x2152   :  { %7145 = vmatprep.subr.mxu0 %v5721_v37 }
0x2153   :  { %7146 = vmatpush3.msra.mxu0 %v5721_v37 }
0x2154   :  { %7147 = vmatprep.subr.mxu0 %v5720_v38 }
0x2155   :  { %7148 = vmatpush3.msra.mxu0 %v5720_v38 }
0x21c3   :  { %v5682_v56 = vpop.xlane.xlu1 %5681 }
0x21c4   :  { %v5684_v57 = vmul.f32 0.03125, %v5682_v56 }
0x21c5   :  { %v5679_v58 = vpop.xlane.xlu0 %5678 }
0x21c6   :  { %v8175_v59 = vsub.f32 %v5674_v51, %v5684_v57  ;;  %v5683_v62 = vmul.f32 0.03125, %v5679_v58 }
0x21c8   :  { %v8177_v63 = vsub.f32 %v5673_v54, %v5683_v62  ;;  %v5688_v0 = vmul.f32 %v8175_v59, %v8175_v59 }
0x21ca   :  { %v5692_v50 = vsel %vm130_vm1, %v5688_v0, 0.0  ;;  %v5687_v49 = vmul.f32 %v8177_v63, %v8177_v63 }
0x21cb   :  { %5693 = vadd.xlane.f32.xlu1 %v5692_v50 }
0x21cc   :  { %v5689_v1 = vsel %vm130_vm1, %v5687_v49, 0.0 }
0x21cd   :  { %5690 = vadd.xlane.f32.xlu0 %v5689_v1  ;;  %v5956_v1 = vld [vmem:[%s8298_s2 + $0x58] sm:$0xff] }
0x2254   :  { %v5694_v16 = vpop.xlane.xlu1 %5693 }
0x2255   :  { %v5696_v17 = vmul.f32 0.03125, %v5694_v16 }
0x2256   :  { %v5691_v19 = vpop.xlane.xlu0 %5690 }
0x2257   :  { %v5698_v20 = vadd.f32 1e-05, %v5696_v17  ;;  %v5695_v22 = vmul.f32 0.03125, %v5691_v19 }
0x2259   :  { %7238 = vrsqrt.f32 %v5698_v20  ;;  %v5697_v23 = vadd.f32 1e-05, %v5695_v22 }
0x225b   :  { %7240 = vrsqrt.f32 %v5697_v23  ;;  %v6298_v23 = vld [vmem:[%s8298_s2 + $0x62] ss:$0 sm:$0xff] }
0x2266   :  { %v7239_v24 = vpop.eup %7238 }
0x2267   :  { %v5702_v29 = vmul.f32 %v7239_v24, %v8175_v59 }
0x2268   :  { %v7241_v30 = vpop.eup %7240 }
0x2269   :  { %v5701_v31 = vmul.f32 %v7241_v30, %v8177_v63  ;;  %v5708_v32 = vmul.f32 %v6290_v25, %v5702_v29 }
0x226b   :  { %v5707_v12 = vmul.f32 %v6290_v25, %v5701_v31  ;;  %v5714_v34 = vadd.f32 %v6291_v13, %v5708_v32 }
0x226d   :  { %v5713_v33 = vadd.f32 %v6291_v13, %v5707_v12 }
0x226f   :  { %7114 = vmatprep.mubr.msk.f32.mxu1 %vm130_vm1, %v5713_v33 }
0x2270   :  { %7115 = vmatmul.mubr.msk.f32.vlgmr.msra.gmra.mxu1 %vm130_vm1, %v5714_v34 }
0x2271   :  { %7160 = vmatprep.mubr.msk.f32.mxu1 %vm7269_vm2, %v7268_v21  ;;  %7153 = vmatpush3.msra.mxu1 %v5956_v1 }
0x2272   :  { %7154 = vmatprep.subr.mxu1 %v7268_v21 }
0x2273   :  { %7155 = vmatpush3.msra.mxu1 %v5955_v2 }
0x2274   :  { %7156 = vmatprep.subr.mxu1 %v7268_v21 }
0x2275   :  { %7157 = vmatpush3.msra.mxu1 %v5954_v3 }
0x2276   :  { %7158 = vmatprep.subr.mxu1 %v7268_v21  ;;  %v6297_v21 = vld [vmem:[%s8297_s1 + $0x15c] ss:$0 sm:$0xff]  ;;  %s7246_s1 = scalar_lea.vmem %s6043_s19, 32 }
0x2277   :  { %7159 = vmatpush3.msra.mxu1 %v5953_v4  ;;  %p7247_p0 = scmp.ne.s32.totalorder %s6043_s19, %s7246_s1  ;;  %p7252_p2 = scmp.lt.s32.totalorder %s7246_s1, %s7246_s1 }
0x2279   :  { %p7253_p3 = por %p7252_p2, %p7251_p1 }
0x227b   :  { %p7254_p4 = pnand %p7253_p3, %p7247_p0 }
0x2330   :  { %v7116_v40 = vpop.f32.mrf.mxu1 }
0x2331   :  { %v5819_v11 = vadd.f32 %v7116_v40, %v6292_v39 }
0x2332   :  { %v5813_v26 = vpop.f32.mrf.mxu1 }
0x2333   :  { %v5814_v41 = vadd.f32 %v6292_v39, %v5813_v26  ;;  %v5823_v28 = vmax.f32 %v5819_v11, 0.0 }
0x2335   :  { %v5822_v18 = vmax.f32 %v5814_v41, 0.0 }
0x2337   :  { %7149 = vmatprep.mubr.f32.mxu0 %v5822_v18 }
0x2338   :  { %7150 = vmatmul.mubr.f32.vlgmr.msra.gmra.mxu0 %v5823_v28 }
0x23f8   :  { %v7151_v43 = vpop.f32.mrf.mxu0 }
0x23f9   :  { %v5900_v44 = vadd.f32 %v7151_v43, %v6295_v42 }
0x23fa   :  { %v5894_v45 = vpop.f32.mrf.mxu0 }
0x23fb   :  { %v5895_v47 = vadd.f32 %v6295_v42, %v5894_v45  ;;  %v5904_v48 = vadd.f32 %v5900_v44, %v5714_v34 }
0x23fd   :  { %v5910_v51 = vsel %vm130_vm1, %v5904_v48, 0.0  ;;  %v5903_v52 = vadd.f32 %v5895_v47, %v5713_v33 }
0x23fe   :  { %5911 = vadd.xlane.f32.xlu1 %v5910_v51 }
0x23ff   :  { %v5907_v54 = vsel %vm130_vm1, %v5903_v52, 0.0 }
0x2400   :  { %5908 = vadd.xlane.f32.xlu0 %v5907_v54 }
0x2487   :  { %v5912_v55 = vpop.xlane.xlu1 %5911 }
0x2488   :  { %v5914_v56 = vmul.f32 0.03125, %v5912_v55 }
0x2489   :  { %v5909_v57 = vpop.xlane.xlu0 %5908 }
0x248a   :  { %v5916_v58 = vsub.f32 %v5904_v48, %v5914_v56  ;;  %v5913_v59 = vmul.f32 0.03125, %v5909_v57 }
0x248c   :  { %v5915_v62 = vsub.f32 %v5903_v52, %v5913_v59  ;;  %v5918_v63 = vmul.f32 %v5916_v58, %v5916_v58 }
0x248e   :  { %v5922_v0 = vsel %vm130_vm1, %v5918_v63, 0.0  ;;  %v5917_v50 = vmul.f32 %v5915_v62, %v5915_v62 }
0x248f   :  { %5923 = vadd.xlane.f32.xlu1 %v5922_v0 }
0x2490   :  { %v5919_v49 = vsel %vm130_vm1, %v5917_v50, 0.0 }
0x2491   :  { %5920 = vadd.xlane.f32.xlu0 %v5919_v49 }
0x2518   :  { %v5924_v5 = vpop.xlane.xlu1 %5923 }
0x2519   :  { %v5926_v6 = vmul.f32 0.03125, %v5924_v5 }
0x251a   :  { %v5921_v7 = vpop.xlane.xlu0 %5920 }
0x251b   :  { %v5928_v8 = vadd.f32 1e-05, %v5926_v6  ;;  %v5925_v9 = vmul.f32 0.03125, %v5921_v7 }
0x251d   :  { %7242 = vrsqrt.f32 %v5928_v8  ;;  %v5927_v46 = vadd.f32 1e-05, %v5925_v9 }
0x251f   :  { %7244 = vrsqrt.f32 %v5927_v46 }
0x252a   :  { %v7243_v60 = vpop.eup %7242 }
0x252b   :  { %v5932_v53 = vmul.f32 %v7243_v60, %v5916_v58 }
0x252c   :  { %v7245_v61 = vpop.eup %7244 }
0x252d   :  { %v5931_v14 = vmul.f32 %v7245_v61, %v5915_v62  ;;  %v5938_v15 = vmul.f32 %v6296_v10, %v5932_v53 }
0x252f   :  { %v5937_v27 = vmul.f32 %v6296_v10, %v5931_v14  ;;  %v5944_v16 = vadd.f32 %v6297_v21, %v5938_v15 }
0x2531   :  { %v5943_v17 = vadd.f32 %v6297_v21, %v5937_v27  ;;  %v5949_v20 = vrot.slane %v5944_v16, 6 }
0x2533   :  { %v5946_v19 = vrot.slane %v5943_v17, 7 }
0x2535   :  { %v5952_v22 = vsel %vm5951_vm4, %v5946_v19, %v5949_v20 }
0x2536   :  { %7161 = vmatmul.mubr.msk.f32.vlgmr.msra.gmra.mxu1 %vm130_vm1, %v5952_v22 }
0x25f6   :  { %v6031_v24 = vpop.f32.mrf.mxu1 }
0x25f7   :  { %v6032_v25 = vadd.f32 %v6298_v23, %v6031_v24 }
0x25f8   :  { %v7162_v29 = vpop.f32.mrf.mxu1 }
0x25f9   :  { %6035 = vst [vmem:[#allocation2] sm:$0x3] %v6032_v25 }
0x25fa   :  { %7257 = shalt.err (!%p7254_p4)
}
0x25fb   :  { %6045 = dma.vmem_to_hbm [thread:$0]  %s6043_s19, 32, %s8300_s4, [#allocation3]  }
0x25fc   :  { %7266 = dma.done.wait [#allocation3], 32  }
0x25fd   :  { %7267 = vsyncadd [#allocation3], 4294967264 }
0x25fe   :  { %6049 = vsyncpa [#allocation3], 1 }

</bundles_post_ra>
